<compile_context>
chip_gen: v5e
topology: v5e:2x2
jax: 0.10.0
libtpu: 0.0.40
codegen_flags: <defaults>
</compile_context>

<pallas_src>
import functools

import jax
import jax.numpy as jnp
from jax.experimental import pallas as pl
from jax.experimental.pallas import tpu as pltpu

LANE = 128


def _round_up(x, m):
    return (x + m - 1) // m * m


def _pad2(x, rows, cols):
    return jnp.pad(x, ((0, rows - x.shape[0]), (0, cols - x.shape[1])))


def _fit_rows(x, rows):
    r = x.shape[0]
    if r == rows:
        return x
    if r > rows:
        return x[:rows]
    return jnp.pad(x, ((0, rows - r), (0, 0)))


# --------------------------------------------------------------------------- #
# Kernel: one SAGEConv layer (+ ReLU, optionally + masked log_softmax)
# --------------------------------------------------------------------------- #
def _sage_layer_kernel(a_ref, xagg_ref, xs_ref, inv_ref, wl_ref, wr_ref, b_ref,
                       out_ref, acc_ref, *, tk, resident_x, c_valid):
    """Row tile i, reduction step k over the adjacency columns."""
    k = pl.program_id(1)

    @pl.when(k == 0)
    def _():
        acc_ref[...] = jnp.zeros_like(acc_ref)

    # Aggregation partial sum: (tm, tk) @ (tk, F_pad) on the MXU, f32 accumulate.
    # A is an int8 0/1 (edge count) matrix; the cheap int8->bf16 cast hides under
    # the A-tile DMA. The 1/deg normalization is applied exactly in f32 at the end.
    if resident_x:
        start = pl.multiple_of(k * tk, tk)
        xk = xagg_ref[pl.ds(start, tk), :]
    else:
        xk = xagg_ref[...]
    a = a_ref[...].astype(jnp.bfloat16)
    acc_ref[...] += jnp.dot(a, xk, preferred_element_type=jnp.float32)

    @pl.when(k == pl.num_programs(1) - 1)
    def _():
        # Exact mean: per-row inverse degree (f32), then two skinny matmuls
        # summed (no concat temp): agg @ W_l + x_self @ W_r + b.
        agg = (acc_ref[...] * inv_ref[...]).astype(jnp.bfloat16)
        h = jnp.dot(agg, wl_ref[...], preferred_element_type=jnp.float32)
        h = h + jnp.dot(xs_ref[...], wr_ref[...],
                        preferred_element_type=jnp.float32)
        h = h + b_ref[...]
        h = jnp.maximum(h, 0.0)                      # ReLU, f32 on the VPU
        if c_valid is None:
            out_ref[...] = h.astype(out_ref.dtype)   # hidden layer, bf16 out
        else:
            # Mask padded lanes out of the softmax; log_softmax in f32.
            lane = jax.lax.broadcasted_iota(jnp.int32, h.shape, 1)
            h = jnp.where(lane < c_valid, h, -jnp.inf)
            m = jnp.max(h, axis=-1, keepdims=True)
            z = h - m
            lse = jnp.log(jnp.sum(jnp.exp(z), axis=-1, keepdims=True))
            out_ref[...] = (z - lse).astype(out_ref.dtype)


def _vmem_limit_bytes(need):
    """Tile-derived VMEM budget with headroom, capped below physical VMEM."""
    cap = 128 << 20
    try:  # v7x-class chips only have 64 MiB / TensorCore
        cap = int(getattr(pltpu.get_tpu_info(), "vmem_capacity_bytes", cap))
    except Exception:
        pass
    hi = max(cap - (16 << 20), 32 << 20)
    return int(min(max(need * 3 // 2 + (4 << 20), 32 << 20), hi))


def _sage_layer(a_pad, x_agg, x_self, inv_deg, w_l, w_r, bias, *,
                tm, tk, out_dtype, c_valid, resident_x):
    n_rows_pad, n_cols_pad = a_pad.shape
    f_pad = x_agg.shape[1]
    h_pad = w_l.shape[1]
    grid = (n_rows_pad // tm, n_cols_pad // tk)

    kernel = functools.partial(_sage_layer_kernel, tk=tk,
                               resident_x=resident_x, c_valid=c_valid)

    out_bytes = jnp.dtype(out_dtype).itemsize
    flops = 2 * n_rows_pad * n_cols_pad * f_pad + 4 * n_rows_pad * f_pad * h_pad
    transcendentals = n_rows_pad * h_pad if c_valid is not None else 0
    x_agg_reads = 1 if resident_x else (n_rows_pad // tm)
    bytes_accessed = (a_pad.size                       # int8 adjacency
                      + x_agg.size * 2 * x_agg_reads   # bf16 aggregation operand
                      + x_self.size * 2                # bf16 self rows
                      + inv_deg.size * 4
                      + (w_l.size + w_r.size) * 2
                      + bias.size * 4
                      + n_rows_pad * h_pad * out_bytes)

    if resident_x:
        xagg_spec = pl.BlockSpec((n_cols_pad, f_pad), lambda i, k: (0, 0))
        xagg_buf = 2 * n_cols_pad * f_pad * 2
    else:
        xagg_spec = pl.BlockSpec((tk, f_pad), lambda i, k: (k, 0))
        xagg_buf = 2 * tk * f_pad * 2

    vmem_need = (2 * tm * tk                  # A tiles (int8), double-buffered
                 + xagg_buf                   # aggregation operand (bf16)
                 + 2 * tm * f_pad * 2         # self rows (bf16)
                 + 2 * tm * 4                 # inverse degree
                 + 2 * 2 * f_pad * h_pad * 2  # W_l + W_r (bf16)
                 + 2 * h_pad * 4              # bias
                 + 2 * tm * h_pad * out_bytes # output
                 + tm * f_pad * 4)            # f32 accumulator scratch

    return pl.pallas_call(
        kernel,
        out_shape=jax.ShapeDtypeStruct((n_rows_pad, h_pad), out_dtype),
        grid=grid,
        in_specs=[
            # int8 adjacency tile (dominant HBM stream)
            pl.BlockSpec((tm, tk), lambda i, k: (i, k)),
            # aggregation operand (VMEM-resident or streamed per K block)
            xagg_spec,
            # feature rows for the current row block (self / root path)
            pl.BlockSpec((tm, f_pad), lambda i, k: (i, 0)),
            # per-row inverse degree (exact mean normalization)
            pl.BlockSpec((tm, 1), lambda i, k: (i, 0)),
            # W_l, W_r, bias — constant index maps → VMEM resident
            pl.BlockSpec((f_pad, h_pad), lambda i, k: (0, 0)),
            pl.BlockSpec((f_pad, h_pad), lambda i, k: (0, 0)),
            pl.BlockSpec((1, h_pad), lambda i, k: (0, 0)),
        ],
        out_specs=pl.BlockSpec((tm, h_pad), lambda i, k: (i, 0)),
        scratch_shapes=[pltpu.VMEM((tm, f_pad), jnp.float32)],
        compiler_params=pltpu.CompilerParams(
            dimension_semantics=("parallel", "arbitrary"),
            vmem_limit_bytes=_vmem_limit_bytes(vmem_need)),
        cost_estimate=pl.CostEstimate(flops=flops,
                                      transcendentals=transcendentals,
                                      bytes_accessed=bytes_accessed),
    )(a_pad, x_agg, x_self, inv_deg, w_l, w_r, bias)


# --------------------------------------------------------------------------- #
# Wrapper / glue
# --------------------------------------------------------------------------- #
def _default_tiles():
    """Generation-aware defaults; v7x-class (<=64 MiB VMEM, ~3.2 TB/s HBM) gets
    a larger reduction tile to amortize the fixed per-grid-step cost."""
    tm, tk = 512, 1024
    try:
        vmem = int(getattr(pltpu.get_tpu_info(), "vmem_capacity_bytes",
                           128 << 20))
        if vmem <= (64 << 20):
            tm, tk = 512, 2048
    except Exception:
        pass
    return tm, tk


def _build_padded_adjacency(edge_index, num_nodes, rows_pad, cols_pad):
    """int8 edge-count matrix built directly at padded shape + f32 inv-degree.

    A[i, j] = #edges j->i (PyG convention: row0=src, row1=dst).  Padded rows and
    columns are all-zero.  Degree is computed O(E) from the edge list.
    TODO(synk): int8 overflows if >127 parallel edges share one (src, dst) pair.
    """
    src, dst = edge_index[0], edge_index[1]
    counts = jnp.zeros((rows_pad, cols_pad), jnp.int32).at[dst, src].add(1)
    a_i8 = counts.astype(jnp.int8)
    deg = jnp.zeros((num_nodes,), jnp.float32).at[dst].add(1.0)
    inv = 1.0 / jnp.maximum(deg, 1.0)
    inv_pad = jnp.pad(inv, (0, rows_pad - num_nodes))[:, None]   # (rows_pad, 1)
    return a_i8, inv_pad


def graphsage_forward(x, edge_index, params, *, tm=None, tk=None):
    n, c_in = x.shape
    hidden = params["w1l"].shape[1]
    c_out = params["w2l"].shape[1]

    tm_d, tk_d = _default_tiles()
    tm = tm if tm is not None else tm_d
    tk = tk if tk is not None else tk_d
    # Clamp tiles to the problem size (independent row/col padding, no lcm rule).
    tm = min(tm, _round_up(n, 256))
    tk = min(tk, _round_up(n, 256))
    # Keep >= 2 row blocks when possible so the "parallel" row axis can shard
    # across both TensorCores on v7x (neutral on single-TC v5e/v6e).
    if _round_up(n, tm) // tm < 2 and tm > 256:
        tm = max(256, (_round_up(n, 256) // 2) // 256 * 256)

    n_rows_pad = _round_up(n, tm)
    n_cols_pad = _round_up(n, tk)
    c_in_pad = _round_up(c_in, LANE)
    hid_pad = _round_up(hidden, LANE)
    c_out_pad = _round_up(c_out, LANE)

    # Keep the whole aggregation operand VMEM-resident for moderate graphs
    # (removes the per-row-block X re-stream); stream per-K otherwise.
    def _resident(f_pad):
        return n_cols_pad * f_pad * 2 * 2 <= (8 << 20)

    a_pad, inv_deg = _build_padded_adjacency(edge_index, n, n_rows_pad, n_cols_pad)

    x_rows = _pad2(x, n_rows_pad, c_in_pad).astype(jnp.bfloat16)   # self path
    x_cols = _pad2(x, n_cols_pad, c_in_pad).astype(jnp.bfloat16)   # aggregation

    # Weights (fan_in, fan_out), zero-padded to lane-dense widths, bf16 for MXU.
    w1l = _pad2(params["w1l"], c_in_pad, hid_pad).astype(jnp.bfloat16)
    w1r = _pad2(params["w1r"], c_in_pad, hid_pad).astype(jnp.bfloat16)
    w2l = _pad2(params["w2l"], hid_pad, c_out_pad).astype(jnp.bfloat16)
    w2r = _pad2(params["w2r"], hid_pad, c_out_pad).astype(jnp.bfloat16)
    b1 = _pad2(params["b1"], 1, hid_pad).astype(jnp.float32)
    b2 = _pad2(params["b2"], 1, c_out_pad).astype(jnp.float32)

    # Pass 1: h1 = relu(SAGEConv1(x)) — bf16, lane-dense, stays in HBM for pass 2.
    h1 = _sage_layer(a_pad, x_cols, x_rows, inv_deg, w1l, w1r, b1,
                     tm=tm, tk=tk, out_dtype=jnp.bfloat16, c_valid=None,
                     resident_x=_resident(c_in_pad))

    # NOTE: padded rows of h1 equal relu(b1), not zero. This is harmless because
    # the padded adjacency COLUMNS are all-zero, so those rows never contribute
    # to layer-2 aggregation; do not change the A padding without revisiting this.
    h1_cols = _fit_rows(h1, n_cols_pad)

    # Pass 2: log_softmax(relu(SAGEConv2(h1))) — f32 logits / log-probs.
    out = _sage_layer(a_pad, h1_cols, h1, inv_deg, w2l, w2r, b2,
                      tm=tm, tk=tk, out_dtype=jnp.float32, c_valid=c_out,
                      resident_x=_resident(hid_pad))
    return out[:n, :c_out]


def graphsage_reference(x, edge_index, params):
    """Pure-JAX f32 reference for validation."""
    n = x.shape[0]
    src, dst = edge_index[0], edge_index[1]
    a = jnp.zeros((n, n), jnp.float32).at[dst, src].add(1.0)
    a = a / jnp.maximum(jnp.sum(a, axis=1, keepdims=True), 1.0)
    h1 = jnp.maximum(a @ x @ params["w1l"] + x @ params["w1r"] + params["b1"], 0.0)
    h2 = jnp.maximum(a @ h1 @ params["w2l"] + h1 @ params["w2r"] + params["b2"], 0.0)
    return jax.nn.log_softmax(h2, axis=-1)


def init_params(key, in_channels, hidden_channels, out_channels):
    ks = jax.random.split(key, 4)

    def glorot(k, fan_in, fan_out):
        lim = (6.0 / (fan_in + fan_out)) ** 0.5
        return jax.random.uniform(k, (fan_in, fan_out), jnp.float32, -lim, lim)

    return {
        "w1l": glorot(ks[0], in_channels, hidden_channels),
        "w1r": glorot(ks[1], in_channels, hidden_channels),
        "b1": jnp.zeros((1, hidden_channels), jnp.float32),
        "w2l": glorot(ks[2], hidden_channels, out_channels),
        "w2r": glorot(ks[3], hidden_channels, out_channels),
        "b2": jnp.zeros((1, out_channels), jnp.float32),
    }


if __name__ == "__main__":
    key = jax.random.PRNGKey(0)
    k_x, k_e, k_p = jax.random.split(key, 3)

    # 1200 nodes -> (with tm=512, tk=1024) rows pad to 1536 (3 row blocks),
    # cols pad to 2048 (2 reduction steps): exercises accumulate + finalize.
    num_nodes = 1200
    in_channels, hidden_channels, out_channels = 16, 32, 7
    num_edges = 4800

    x = jax.random.normal(k_x, (num_nodes, in_channels), jnp.float32)
    edge_index = jax.random.randint(k_e, (2, num_edges), 0, num_nodes, jnp.int32)
    params = init_params(k_p, in_channels, hidden_channels, out_channels)

    out = graphsage_forward(x, edge_index, params)
    jax.block_until_ready(out)

    assert out.shape == (num_nodes, out_channels)
    # log_softmax rows should sum to ~1 after exp
    assert jnp.allclose(jnp.sum(jnp.exp(out), axis=-1), 1.0, atol=1e-3)
    # loose check against the f32 dense reference (bf16 MXU operands / bf16 h1)
    ref = graphsage_reference(x, edge_index, params)
    err = float(jnp.max(jnp.abs(out - ref)))
    assert err < 0.2, f"max abs err vs reference: {err}"
    print("KERNEL_OK")
</pallas_src>

<mosaic_0001>
module attributes {stable_mosaic.version = 11 : i64} {
  func.func @_sage_layer_kernel(%arg0: i32, %arg1: i32, %arg2: memref<512x1024xi8, #tpu.memory_space<vmem>>, %arg3: memref<2048x128xbf16, #tpu.memory_space<vmem>>, %arg4: memref<512x128xbf16, #tpu.memory_space<vmem>>, %arg5: memref<512x1xf32, #tpu.memory_space<vmem>>, %arg6: memref<128x128xbf16, #tpu.memory_space<vmem>>, %arg7: memref<128x128xbf16, #tpu.memory_space<vmem>>, %arg8: memref<1x128xf32, #tpu.memory_space<vmem>>, %arg9: memref<512x128xbf16, #tpu.memory_space<vmem>>, %arg10: memref<512x128xf32, #tpu.memory_space<vmem>>) attributes {dimension_semantics = [#tpu.dimension_semantics<parallel>, #tpu.dimension_semantics<arbitrary>], iteration_bounds = array<i64: 3, 2>, scalar_prefetch = 0 : i64, scratch_operands = 1 : i64, tpu.core_type = #tpu.core_type<tc>, window_params = [{transform_indices = @transform_0, window_bounds = array<i64: 512, 1024>}, {pipeline_mode = #tpu.pipeline_mode<synchronous>, transform_indices = @transform_1, window_bounds = array<i64: 2048, 128>}, {transform_indices = @transform_2, window_bounds = array<i64: 512, 128>}, {transform_indices = @transform_3, window_bounds = array<i64: 512, 1>}, {pipeline_mode = #tpu.pipeline_mode<synchronous>, transform_indices = @transform_4, window_bounds = array<i64: 128, 128>}, {pipeline_mode = #tpu.pipeline_mode<synchronous>, transform_indices = @transform_5, window_bounds = array<i64: 128, 128>}, {pipeline_mode = #tpu.pipeline_mode<synchronous>, transform_indices = @transform_6, window_bounds = array<i64: 1, 128>}, {transform_indices = @transform_7, window_bounds = array<i64: 512, 128>}]} {
    %c0_i32 = arith.constant 0 : i32
    %0 = arith.cmpi eq, %arg1, %c0_i32 : i32
    %1 = arith.extui %0 : i1 to i32
    %c0_i32_0 = arith.constant 0 : i32
    %2 = arith.cmpi ne, %1, %c0_i32_0 : i32
    scf.if %2 {
      %cst_8 = arith.constant 0.000000e+00 : f32
      %16 = vector.broadcast %cst_8 : f32 to vector<512x128xf32>
      %c0_9 = arith.constant 0 : index
      %c0_10 = arith.constant 0 : index
      %17 = vector.load %arg10[%c0_9, %c0_10] : memref<512x128xf32, #tpu.memory_space<vmem>>, vector<512x128xf32>
      tpu.vector_store %arg10[%c0_9, %c0_10], %16 {strides = array<i32>} : memref<512x128xf32, #tpu.memory_space<vmem>>, vector<512x128xf32>,
    } else {
    }
    %c1024_i32 = arith.constant 1024 : i32
    %3 = arith.muli %arg1, %c1024_i32 : i32
    %4 = tpu.assume_multiple %3, 1024 : i32
    %5 = arith.index_cast %4 : i32 to index
    %c0 = arith.constant 0 : index
    %6 = vector.load %arg3[%5, %c0] : memref<2048x128xbf16, #tpu.memory_space<vmem>>, vector<1024x128xbf16>
    %c0_1 = arith.constant 0 : index
    %c0_2 = arith.constant 0 : index
    %7 = vector.load %arg2[%c0_1, %c0_2] : memref<512x1024xi8, #tpu.memory_space<vmem>>, vector<512x1024xi8>
    %8 = arith.sitofp %7 : vector<512x1024xi8> to vector<512x1024xbf16>
    %c0_3 = arith.constant 0 : index
    %c0_4 = arith.constant 0 : index
    %9 = vector.load %arg10[%c0_3, %c0_4] : memref<512x128xf32, #tpu.memory_space<vmem>>, vector<512x128xf32>
    %cst = arith.constant dense<0.000000e+00> : vector<512x128xf32>
    %10 = tpu.matmul %8, %6, %cst {dimension_numbers = #tpu.dot_dimension_numbers<[1], [0], [0], [1], [0, 0, 1, 1], [], []>} : vector<512x1024xbf16>, vector<1024x128xbf16>, vector<512x128xf32> -> vector<512x128xf32>
    %11 = arith.addf %9, %10 : vector<512x128xf32>
    %c0_5 = arith.constant 0 : index
    %c0_6 = arith.constant 0 : index
    %12 = vector.load %arg10[%c0_5, %c0_6] : memref<512x128xf32, #tpu.memory_space<vmem>>, vector<512x128xf32>
    tpu.vector_store %arg10[%c0_5, %c0_6], %11 {strides = array<i32>} : memref<512x128xf32, #tpu.memory_space<vmem>>, vector<512x128xf32>,
    %c1_i32 = arith.constant 1 : i32
    %13 = arith.cmpi eq, %arg1, %c1_i32 : i32
    %14 = arith.extui %13 : i1 to i32
    %c0_i32_7 = arith.constant 0 : i32
    %15 = arith.cmpi ne, %14, %c0_i32_7 : i32
    scf.if %15 {
      %c0_8 = arith.constant 0 : index
      %c0_9 = arith.constant 0 : index
      %16 = vector.load %arg10[%c0_8, %c0_9] : memref<512x128xf32, #tpu.memory_space<vmem>>, vector<512x128xf32>
      %c0_10 = arith.constant 0 : index
      %c0_11 = arith.constant 0 : index
      %17 = vector.load %arg5[%c0_10, %c0_11] : memref<512x1xf32, #tpu.memory_space<vmem>>, vector<512x1xf32>
      %18 = vector.broadcast %17 : vector<512x1xf32> to vector<512x128xf32>
      %19 = arith.mulf %16, %18 : vector<512x128xf32>
      %20 = arith.truncf %19 : vector<512x128xf32> to vector<512x128xbf16>
      %c0_12 = arith.constant 0 : index
      %c0_13 = arith.constant 0 : index
      %21 = vector.load %arg6[%c0_12, %c0_13] : memref<128x128xbf16, #tpu.memory_space<vmem>>, vector<128x128xbf16>
      %cst_14 = arith.constant dense<0.000000e+00> : vector<512x128xf32>
      %22 = tpu.matmul %20, %21, %cst_14 {dimension_numbers = #tpu.dot_dimension_numbers<[1], [0], [0], [1], [0, 0, 1, 1], [], []>} : vector<512x128xbf16>, vector<128x128xbf16>, vector<512x128xf32> -> vector<512x128xf32>
      %c0_15 = arith.constant 0 : index
      %c0_16 = arith.constant 0 : index
      %23 = vector.load %arg4[%c0_15, %c0_16] : memref<512x128xbf16, #tpu.memory_space<vmem>>, vector<512x128xbf16>
      %c0_17 = arith.constant 0 : index
      %c0_18 = arith.constant 0 : index
      %24 = vector.load %arg7[%c0_17, %c0_18] : memref<128x128xbf16, #tpu.memory_space<vmem>>, vector<128x128xbf16>
      %cst_19 = arith.constant dense<0.000000e+00> : vector<512x128xf32>
      %25 = tpu.matmul %23, %24, %cst_19 {dimension_numbers = #tpu.dot_dimension_numbers<[1], [0], [0], [1], [0, 0, 1, 1], [], []>} : vector<512x128xbf16>, vector<128x128xbf16>, vector<512x128xf32> -> vector<512x128xf32>
      %26 = arith.addf %22, %25 : vector<512x128xf32>
      %c0_20 = arith.constant 0 : index
      %c0_21 = arith.constant 0 : index
      %27 = vector.load %arg8[%c0_20, %c0_21] : memref<1x128xf32, #tpu.memory_space<vmem>>, vector<1x128xf32>
      %28 = vector.broadcast %27 : vector<1x128xf32> to vector<512x128xf32>
      %29 = arith.addf %26, %28 : vector<512x128xf32>
      %cst_22 = arith.constant 0.000000e+00 : f32
      %30 = vector.broadcast %cst_22 : f32 to vector<512x128xf32>
      %31 = arith.maximumf %29, %30 : vector<512x128xf32>
      %32 = arith.truncf %31 : vector<512x128xf32> to vector<512x128xbf16>
      %c0_23 = arith.constant 0 : index
      %c0_24 = arith.constant 0 : index
      %33 = vector.load %arg9[%c0_23, %c0_24] : memref<512x128xbf16, #tpu.memory_space<vmem>>, vector<512x128xbf16>
      tpu.vector_store %arg9[%c0_23, %c0_24], %32 {strides = array<i32>} : memref<512x128xbf16, #tpu.memory_space<vmem>>, vector<512x128xbf16>,
    } else {
    }
    return
  }
  func.func @transform_0(%arg0: i32, %arg1: i32) -> (i32, i32) {
    %c0_i32 = arith.constant 0 : i32
    return %arg0, %arg1 : i32, i32
  }
  func.func @transform_1(%arg0: i32, %arg1: i32) -> (i32, i32) {
    %c0_i32 = arith.constant 0 : i32
    %c0_i32_0 = arith.constant 0 : i32
    %c0_i32_1 = arith.constant 0 : i32
    return %c0_i32, %c0_i32_0 : i32, i32
  }
  func.func @transform_2(%arg0: i32, %arg1: i32) -> (i32, i32) {
    %c0_i32 = arith.constant 0 : i32
    %c0_i32_0 = arith.constant 0 : i32
    return %arg0, %c0_i32 : i32, i32
  }
  func.func @transform_3(%arg0: i32, %arg1: i32) -> (i32, i32) {
    %c0_i32 = arith.constant 0 : i32
    %c0_i32_0 = arith.constant 0 : i32
    return %arg0, %c0_i32 : i32, i32
  }
  func.func @transform_4(%arg0: i32, %arg1: i32) -> (i32, i32) {
    %c0_i32 = arith.constant 0 : i32
    %c0_i32_0 = arith.constant 0 : i32
    %c0_i32_1 = arith.constant 0 : i32
    return %c0_i32, %c0_i32_0 : i32, i32
  }
  func.func @transform_5(%arg0: i32, %arg1: i32) -> (i32, i32) {
    %c0_i32 = arith.constant 0 : i32
    %c0_i32_0 = arith.constant 0 : i32
    %c0_i32_1 = arith.constant 0 : i32
    return %c0_i32, %c0_i32_0 : i32, i32
  }
  func.func @transform_6(%arg0: i32, %arg1: i32) -> (i32, i32) {
    %c0_i32 = arith.constant 0 : i32
    %c0_i32_0 = arith.constant 0 : i32
    %c0_i32_1 = arith.constant 0 : i32
    return %c0_i32, %c0_i32_0 : i32, i32
  }
  func.func @transform_7(%arg0: i32, %arg1: i32) -> (i32, i32) {
    %c0_i32 = arith.constant 0 : i32
    %c0_i32_0 = arith.constant 0 : i32
    return %arg0, %c0_i32 : i32, i32
  }
}

</mosaic_0001>

<bundles_post_ra>
// kernel: tpu_custom_call.1
= control target key start
LH: loop header
LB: loop body
LE: loop exit
PB: predicated region body
PF: predicated region fallthrough
CT: control target
= control target key end

     0   :  { %s8475_s0 = inlined_call_operand.hbm [shape: s8[1536,2048], index: 0, kind: input, shape index: {}]   ;;  %s8476_s1 = inlined_call_operand.hbm [shape: bf16[2048,128], index: 1, kind: input, shape index: {}]   ;;  %s8477_s2 = inlined_call_operand.hbm [shape: bf16[1536,128], index: 2, kind: input, shape index: {}]   ;;  %s8478_s3 = inlined_call_operand.vmem [shape: f32[1536,1], index: 3, kind: input, shape index: {}]   ;;  %s8479_s4 = inlined_call_operand.hbm [shape: bf16[128,128], index: 4, kind: input, shape index: {}]   ;;  %s8480_s5 = inlined_call_operand.hbm [shape: bf16[128,128], index: 5, kind: input, shape index: {}]   ;;  %s8481_s6 = inlined_call_operand.hbm [shape: f32[1,128], index: 6, kind: input, shape index: {}]   ;;  %s8482_s7 = inlined_call_operand.hbm [shape: bf16[1536,128], index: 7, kind: output, shape index: {}]  }
   0x1   :  { %8498 = sst [smem:[#allocation61_spill]] %s8476_s1 }
   0x2   :  { %8499 = sst [smem:[#allocation62_spill]] %s8478_s3 }
   0x3   :  { %8500 = sst [smem:[#allocation63_spill]] %s8480_s5 }
   0x4   :  { %8501 = sst [smem:[#allocation64_spill]] %s8482_s7 }
   0x5   :  { %12 = vsyncpa [#allocation4], 0 }
   0x6   :  { %14 = vsyncpa [#allocation4 + $0x1], 0 }
   0x7   :  { %15 = vsyncpa [#allocation7], 0 }
   0x8   :  { %16 = vsyncpa [#allocation11], 0 }
   0x9   :  { %17 = vsyncpa [#allocation5], 0 }
   0xa   :  { %19 = vsyncpa [#allocation5 + $0x1], 0  ;;  %s7024_s24 = smov 0   ;;  %s7026_s25 = smov 0  }
   0xb   :  { %s7028_s26 = smov 0   ;;  %s7030_s27 = smov 0  }
   0xc   :  { %s7032_s28 = smov 0   ;;  %s7034_s29 = smov 0  }
   0xd   :  { %s7036_s30 = smov 0   ;;  %s7038_s8 = smov 0  }
   0xe   :  { %s7040_s9 = smov 0   ;;  %s7042_s10 = smov 0  }
   0xf   :  { %s7044_s11 = smov 0  }
  0x10 LB: > { %8502 = sst [smem:[#allocation20_spill]] %s6930_s24  ;;  %s7078_s12 = sadd.s32 4294967295, %s6970_s11   ;;  %s6970_s11 = sphi %s7044_s11, %s25_s11   ;;  %s6966_s10 = sphi %s7042_s10, %s8609_s10   ;;  %s6962_s9 = sphi %s7040_s9, %s8608_s9   ;;  %s6958_s8 = sphi %s7038_s8, %s8607_s8   ;;  %s6954_s30 = sphi %s7036_s30, %s8606_s30   ;;  %s6950_s29 = sphi %s7034_s29, %s8605_s29   ;;  %s6946_s28 = sphi %s7032_s28, %s8604_s28   ;;  %s6942_s27 = sphi %s7030_s27, %s8603_s27   ;;  %s6938_s26 = sphi %s7028_s26, %s8602_s26   ;;  %s6934_s25 = sphi %s7026_s25, %s8601_s25   ;;  %s6930_s24 = sphi %s7024_s24, %s8600_s24  }
  0x11   : > { %8503 = sst [smem:[#allocation21_spill]] %s6954_s30  ;;  %s5688_s13 = sadd.s32 4294967294, %s6970_s11  }
  0x12   : > { %8504 = sst [smem:[#allocation22_spill]] %s6958_s8  ;;  %p59_p0 = scmp.ne.s32.totalorder %s6946_s28, %s6942_s27 }
  0x13   : > { %p60_p1 = scmp.eq.s32.totalorder %s7078_s12, 0  ;;  %p106_p2 = scmp.ne.s32.totalorder %s6934_s25, %s6930_s24 }
  0x14   : > { %p219_p3 = scmp.eq.s32.totalorder %s7078_s12, 5  ;;  %p225_p5 = scmp.eq.s32.totalorder %s5688_s13, 5 }
  0x15   : > { %p7088_p4 = por %p60_p1, %p59_p0  ;;  %p7094_p6 = por %p106_p2, %p60_p1 }
  0x16   : > { %p5689_p7 = scmp.ge.s32.totalorder %s6970_s11, 1  ;;  %p7099_p8 = por %p225_p5, %p106_p2 }
  0x17   : > { %s8505_s14 = scalar_select %p7088_p4, 1, 0 }
  0x18   : > { %s8507_s15 = scalar_select %p7094_p6, 1, 0 }
  0x19   : > { %8506 = sst [smem:[#allocation23_spill]] %s8505_s14  ;;  %p232_p9 = scmp.lt.s32.totalorder %s6970_s11, 7 }
  0x1a   : > { %8508 = sst [smem:[#allocation24_spill]] %s8507_s15  ;;  %s6972_s21 = smov [#allocation6]  }
  0x1b   : > { %s8509_s16 = scalar_select %p7099_p8, 1, 0 }
  0x1c   : > { %s8511_s1 = sld [smem:[#allocation61_spill]]  ;;  %p7107_p10 = pnand %p5689_p7, %p232_p9 }
  0x1d   : > { %8510 = sst [smem:[#allocation25_spill]] %s8509_s16  ;;  %s245_s22 = sshll.u32 %s6972_s21, 4  ;;  %s246_s22 = int_to_ptr.vmem [resolvable:$true] %s245_s22 }
  0x1e   : > { %p6514_p11 = pneg %p7107_p10  ;;  %s8514_s5 = sld [smem:[#allocation63_spill]] }
  0x1f   : > { %s8486_s18 = smov 64   ;;  %s8484_s21 = smov 4  }
  0x20   : > { %p7115_p12 = pnand %p6514_p11, %p60_p1  ;;  %s34_s27 = sadd.s32 1, %s6962_s9 }
  0x21   : > { %s37_s13 = sadd.s32 1, %s6966_s10  ;;  %p35_p13 = scmp.ge.s32.totalorder %s34_s27, 2 }
  0x22   : > { %s243_s19 = sshll.u32 %s8511_s1, 4  ;;  %s6975_s1 = smov [#allocation10]   ;;  %s244_s19 = int_to_ptr.hbm [resolvable:$true] %s243_s19 }
  0x23   : > { %6517 = dma.hbm_to_vmem [thread:$0]  (!%p7115_p12), %s244_s19, 16384, %s246_s22, [#allocation7], %s8486_s18, %s8486_s18, %s8484_s21  }
  0x24   : > { %s271_s17 = sshll.u32 %s8514_s5, 4  ;;  %s273_s16 = sshll.u32 %s6975_s1, 4  ;;  %s272_s17 = int_to_ptr.hbm [resolvable:$true] %s271_s17  ;;  %s274_s16 = int_to_ptr.vmem [resolvable:$true] %s273_s16 }
  0x25   : > { %6523 = dma.hbm_to_vmem [thread:$0]  (!%p7115_p12), %s272_s17, 1024, %s274_s16, [#allocation11], %s8486_s18, %s8486_s18, %s8484_s21  }
  0x26   : > { %s46_s5 = sadd.s32 1, %s6950_s29  ;;  %p53_p0 = scmp.ne.s32.totalorder %s6950_s29, %s6946_s28 }
  0x27   : > { %p54_p2 = scmp.eq.s32.totalorder %s6970_s11, 0  ;;  %s8611_s27 = smov (%p35_p13, %s34_s27), 0 }
  0x28   : > { %8515 = sst [smem:[#allocation26_spill]] %s8611_s27  ;;  %s8613_s13 = smov (!%p35_p13, %s37_s13), %s6966_s10 }
  0x29   : > { %s42_s1 = ssub.s32 %s6962_s9, %s8611_s27  ;;  %p7145_p5 = por %p54_p2, %p53_p0 }
  0x2a   : > { %p39_p7 = scmp.ge.s32.totalorder %s8613_s13, 3  ;;  %p6542_p9 = scmp.lt.s32.totalorder %s6970_s11, 6 }
  0x2b   : > { %s299_s16 = sand.u32 1, %s6970_s11   ;;  %s301_s22 = sand.u32 1, %s6950_s29  }
  0x2c   : > { %s8615_s13 = smov (%p39_p7, %s8613_s13), 0  ;;  %s5695_s17 = sshll.u32 %s301_s22, 10 }
  0x2d   : > { %8517 = sst [smem:[#allocation27_spill]] %s8615_s13  ;;  %s7156_s21 = ssub.s32 %s6966_s10, %s8615_s13 }
  0x2e   : > { %s43_s18 = sor.u32 %s42_s1, %s7156_s21  ;;  %p91_p11 = scmp.eq.s32.totalorder %s7156_s21, 0 }
  0x2f   : > { %p44_p13 = scmp.eq.s32.totalorder %s43_s18, 0  ;;  %s5697_s27 = sshll.u32 %s6962_s9, 3 }
  0x30   : > { %s8497_s24 = sshll.u32 %s6966_s10, 8  ;;  %s303_s7 = scalar_lea.vmem [#allocation3], %s5695_s17 }
  0x31   : > { %s314_s30 = sshll.u32 %s303_s7, 4  ;;  %s309_s8 = sadd.s32 %s8497_s24, %s5697_s27  ;;  %s315_s30 = int_to_ptr.vmem [resolvable:$true] %s314_s30 }
  0x32   : > { %s7163_s3 = scalar_select %p44_p13, %s6950_s29, %s46_s5  }
  0x33   : > { %s5699_s15 = sshll.u32 %s309_s8, 3  ;;  %p6528_p0 = pnand %p6542_p9, %p7145_p5 }
  0x34   : > { %s311_s1 = scalar_lea.hbm %s8475_s0, %s5699_s15  ;;  %s7174_s18 = scalar_lea.sflag [#allocation4], %s299_s16 }
  0x35   : > { %s312_s14 = sshll.u32 %s311_s1, 4  ;;  %s6976_s5 = smov 2048   ;;  %s313_s14 = int_to_ptr.hbm [resolvable:$true] %s312_s14 }
  0x36   : > { %s6977_s7 = smov 1024   ;;  %s8518_s27 = smov 64  }
  0x37   : > { %6530 = dma.hbm_to_vmem [thread:$0]  (!%p6528_p0), %s313_s14, 16384, %s315_s30, %s7174_s18, %s6976_s5, %s6977_s7, %s8518_s27  }
  0x38   : > { %s257_s15 = sshll.u32 %s8479_s4, 4  ;;  %s6978_s13 = smov [#allocation9]   ;;  %s258_s15 = int_to_ptr.hbm [resolvable:$true] %s257_s15 }
  0x39   : > { %s259_s16 = sshll.u32 %s6978_s13, 4  ;;  %s286_s1 = sshll.u32 %s8481_s6, 4  ;;  %s260_s16 = int_to_ptr.vmem [resolvable:$true] %s259_s16  ;;  %s287_s1 = int_to_ptr.hbm [resolvable:$true] %s286_s1 }
  0x3a   : > { %s8519_s24 = smov 4   ;;  %s6979_s30 = smov [#allocation12]  }
  0x3b   : > { %6520 = dma.hbm_to_vmem [thread:$0]  (!%p7115_p12), %s258_s15, 1024, %s260_s16, [#allocation7], %s8518_s27, %s8518_s27, %s8519_s24  }
  0x3c   : > { %s288_s14 = sshll.u32 %s6979_s30, 4  ;;  %s93_s5 = sadd.s32 1, %s6938_s26  ;;  %s289_s14 = int_to_ptr.vmem [resolvable:$true] %s288_s14 }
  0x3d   : > { %6526 = dma.hbm_to_vmem [thread:$0]  (!%p7115_p12), %s287_s1, 16, %s289_s14, [#allocation11]  }
  0x3e   : > { %p100_p5 = scmp.ne.s32.totalorder %s6938_s26, %s6934_s25  ;;  %s326_s19 = sand.u32 1, %s6938_s26  }
  0x3f   : > { %s7197_s7 = scalar_select %p91_p11, %s6938_s26, %s93_s5  }
  0x40   : > { %p102_p7 = por %p100_p5, %p54_p2  ;;  %p7203_p13 = por %p219_p3, %p100_p5 }
  0x41   : > { %s8521_s15 = sshll.u32 %s6966_s10, 8  ;;  %s5700_s17 = sshll.u32 %s326_s19, 8 }
  0x42   : > { %s333_s23 = scalar_lea.hbm %s8477_s2, %s8521_s15  ;;  %s328_s1 = scalar_lea.vmem [#allocation8], %s5700_s17 }
  0x43   : > { %s334_s22 = sshll.u32 %s333_s23, 4  ;;  %s336_s21 = sshll.u32 %s328_s1, 4  ;;  %s335_s22 = int_to_ptr.hbm [resolvable:$true] %s334_s22  ;;  %s337_s21 = int_to_ptr.vmem [resolvable:$true] %s336_s21 }
  0x44   : > { %p6531_p12 = pnand %p6542_p9, %p102_p7  ;;  %357 = sbr.rel (%p7107_p10) target bundleno = 1907 (0x773), region = 48 }
  0x46   : > { %6533 = dma.hbm_to_vmem [thread:$0]  (!%p6531_p12), %s335_s22, 4096, %s337_s21, %s7174_s18, %s8518_s27, %s8518_s27, %s8519_s24  }
  0x49   : > { %s359_s14 = sand.u32 1, %s7078_s12   ;;  %s361_s5 = sand.u32 1, %s6946_s28  }
  0x4a   : > { %s5704_s19 = sshll.u32 %s361_s5, 10  ;;  %s360_s15 = scalar_lea.sflag [#allocation4], %s359_s14 }
  0x4b   : > { %s7223_s13 = scalar_lea.vmem [#allocation3], %s5704_s19 }
  0x4c   : > { %6905 = dma.done.wait (%p7088_p4), %s360_s15, 16384  }
  0x4d   : > { %6907 = vsyncadd (%p7088_p4), %s360_s15, 4294950912 }
  0x4e   : > { %6909 = dma.done.wait (%p60_p1), [#allocation7], 16384  }
  0x4f   : > { %6911 = vsyncadd (%p60_p1), [#allocation7], 4294950912  ;;  %s376_s20 = sand.u32 1, %s6934_s25  }
  0x50   : > { %s5706_s18 = sshll.u32 %s376_s20, 8 }
  0x51   : > { %s7236_s27 = scalar_lea.vmem [#allocation8], %s5706_s18 }
  0x52   : > { %6913 = dma.done.wait (%p7094_p6), %s360_s15, 4096  }
  0x53   : > { %6915 = vsyncadd (%p7094_p6), %s360_s15, 4294963200 }
  0x54   : > { %6917 = dma.done.wait (%p60_p1), [#allocation7], 1024  }
  0x55   : > { %6919 = vsyncadd (%p60_p1), [#allocation7], 4294966272 }
  0x56   : > { %6921 = dma.done.wait (%p60_p1), [#allocation11], 1040  }
  0x57   : > { %6923 = vsyncadd (%p60_p1), [#allocation11], 4294966256  ;;  %s8524_s16 = sld [smem:[#allocation22_spill]]  ;;  %s7256_s14 = scalar_lea.vmem [#allocation13], %s5706_s18 }
  0x58   : > { %s8525_s21 = sld [smem:[#allocation62_spill]] }
  0x59   : > { %s8526_s5 = sld [smem:[#allocation21_spill]] }
  0x5d   : > { %s5711_s23 = sshll.u32 %s8524_s16, 6 }
  0x5e   : > { %p439_p3 = scmp.lt.s32.totalorder %s5711_s23, 191 }
  0x5f   : > { %p5713_p4 = scmp.ne.s32.totalorder %s8526_s5, 0 }
  0x60   : > { %s8617_s23 = smov (!%p439_p3, %s5711_s23), 191 }
  0x61   : > { %s5712_s17 = sshll.u32 %s8617_s23, 3  ;;  %448 = sbr.rel (%p5713_p4) target bundleno = 167 (0xa7), region = 76 }
  0x62   : > { %s7254_s30 = scalar_lea.vmem %s8525_s21, %s5712_s17 }
  0x66   : > { %v6980_v0 = vmov 0.0  }
  0x67   : > { %449 = vst [vmem:[#allocation2 + $0xb0] sm:$0xff] %v6980_v0 }
  0x68   : > { %450 = vst [vmem:[#allocation2 + $0x1b0] sm:$0xff] %v6980_v0 }
  0x69   : > { %451 = vst [vmem:[#allocation2 + $0xd8] sm:$0xff] %v6980_v0 }
  0x6a   : > { %452 = vst [vmem:[#allocation2 + $0x18] sm:$0xff] %v6980_v0 }
  0x6b   : > { %453 = vst [vmem:[#allocation2 + $0x50] sm:$0xff] %v6980_v0 }
  0x6c   : > { %454 = vst [vmem:[#allocation2 + $0x168] sm:$0xff] %v6980_v0 }
  0x6d   : > { %455 = vst [vmem:[#allocation2 + $0x130] sm:$0xff] %v6980_v0 }
  0x6e   : > { %456 = vst [vmem:[#allocation2 + $0x48] sm:$0xff] %v6980_v0 }
  0x6f   : > { %457 = vst [vmem:[#allocation2 + $0x180] sm:$0xff] %v6980_v0 }
  0x70   : > { %458 = vst [vmem:[#allocation2 + $0x110] sm:$0xff] %v6980_v0 }
  0x71   : > { %459 = vst [vmem:[#allocation2 + $0x118] sm:$0xff] %v6980_v0 }
  0x72   : > { %460 = vst [vmem:[#allocation2 + $0x98] sm:$0xff] %v6980_v0 }
  0x73   : > { %461 = vst [vmem:[#allocation2 + $0x120] sm:$0xff] %v6980_v0 }
  0x74   : > { %462 = vst [vmem:[#allocation2 + $0x150] sm:$0xff] %v6980_v0 }
  0x75   : > { %463 = vst [vmem:[#allocation2 + $0x108] sm:$0xff] %v6980_v0 }
  0x76   : > { %464 = vst [vmem:[#allocation2 + $0x60] sm:$0xff] %v6980_v0 }
  0x77   : > { %465 = vst [vmem:[#allocation2 + $0xe0] sm:$0xff] %v6980_v0 }
  0x78   : > { %466 = vst [vmem:[#allocation2 + $0x188] sm:$0xff] %v6980_v0 }
  0x79   : > { %467 = vst [vmem:[#allocation2 + $0x138] sm:$0xff] %v6980_v0 }
  0x7a   : > { %468 = vst [vmem:[#allocation2 + $0x140] sm:$0xff] %v6980_v0 }
  0x7b   : > { %469 = vst [vmem:[#allocation2 + $0x80] sm:$0xff] %v6980_v0 }
  0x7c   : > { %470 = vst [vmem:[#allocation2 + $0x1a8] sm:$0xff] %v6980_v0 }
  0x7d   : > { %471 = vst [vmem:[#allocation2 + $0x1b8] sm:$0xff] %v6980_v0 }
  0x7e   : > { %472 = vst [vmem:[#allocation2 + $0x28] sm:$0xff] %v6980_v0 }
  0x7f   : > { %473 = vst [vmem:[#allocation2 + $0x1e8] sm:$0xff] %v6980_v0 }
  0x80   : > { %474 = vst [vmem:[#allocation2 + $0xf8] sm:$0xff] %v6980_v0 }
  0x81   : > { %475 = vst [vmem:[#allocation2 + $0x160] sm:$0xff] %v6980_v0 }
  0x82   : > { %476 = vst [vmem:[#allocation2 + $0x30] sm:$0xff] %v6980_v0 }
  0x83   : > { %477 = vst [vmem:[#allocation2 + $0x1e0] sm:$0xff] %v6980_v0 }
  0x84   : > { %478 = vst [vmem:[#allocation2] sm:$0xff] %v6980_v0 }
  0x85   : > { %479 = vst [vmem:[#allocation2 + $0xf0] sm:$0xff] %v6980_v0 }
  0x86   : > { %480 = vst [vmem:[#allocation2 + $0x8] sm:$0xff] %v6980_v0 }
  0x87   : > { %481 = vst [vmem:[#allocation2 + $0x148] sm:$0xff] %v6980_v0 }
  0x88   : > { %482 = vst [vmem:[#allocation2 + $0x1d0] sm:$0xff] %v6980_v0 }
  0x89   : > { %483 = vst [vmem:[#allocation2 + $0x100] sm:$0xff] %v6980_v0 }
  0x8a   : > { %484 = vst [vmem:[#allocation2 + $0xc8] sm:$0xff] %v6980_v0 }
  0x8b   : > { %485 = vst [vmem:[#allocation2 + $0x40] sm:$0xff] %v6980_v0 }
  0x8c   : > { %486 = vst [vmem:[#allocation2 + $0x1f8] sm:$0xff] %v6980_v0 }
  0x8d   : > { %487 = vst [vmem:[#allocation2 + $0x20] sm:$0xff] %v6980_v0 }
  0x8e   : > { %488 = vst [vmem:[#allocation2 + $0x128] sm:$0xff] %v6980_v0 }
  0x8f   : > { %489 = vst [vmem:[#allocation2 + $0x1a0] sm:$0xff] %v6980_v0 }
  0x90   : > { %490 = vst [vmem:[#allocation2 + $0x1f0] sm:$0xff] %v6980_v0 }
  0x91   : > { %491 = vst [vmem:[#allocation2 + $0xe8] sm:$0xff] %v6980_v0 }
  0x92   : > { %492 = vst [vmem:[#allocation2 + $0x78] sm:$0xff] %v6980_v0 }
  0x93   : > { %493 = vst [vmem:[#allocation2 + $0x70] sm:$0xff] %v6980_v0 }
  0x94   : > { %494 = vst [vmem:[#allocation2 + $0x90] sm:$0xff] %v6980_v0 }
  0x95   : > { %495 = vst [vmem:[#allocation2 + $0x1d8] sm:$0xff] %v6980_v0 }
  0x96   : > { %496 = vst [vmem:[#allocation2 + $0xd0] sm:$0xff] %v6980_v0 }
  0x97   : > { %497 = vst [vmem:[#allocation2 + $0xb8] sm:$0xff] %v6980_v0 }
  0x98   : > { %498 = vst [vmem:[#allocation2 + $0x88] sm:$0xff] %v6980_v0 }
  0x99   : > { %499 = vst [vmem:[#allocation2 + $0xa8] sm:$0xff] %v6980_v0 }
  0x9a   : > { %500 = vst [vmem:[#allocation2 + $0x1c8] sm:$0xff] %v6980_v0 }
  0x9b   : > { %501 = vst [vmem:[#allocation2 + $0x170] sm:$0xff] %v6980_v0 }
  0x9c   : > { %502 = vst [vmem:[#allocation2 + $0x178] sm:$0xff] %v6980_v0 }
  0x9d   : > { %503 = vst [vmem:[#allocation2 + $0x68] sm:$0xff] %v6980_v0 }
  0x9e   : > { %504 = vst [vmem:[#allocation2 + $0x190] sm:$0xff] %v6980_v0 }
  0x9f   : > { %505 = vst [vmem:[#allocation2 + $0x198] sm:$0xff] %v6980_v0 }
  0xa0   : > { %506 = vst [vmem:[#allocation2 + $0x38] sm:$0xff] %v6980_v0 }
  0xa1   : > { %507 = vst [vmem:[#allocation2 + $0xc0] sm:$0xff] %v6980_v0 }
  0xa2   : > { %508 = vst [vmem:[#allocation2 + $0x1c0] sm:$0xff] %v6980_v0 }
  0xa3   : > { %509 = vst [vmem:[#allocation2 + $0x158] sm:$0xff] %v6980_v0 }
  0xa4   : > { %510 = vst [vmem:[#allocation2 + $0x10] sm:$0xff] %v6980_v0 }
  0xa5   : > { %511 = vst [vmem:[#allocation2 + $0x58] sm:$0xff] %v6980_v0 }
  0xa6   : > { %512 = vst [vmem:[#allocation2 + $0xa0] sm:$0xff] %v6980_v0 }
  0xa7 PF: > { %s8527_s12 = sld [smem:[#allocation21_spill]]  ;;  %v7347_v21 = vld [vmem:[%s7223_s13] sm:$0xff]  ;;  %v7350_v22 = vld [vmem:[%s7223_s13 + $0x8] sm:$0xff]  ;;  %v7355_v25 = vld [vmem:[%s7223_s13 + $0x10] sm:$0xff] }
  0xa8   : > { %v7360_v28 = vld [vmem:[%s7223_s13 + $0x18] sm:$0xff]  ;;  %v774_v29 = vunpack.c.0.s8 %v7347_v21  ;;  %v782_v30 = vunpack.c.1.s8 %v7347_v21  ;;  %v775_v31 = vunpack.c.0.s8 %v7350_v22  ;;  %v783_v32 = vunpack.c.1.s8 %v7350_v22 }
  0xa9   : > { %v776_v35 = vunpack.c.0.s8 %v7355_v25  ;;  %v784_v36 = vunpack.c.1.s8 %v7355_v25  ;;  %v777_v37 = vunpack.c.0.s8 %v7360_v28  ;;  %v785_v38 = vunpack.c.1.s8 %v7360_v28 }
  0xaa   : > { %v1286_v41 = vcvt.s32.f32 %v774_v29  ;;  %v1294_v42 = vcvt.s32.f32 %v782_v30  ;;  %v1287_v43 = vcvt.s32.f32 %v775_v31  ;;  %v1295_v44 = vcvt.s32.f32 %v783_v32 }
  0xab   : > { %v1288_v47 = vcvt.s32.f32 %v776_v35  ;;  %v1296_v48 = vcvt.s32.f32 %v784_v36  ;;  %v1289_v49 = vcvt.s32.f32 %v777_v37  ;;  %v1297_v50 = vcvt.s32.f32 %v785_v38 }
  0xac   : > { %v1798_v55 = vpack.c.bf16 %v1294_v42, %v1286_v41  ;;  %v1799_v56 = vpack.c.bf16 %v1295_v44, %v1287_v43  ;;  %v790_v61 = vunpack.c.2.s8 %v7347_v21  ;;  %v798_v62 = vunpack.c.3.s8 %v7347_v21 }
  0xad   : > { %s5714_s19 = sshll.u32 %s8527_s12, 10  ;;  %v1800_v57 = vpack.c.bf16 %v1296_v48, %v1288_v47  ;;  %v1801_v58 = vpack.c.bf16 %v1297_v50, %v1289_v49  ;;  %v791_v63 = vunpack.c.2.s8 %v7350_v22  ;;  %v799_v0 = vunpack.c.3.s8 %v7350_v22  ;;  %p5972_p1 = scmp.ne.s32.totalorder %s8527_s12, 1 }
  0xae   : > { %s514_s15 = sshra.s32 %s5714_s19, 3 }
  0xaf   : > { %s5715_s24 = sshll.u32 %s514_s15, 2 }
  0xb0   : > { %s7324_s18 = scalar_lea.vmem [#allocation6], %s5715_s24 }
  0xb1   : > { %v6179_v1 = vld [vmem:[%s7324_s18 + $0x38] sm:$0xff]  ;;  %v6178_v5 = vld [vmem:[%s7324_s18 + $0x30] sm:$0xff]  ;;  %v6177_v9 = vld [vmem:[%s7324_s18 + $0x28] sm:$0xff] }
  0xb2   : > { %v6187_v2 = vld [vmem:[%s7324_s18 + $0x78] sm:$0xff]  ;;  %2502 = vmatpush.bf16.msra.mxu0 %v6179_v1  ;;  %v6186_v6 = vld [vmem:[%s7324_s18 + $0x70] sm:$0xff]  ;;  %v6185_v10 = vld [vmem:[%s7324_s18 + $0x68] sm:$0xff]  ;;  %v792_v1 = vunpack.c.2.s8 %v7355_v25 }
  0xb3   : > { %v6195_v3 = vld [vmem:[%s7324_s18 + $0xb8] sm:$0xff]  ;;  %2671 = vmatpush.bf16.msra.mxu1 %v6187_v2  ;;  %v6194_v7 = vld [vmem:[%s7324_s18 + $0xb0] sm:$0xff]  ;;  %v6193_v11 = vld [vmem:[%s7324_s18 + $0xa8] sm:$0xff]  ;;  %v800_v2 = vunpack.c.3.s8 %v7355_v25 }
  0xb4   : > { %v6203_v4 = vld [vmem:[%s7324_s18 + $0xf8] sm:$0xff]  ;;  %2840 = vmatpush.bf16.msra.mxu2 %v6195_v3  ;;  %v6202_v8 = vld [vmem:[%s7324_s18 + $0xf0] sm:$0xff]  ;;  %v6201_v12 = vld [vmem:[%s7324_s18 + $0xe8] sm:$0xff]  ;;  %v793_v3 = vunpack.c.2.s8 %v7360_v28 }
  0xb5   : > { %3009 = vmatpush.bf16.msra.mxu3 %v6203_v4  ;;  %v6176_v13 = vld [vmem:[%s7324_s18 + $0x20] sm:$0xff]  ;;  %v6175_v17 = vld [vmem:[%s7324_s18 + $0x18] sm:$0xff]  ;;  %v6174_v23 = vld [vmem:[%s7324_s18 + $0x10] sm:$0xff]  ;;  %v801_v4 = vunpack.c.3.s8 %v7360_v28 }
  0xb6   : > { %2503 = vmatpush.bf16.msra.mxu0 %v6178_v5  ;;  %v6184_v14 = vld [vmem:[%s7324_s18 + $0x60] sm:$0xff]  ;;  %v6183_v18 = vld [vmem:[%s7324_s18 + $0x58] sm:$0xff]  ;;  %v6182_v24 = vld [vmem:[%s7324_s18 + $0x50] sm:$0xff]  ;;  %v1302_v5 = vcvt.s32.f32 %v790_v61 }
  0xb7   : > { %2672 = vmatpush.bf16.msra.mxu1 %v6186_v6  ;;  %v6192_v15 = vld [vmem:[%s7324_s18 + $0xa0] sm:$0xff]  ;;  %v6191_v19 = vld [vmem:[%s7324_s18 + $0x98] sm:$0xff]  ;;  %v6190_v26 = vld [vmem:[%s7324_s18 + $0x90] sm:$0xff]  ;;  %v1310_v6 = vcvt.s32.f32 %v798_v62 }
  0xb8   : > { %2841 = vmatpush.bf16.msra.mxu2 %v6194_v7  ;;  %v6200_v16 = vld [vmem:[%s7324_s18 + $0xe0] sm:$0xff]  ;;  %v6199_v20 = vld [vmem:[%s7324_s18 + $0xd8] sm:$0xff]  ;;  %v6198_v27 = vld [vmem:[%s7324_s18 + $0xd0] sm:$0xff]  ;;  %v1303_v7 = vcvt.s32.f32 %v791_v63 }
  0xb9   : > { %3010 = vmatpush.bf16.msra.mxu3 %v6202_v8  ;;  %v6173_v33 = vld [vmem:[%s7324_s18 + $0x8] sm:$0xff]  ;;  %v6172_v45 = vld [vmem:[%s7324_s18] sm:$0xff]  ;;  %v6227_v53 = vld [vmem:[%s7324_s18 + $0x1b8] sm:$0xff]  ;;  %v1311_v8 = vcvt.s32.f32 %v799_v0 }
  0xba   : > { %2504 = vmatpush.bf16.msra.mxu0 %v6177_v9  ;;  %v6181_v34 = vld [vmem:[%s7324_s18 + $0x48] sm:$0xff]  ;;  %v6180_v46 = vld [vmem:[%s7324_s18 + $0x40] sm:$0xff]  ;;  %v6211_v54 = vld [vmem:[%s7324_s18 + $0x138] sm:$0xff]  ;;  %v1304_v9 = vcvt.s32.f32 %v792_v1 }
  0xbb   : > { %2673 = vmatpush.bf16.msra.mxu1 %v6185_v10  ;;  %v6189_v39 = vld [vmem:[%s7324_s18 + $0x88] sm:$0xff]  ;;  %v6188_v51 = vld [vmem:[%s7324_s18 + $0x80] sm:$0xff]  ;;  %v6235_v59 = vld [vmem:[%s7324_s18 + $0x1f8] sm:$0xff]  ;;  %v1312_v10 = vcvt.s32.f32 %v800_v2 }
  0xbc   : > { %2842 = vmatpush.bf16.msra.mxu2 %v6193_v11  ;;  %v6197_v40 = vld [vmem:[%s7324_s18 + $0xc8] sm:$0xff]  ;;  %v6196_v52 = vld [vmem:[%s7324_s18 + $0xc0] sm:$0xff]  ;;  %v6219_v60 = vld [vmem:[%s7324_s18 + $0x178] sm:$0xff]  ;;  %v1305_v11 = vcvt.s32.f32 %v793_v3 }
  0xbd   : > { %3011 = vmatpush.bf16.msra.mxu3 %v6201_v12  ;;  %v1313_v12 = vcvt.s32.f32 %v801_v4  ;;  %v6226_v41 = vld [vmem:[%s7324_s18 + $0x1b0] sm:$0xff]  ;;  %v662_v1 = vld [vmem:[%s7223_s13 + $0x80] sm:$0xff]  ;;  %v663_v2 = vld [vmem:[%s7223_s13 + $0x88] sm:$0xff] }
  0xbe   : > { %2505 = vmatpush.bf16.msra.mxu0 %v6176_v13  ;;  %v1806_v13 = vpack.c.bf16 %v1310_v6, %v1302_v5  ;;  %v6210_v42 = vld [vmem:[%s7324_s18 + $0x130] sm:$0xff]  ;;  %v665_v4 = vld [vmem:[%s7223_s13 + $0x98] sm:$0xff]  ;;  %v838_v5 = vunpack.c.0.s8 %v662_v1  ;;  %v846_v6 = vunpack.c.1.s8 %v662_v1 }
  0xbf   : > { %2674 = vmatpush.bf16.msra.mxu1 %v6184_v14  ;;  %v1807_v14 = vpack.c.bf16 %v1311_v8, %v1303_v7  ;;  %v6234_v43 = vld [vmem:[%s7324_s18 + $0x1f0] sm:$0xff]  ;;  %v839_v7 = vunpack.c.0.s8 %v663_v2  ;;  %v847_v8 = vunpack.c.1.s8 %v663_v2 }
  0xc0   : > { %2843 = vmatpush.bf16.msra.mxu2 %v6192_v15  ;;  %v1808_v15 = vpack.c.bf16 %v1312_v10, %v1304_v9  ;;  %v6218_v44 = vld [vmem:[%s7324_s18 + $0x170] sm:$0xff] }
  0xc1   : > { %3012 = vmatpush.bf16.msra.mxu3 %v6200_v16  ;;  %v1809_v16 = vpack.c.bf16 %v1313_v12, %v1305_v11  ;;  %v664_v3 = vld [vmem:[%s7223_s13 + $0x90] sm:$0xff]  ;;  %v841_v11 = vunpack.c.0.s8 %v665_v4  ;;  %v849_v12 = vunpack.c.1.s8 %v665_v4 }
  0xc2   : > { %2506 = vmatpush.bf16.msra.mxu0 %v6175_v17  ;;  %v654_v17 = vld [vmem:[%s7223_s13 + $0x40] sm:$0xff]  ;;  %v840_v9 = vunpack.c.0.s8 %v664_v3  ;;  %v848_v10 = vunpack.c.1.s8 %v664_v3 }
  0xc3   : > { %2675 = vmatpush.bf16.msra.mxu1 %v6183_v18  ;;  %v655_v18 = vld [vmem:[%s7223_s13 + $0x48] sm:$0xff]  ;;  %v806_v21 = vunpack.c.0.s8 %v654_v17  ;;  %v814_v22 = vunpack.c.1.s8 %v654_v17 }
  0xc4   : > { %2844 = vmatpush.bf16.msra.mxu2 %v6191_v19  ;;  %v656_v19 = vld [vmem:[%s7223_s13 + $0x50] sm:$0xff]  ;;  %v823_v47 = vunpack.c.2.s8 %v655_v18  ;;  %v831_v48 = vunpack.c.3.s8 %v655_v18 }
  0xc5   : > { %3013 = vmatpush.bf16.msra.mxu3 %v6199_v20  ;;  %v657_v20 = vld [vmem:[%s7223_s13 + $0x58] sm:$0xff]  ;;  %v808_v25 = vunpack.c.0.s8 %v656_v19  ;;  %v1318_v29 = vcvt.s32.f32 %v806_v21  ;;  %v1326_v30 = vcvt.s32.f32 %v814_v22  ;;  %v824_v49 = vunpack.c.2.s8 %v656_v19 }
  0xc6   : > { %2507 = vmatpush.bf16.msra.mxu0 %v6174_v23  ;;  %v807_v23 = vunpack.c.0.s8 %v655_v18  ;;  %v817_v28 = vunpack.c.1.s8 %v657_v20  ;;  %v832_v50 = vunpack.c.3.s8 %v656_v19 }
  0xc7   : > { %2676 = vmatpush.bf16.msra.mxu1 %v6182_v24  ;;  %v815_v24 = vunpack.c.1.s8 %v655_v18  ;;  %v1814_v37 = vpack.c.bf16 %v1326_v30, %v1318_v29  ;;  %v1360_v18 = vcvt.s32.f32 %v848_v10  ;;  %v856_v29 = vunpack.c.2.s8 %v664_v3 }
  0xc8   : > { %2845 = vmatpush.bf16.msra.mxu2 %v6190_v26  ;;  %v816_v26 = vunpack.c.1.s8 %v656_v19  ;;  %v1319_v31 = vcvt.s32.f32 %v807_v23  ;;  %v1329_v36 = vcvt.s32.f32 %v817_v28  ;;  %v1353_v19 = vcvt.s32.f32 %v841_v11 }
  0xc9   : > { %3014 = vmatpush.bf16.msra.mxu3 %v6198_v27  ;;  %v809_v27 = vunpack.c.0.s8 %v657_v20  ;;  %v1327_v32 = vcvt.s32.f32 %v815_v24  ;;  %v863_v28 = vunpack.c.3.s8 %v663_v2  ;;  %v864_v30 = vunpack.c.3.s8 %v664_v3 }
  0xca   : > { %2508 = vmatpush.bf16.msra.mxu0 %v6173_v33  ;;  %v1320_v33 = vcvt.s32.f32 %v808_v25  ;;  %v854_v25 = vunpack.c.2.s8 %v662_v1 }
  0xcb   : > { %2677 = vmatpush.bf16.msra.mxu1 %v6181_v34  ;;  %v1328_v34 = vcvt.s32.f32 %v816_v26  ;;  %v1321_v35 = vcvt.s32.f32 %v809_v27  ;;  %v1815_v38 = vpack.c.bf16 %v1327_v32, %v1319_v31  ;;  %v862_v26 = vunpack.c.3.s8 %v662_v1 }
  0xcc   : > { %2846 = vmatpush.bf16.msra.mxu2 %v6189_v39  ;;  %v855_v27 = vunpack.c.2.s8 %v663_v2  ;;  %v857_v31 = vunpack.c.2.s8 %v665_v4  ;;  %v865_v32 = vunpack.c.3.s8 %v665_v4 }
  0xcd   : > { %3015 = vmatpush.bf16.msra.mxu3 %v6197_v40  ;;  %v1816_v39 = vpack.c.bf16 %v1328_v34, %v1320_v33  ;;  %v1817_v40 = vpack.c.bf16 %v1329_v36, %v1321_v35  ;;  %v1366_v33 = vcvt.s32.f32 %v854_v25  ;;  %v1374_v34 = vcvt.s32.f32 %v862_v26 }
  0xce   : > { %2509 = vmatpush.bf16.msra.mxu0 %v6172_v45  ;;  %v822_v45 = vunpack.c.2.s8 %v654_v17  ;;  %v1367_v35 = vcvt.s32.f32 %v855_v27  ;;  %v1375_v36 = vcvt.s32.f32 %v863_v28 }
  0xcf   : > { %2678 = vmatpush.bf16.msra.mxu1 %v6180_v46  ;;  %v830_v46 = vunpack.c.3.s8 %v654_v17  ;;  %v1352_v17 = vcvt.s32.f32 %v840_v9 }
  0xd0   : > { %2847 = vmatpush.bf16.msra.mxu2 %v6188_v51  ;;  %v825_v51 = vunpack.c.2.s8 %v657_v20 }
  0xd1   : > { %3016 = vmatpush.bf16.msra.mxu3 %v6196_v52  ;;  %2510 = vmatmul.bf16.vlgmr.msra.gmra.mxu0 %v1798_v55  ;;  %v833_v52 = vunpack.c.3.s8 %v657_v20  ;;  %v1335_v55 = vcvt.s32.f32 %v823_v47  ;;  %v1361_v20 = vcvt.s32.f32 %v849_v12  ;;  %v1832_v23 = vpack.c.bf16 %v1360_v18, %v1352_v17  ;;  %v672_v47 = vld [vmem:[%s7223_s13 + $0xd0] sm:$0xff] }
  0xd2   : > { %3178 = vmatpush.bf16.msrb.mxu0 %v6211_v54  ;;  %2679 = vmatmul.bf16.vlgmr.msra.gmra.mxu1 %v1799_v56  ;;  %v1342_v54 = vcvt.s32.f32 %v830_v46  ;;  %v1343_v56 = vcvt.s32.f32 %v831_v48  ;;  %v671_v46 = vld [vmem:[%s7223_s13 + $0xc8] sm:$0xff]  ;;  %v673_v48 = vld [vmem:[%s7223_s13 + $0xd8] sm:$0xff]  ;;  %v888_v12 = vunpack.c.2.s8 %v672_v47 }
  0xd3   : > { %2848 = vmatmul.bf16.vlgmr.msra.gmra.mxu2 %v1800_v57  ;;  %3347 = vmatpush.bf16.msrb.mxu1 %v6219_v60  ;;  %v1336_v57 = vcvt.s32.f32 %v824_v49  ;;  %v1345_v60 = vcvt.s32.f32 %v833_v52  ;;  %v1833_v24 = vpack.c.bf16 %v1361_v20, %v1353_v19  ;;  %v879_v52 = vunpack.c.1.s8 %v671_v46 }
  0xd4   : > { %3516 = vmatpush.bf16.msrb.mxu2 %v6227_v53  ;;  %3017 = vmatmul.bf16.vlgmr.msra.gmra.mxu3 %v1801_v58  ;;  %v1334_v53 = vcvt.s32.f32 %v822_v45  ;;  %v1344_v58 = vcvt.s32.f32 %v832_v50  ;;  %v1823_v62 = vpack.c.bf16 %v1343_v56, %v1335_v55  ;;  %v670_v45 = vld [vmem:[%s7223_s13 + $0xc0] sm:$0xff]  ;;  %v873_v55 = vunpack.c.0.s8 %v673_v48 }
  0xd5   : > { %3685 = vmatpush.bf16.msrb.mxu3 %v6235_v59  ;;  %v1337_v59 = vcvt.s32.f32 %v825_v51  ;;  %v870_v49 = vunpack.c.0.s8 %v670_v45  ;;  %v878_v50 = vunpack.c.1.s8 %v670_v45  ;;  %v871_v51 = vunpack.c.0.s8 %v671_v46 }
  0xd6   : > { %3179 = vmatpush.bf16.msrb.mxu0 %v6210_v42  ;;  %v1822_v61 = vpack.c.bf16 %v1342_v54, %v1334_v53  ;;  %v1824_v63 = vpack.c.bf16 %v1344_v58, %v1336_v57  ;;  %v1839_v42 = vpack.c.bf16 %v1375_v36, %v1367_v35  ;;  %v872_v53 = vunpack.c.0.s8 %v672_v47 }
  0xd7   : > { %3348 = vmatpush.bf16.msrb.mxu1 %v6218_v44  ;;  %v1825_v0 = vpack.c.bf16 %v1345_v60, %v1337_v59  ;;  %v880_v54 = vunpack.c.1.s8 %v672_v47  ;;  %v881_v56 = vunpack.c.1.s8 %v673_v48  ;;  %v1382_v57 = vcvt.s32.f32 %v870_v49 }
  0xd8   : > { %3517 = vmatpush.bf16.msrb.mxu2 %v6226_v41  ;;  %v1838_v41 = vpack.c.bf16 %v1374_v34, %v1366_v33  ;;  %v1390_v58 = vcvt.s32.f32 %v878_v50  ;;  %v1383_v59 = vcvt.s32.f32 %v871_v51  ;;  %v1391_v60 = vcvt.s32.f32 %v879_v52 }
  0xd9   : > { %3686 = vmatpush.bf16.msrb.mxu3 %v6234_v43  ;;  %v894_v9 = vunpack.c.3.s8 %v670_v45  ;;  %v887_v10 = vunpack.c.2.s8 %v671_v46  ;;  %v895_v11 = vunpack.c.3.s8 %v671_v46 }
  0xda   : > { %v1846_v1 = vpack.c.bf16 %v1390_v58, %v1382_v57  ;;  %v1847_v2 = vpack.c.bf16 %v1391_v60, %v1383_v59 }
  0xdb   : > { %v1406_v18 = vcvt.s32.f32 %v894_v9  ;;  %v1399_v19 = vcvt.s32.f32 %v887_v10  ;;  %v1407_v20 = vcvt.s32.f32 %v895_v11 }
  0xdd   : > { %v1855_v26 = vpack.c.bf16 %v1407_v20, %v1399_v19 }
  0xe1   : > { %2515 = vmatmul.bf16.gmra.mxu0 %v1806_v13  ;;  %v1350_v13 = vcvt.s32.f32 %v838_v5  ;;  %v6225_v5 = vld [vmem:[%s7324_s18 + $0x1a8] sm:$0xff] }
  0xe2   : > { %2684 = vmatmul.bf16.gmra.mxu1 %v1807_v14  ;;  %v1358_v14 = vcvt.s32.f32 %v846_v6  ;;  %v6209_v6 = vld [vmem:[%s7324_s18 + $0x128] sm:$0xff]  ;;  %3518 = vmatpush.bf16.msrb.mxu2 %v6225_v5 }
  0xe3   : > { %2853 = vmatmul.bf16.gmra.mxu2 %v1808_v15  ;;  %v1351_v15 = vcvt.s32.f32 %v839_v7  ;;  %v6233_v7 = vld [vmem:[%s7324_s18 + $0x1e8] sm:$0xff]  ;;  %3180 = vmatpush.bf16.msrb.mxu0 %v6209_v6 }
  0xe4   : > { %3022 = vmatmul.bf16.gmra.mxu3 %v1809_v16  ;;  %v1359_v16 = vcvt.s32.f32 %v847_v8  ;;  %v1830_v21 = vpack.c.bf16 %v1358_v14, %v1350_v13  ;;  %v886_v8 = vunpack.c.2.s8 %v670_v45  ;;  %v896_v13 = vunpack.c.3.s8 %v672_v47 }
  0xe5   : > { %3687 = vmatpush.bf16.msrb.mxu3 %v6233_v7  ;;  %v889_v14 = vunpack.c.2.s8 %v673_v48 }
  0xe6   : > { %v1831_v22 = vpack.c.bf16 %v1359_v16, %v1351_v15  ;;  %v897_v15 = vunpack.c.3.s8 %v673_v48  ;;  %v6217_v16 = vld [vmem:[%s7324_s18 + $0x168] sm:$0xff]  ;;  %v1398_v17 = vcvt.s32.f32 %v886_v8 }
  0xe7   : > { %3349 = vmatpush.bf16.msrb.mxu1 %v6217_v16 }
  0xe8   : > { %v1854_v25 = vpack.c.bf16 %v1406_v18, %v1398_v17 }
  0xf1   : > { %2520 = vmatmul.bf16.gmra.mxu0 %v1814_v37  ;;  %v1368_v37 = vcvt.s32.f32 %v856_v29  ;;  %v678_v29 = vld [vmem:[%s7223_s13 + $0x100] sm:$0xff] }
  0xf2   : > { %2689 = vmatmul.bf16.gmra.mxu1 %v1815_v38  ;;  %v1376_v38 = vcvt.s32.f32 %v864_v30  ;;  %v679_v30 = vld [vmem:[%s7223_s13 + $0x108] sm:$0xff]  ;;  %v902_v33 = vunpack.c.0.s8 %v678_v29  ;;  %v910_v34 = vunpack.c.1.s8 %v678_v29  ;;  %v926_v59 = vunpack.c.3.s8 %v678_v29 }
  0xf3   : > { %2858 = vmatmul.bf16.gmra.mxu2 %v1816_v39  ;;  %v1369_v39 = vcvt.s32.f32 %v857_v31  ;;  %v680_v31 = vld [vmem:[%s7223_s13 + $0x110] sm:$0xff]  ;;  %v903_v35 = vunpack.c.0.s8 %v679_v30  ;;  %v911_v36 = vunpack.c.1.s8 %v679_v30  ;;  %v919_v60 = vunpack.c.2.s8 %v679_v30 }
  0xf4   : > { %3027 = vmatmul.bf16.gmra.mxu3 %v1817_v40  ;;  %v1377_v40 = vcvt.s32.f32 %v865_v32  ;;  %v1840_v43 = vpack.c.bf16 %v1376_v38, %v1368_v37  ;;  %v681_v32 = vld [vmem:[%s7223_s13 + $0x118] sm:$0xff]  ;;  %v904_v37 = vunpack.c.0.s8 %v680_v31  ;;  %v912_v38 = vunpack.c.1.s8 %v680_v31 }
  0xf5   : > { %v1438_v8 = vcvt.s32.f32 %v926_v59  ;;  %v1431_v9 = vcvt.s32.f32 %v919_v60 }
  0xf6   : > { %v1841_v44 = vpack.c.bf16 %v1377_v40, %v1369_v39  ;;  %v905_v39 = vunpack.c.0.s8 %v681_v32  ;;  %v913_v40 = vunpack.c.1.s8 %v681_v32  ;;  %v1416_v45 = vcvt.s32.f32 %v904_v37 }
  0xf7   : > { %v1424_v46 = vcvt.s32.f32 %v912_v38 }
  0xf8   : > { %v1417_v47 = vcvt.s32.f32 %v905_v39  ;;  %v1425_v48 = vcvt.s32.f32 %v913_v40 }
 0x101   : > { %2525 = vmatmul.bf16.gmra.mxu0 %v1822_v61  ;;  %v1384_v61 = vcvt.s32.f32 %v872_v53  ;;  %v1864_v53 = vpack.c.bf16 %v1424_v46, %v1416_v45 }
 0x102   : > { %2694 = vmatmul.bf16.gmra.mxu1 %v1823_v62  ;;  %v1392_v62 = vcvt.s32.f32 %v880_v54  ;;  %v1865_v54 = vpack.c.bf16 %v1425_v48, %v1417_v47 }
 0x103   : > { %2863 = vmatmul.bf16.gmra.mxu2 %v1824_v63  ;;  %v1385_v63 = vcvt.s32.f32 %v873_v55 }
 0x104   : > { %3032 = vmatmul.bf16.gmra.mxu3 %v1825_v0  ;;  %v1393_v0 = vcvt.s32.f32 %v881_v56  ;;  %v1848_v3 = vpack.c.bf16 %v1392_v62, %v1384_v61  ;;  %v918_v56 = vunpack.c.2.s8 %v678_v29  ;;  %v927_v61 = vunpack.c.3.s8 %v679_v30  ;;  %v7428_v29 = vld [vmem:[%s7223_s13 + $0x158] sm:$0xff] }
 0x105   : > { %v920_v62 = vunpack.c.2.s8 %v680_v31 }
 0x106   : > { %v1849_v4 = vpack.c.bf16 %v1393_v0, %v1385_v63  ;;  %v1430_v7 = vcvt.s32.f32 %v918_v56  ;;  %v1439_v10 = vcvt.s32.f32 %v927_v61 }
 0x107   : > { %v1432_v11 = vcvt.s32.f32 %v920_v62 }
 0x108   : > { %v1870_v17 = vpack.c.bf16 %v1438_v8, %v1430_v7  ;;  %v1871_v18 = vpack.c.bf16 %v1439_v10, %v1431_v9 }
 0x111   : > { %2530 = vmatmul.bf16.gmra.mxu0 %v1830_v21  ;;  %v1400_v21 = vcvt.s32.f32 %v888_v12 }
 0x112   : > { %2699 = vmatmul.bf16.gmra.mxu1 %v1831_v22  ;;  %v1408_v22 = vcvt.s32.f32 %v896_v13 }
 0x113   : > { %2868 = vmatmul.bf16.gmra.mxu2 %v1832_v23  ;;  %v1401_v23 = vcvt.s32.f32 %v889_v14 }
 0x114   : > { %3037 = vmatmul.bf16.gmra.mxu3 %v1833_v24  ;;  %v1409_v24 = vcvt.s32.f32 %v897_v15  ;;  %v1856_v27 = vpack.c.bf16 %v1408_v22, %v1400_v21 }
 0x116   : > { %v1857_v28 = vpack.c.bf16 %v1409_v24, %v1401_v23 }
 0x121   : > { %2535 = vmatmul.bf16.gmra.mxu0 %v1838_v41  ;;  %v1414_v41 = vcvt.s32.f32 %v902_v33 }
 0x122   : > { %2704 = vmatmul.bf16.gmra.mxu1 %v1839_v42  ;;  %v1422_v42 = vcvt.s32.f32 %v910_v34 }
 0x123   : > { %2873 = vmatmul.bf16.gmra.mxu2 %v1840_v43  ;;  %v1415_v43 = vcvt.s32.f32 %v903_v35 }
 0x124   : > { %3042 = vmatmul.bf16.gmra.mxu3 %v1841_v44  ;;  %v1423_v44 = vcvt.s32.f32 %v911_v36  ;;  %v1862_v49 = vpack.c.bf16 %v1422_v42, %v1414_v41  ;;  %v937_v41 = vunpack.c.0.s8 %v7428_v29  ;;  %v945_v42 = vunpack.c.1.s8 %v7428_v29 }
 0x126   : > { %v1863_v50 = vpack.c.bf16 %v1423_v44, %v1415_v43 }
 0x131   : > { %2540 = vmatmul.bf16.gmra.mxu0 %v1846_v1 }
 0x132   : > { %2709 = vmatmul.bf16.gmra.mxu1 %v1847_v2  ;;  %v928_v2 = vunpack.c.3.s8 %v680_v31 }
 0x133   : > { %2878 = vmatmul.bf16.gmra.mxu2 %v1848_v3  ;;  %v921_v3 = vunpack.c.2.s8 %v681_v32 }
 0x134   : > { %3047 = vmatmul.bf16.gmra.mxu3 %v1849_v4  ;;  %v929_v4 = vunpack.c.3.s8 %v681_v32  ;;  %v1440_v12 = vcvt.s32.f32 %v928_v2  ;;  %v6232_v2 = vld [vmem:[%s7324_s18 + $0x1e0] sm:$0xff] }
 0x135   : > { %v1433_v13 = vcvt.s32.f32 %v921_v3  ;;  %3688 = vmatpush.bf16.msrb.mxu3 %v6232_v2 }
 0x136   : > { %v1441_v14 = vcvt.s32.f32 %v929_v4  ;;  %v1872_v22 = vpack.c.bf16 %v1440_v12, %v1432_v11 }
 0x138   : > { %v1873_v23 = vpack.c.bf16 %v1441_v14, %v1433_v13 }
 0x141   : > { %2545 = vmatmul.bf16.gmra.mxu0 %v1854_v25 }
 0x142   : > { %2714 = vmatmul.bf16.gmra.mxu1 %v1855_v26  ;;  %v7419_v26 = vld [vmem:[%s7223_s13 + $0x140] sm:$0xff] }
 0x143   : > { %2883 = vmatmul.bf16.gmra.mxu2 %v1856_v27  ;;  %v7422_v27 = vld [vmem:[%s7223_s13 + $0x148] sm:$0xff]  ;;  %v934_v30 = vunpack.c.0.s8 %v7419_v26  ;;  %v942_v33 = vunpack.c.1.s8 %v7419_v26  ;;  %v950_v3 = vunpack.c.2.s8 %v7419_v26  ;;  %v958_v7 = vunpack.c.3.s8 %v7419_v26 }
 0x144   : > { %3052 = vmatmul.bf16.gmra.mxu3 %v1857_v28  ;;  %v7425_v28 = vld [vmem:[%s7223_s13 + $0x150] sm:$0xff]  ;;  %v935_v34 = vunpack.c.0.s8 %v7422_v27  ;;  %v943_v35 = vunpack.c.1.s8 %v7422_v27  ;;  %v951_v8 = vunpack.c.2.s8 %v7422_v27  ;;  %v959_v9 = vunpack.c.3.s8 %v7422_v27 }
 0x145   : > { %v936_v36 = vunpack.c.0.s8 %v7425_v28  ;;  %v944_v40 = vunpack.c.1.s8 %v7425_v28  ;;  %v1446_v45 = vcvt.s32.f32 %v934_v30  ;;  %v1454_v46 = vcvt.s32.f32 %v942_v33 }
 0x146   : > { %v1447_v47 = vcvt.s32.f32 %v935_v34  ;;  %v1455_v48 = vcvt.s32.f32 %v943_v35  ;;  %v952_v10 = vunpack.c.2.s8 %v7425_v28  ;;  %v960_v14 = vunpack.c.3.s8 %v7425_v28 }
 0x148   : > { %v1879_v56 = vpack.c.bf16 %v1455_v48, %v1447_v47  ;;  %v1472_v26 = vcvt.s32.f32 %v960_v14 }
 0x14e   : > { %v2511_v51 = vpop.f32.mrf.mxu0 }
 0x14f   : > { %v2680_v52 = vpop.f32.mrf.mxu1 }
 0x150   : > { %v2681_v55 = vadd.f32 %v2680_v52, %v2511_v51  ;;  %v1449_v51 = vcvt.s32.f32 %v937_v41  ;;  %v1457_v52 = vcvt.s32.f32 %v945_v42  ;;  %v695_v41 = vld [vmem:[%s7223_s13 + $0x188] sm:$0xff]  ;;  %v696_v42 = vld [vmem:[%s7223_s13 + $0x190] sm:$0xff] }
 0x151   : > { %2550 = vmatmul.bf16.gmra.mxu0 %v1862_v49  ;;  %v1448_v49 = vcvt.s32.f32 %v936_v36 }
 0x152   : > { %2719 = vmatmul.bf16.gmra.mxu1 %v1863_v50  ;;  %v1456_v50 = vcvt.s32.f32 %v944_v40  ;;  %v1881_v61 = vpack.c.bf16 %v1457_v52, %v1449_v51  ;;  %v694_v40 = vld [vmem:[%s7223_s13 + $0x180] sm:$0xff]  ;;  %v968_v51 = vunpack.c.0.s8 %v696_v42 }
 0x153   : > { %2888 = vmatmul.bf16.gmra.mxu2 %v1864_v53  ;;  %v974_v48 = vunpack.c.1.s8 %v694_v40 }
 0x154   : > { %3057 = vmatmul.bf16.gmra.mxu3 %v1865_v54  ;;  %v1880_v60 = vpack.c.bf16 %v1456_v50, %v1448_v49  ;;  %v967_v49 = vunpack.c.0.s8 %v695_v41  ;;  %v975_v50 = vunpack.c.1.s8 %v695_v41 }
 0x156   : > { %v2849_v57 = vpop.f32.mrf.mxu2  ;;  %v2513_v0 = vpop.f32.mrf.mxu0 }
 0x157   : > { %v3018_v58 = vpop.f32.mrf.mxu3  ;;  %v2850_v63 = vadd.f32 %v2849_v57, %v2681_v55  ;;  %v2682_v1 = vpop.f32.mrf.mxu1  ;;  %v1878_v55 = vpack.c.bf16 %v1454_v46, %v1446_v45  ;;  %v966_v45 = vunpack.c.0.s8 %v694_v40 }
 0x158   : > { %v2683_v5 = vadd.f32 %v2682_v1, %v2513_v0  ;;  %v6224_v0 = vld [vmem:[%s7324_s18 + $0x1a0] sm:$0xff] }
 0x159   : > { %v7414_v6 = vadd.f32 %v3018_v58, %v2850_v63  ;;  %v6208_v1 = vld [vmem:[%s7324_s18 + $0x120] sm:$0xff]  ;;  %3519 = vmatpush.bf16.msrb.mxu2 %v6224_v0  ;;  %v1487_v0 = vcvt.s32.f32 %v975_v50 }
 0x15a   : > { %3181 = vmatpush.bf16.msrb.mxu0 %v6208_v1  ;;  %v1480_v1 = vcvt.s32.f32 %v968_v51 }
 0x15e   : > { %v2851_v15 = vpop.f32.mrf.mxu2  ;;  %v2516_v20 = vpop.f32.mrf.mxu0 }
 0x15f   : > { %v3020_v16 = vpop.f32.mrf.mxu3  ;;  %v2852_v19 = vadd.f32 %v2851_v15, %v2683_v5  ;;  %v2685_v21 = vpop.f32.mrf.mxu1  ;;  %v953_v15 = vunpack.c.2.s8 %v7428_v29 }
 0x160   : > { %v2686_v24 = vadd.f32 %v2685_v21, %v2516_v20  ;;  %v1462_v20 = vcvt.s32.f32 %v950_v3  ;;  %v1470_v21 = vcvt.s32.f32 %v958_v7 }
 0x161   : > { %v7416_v25 = vadd.f32 %v3020_v16, %v2852_v19  ;;  %2555 = vmatmul.bf16.gmra.mxu0 %v1870_v17  ;;  %v961_v16 = vunpack.c.3.s8 %v7428_v29  ;;  %v6216_v19 = vld [vmem:[%s7324_s18 + $0x160] sm:$0xff]  ;;  %v1465_v27 = vcvt.s32.f32 %v953_v15 }
 0x162   : > { %2724 = vmatmul.bf16.gmra.mxu1 %v1871_v18 }
 0x163   : > { %2893 = vmatmul.bf16.gmra.mxu2 %v1872_v22  ;;  %v1463_v22 = vcvt.s32.f32 %v951_v8  ;;  %v1473_v30 = vcvt.s32.f32 %v961_v16  ;;  %3350 = vmatpush.bf16.msrb.mxu1 %v6216_v19 }
 0x164   : > { %3062 = vmatmul.bf16.gmra.mxu3 %v1873_v23  ;;  %v1471_v23 = vcvt.s32.f32 %v959_v9 }
 0x166   : > { %v2854_v31 = vpop.f32.mrf.mxu2  ;;  %v2518_v38 = vpop.f32.mrf.mxu0  ;;  %v1887_v29 = vpack.c.bf16 %v1471_v23, %v1463_v22  ;;  %v983_v22 = vunpack.c.2.s8 %v695_v41  ;;  %v991_v23 = vunpack.c.3.s8 %v695_v41 }
 0x167   : > { %v3023_v32 = vpop.f32.mrf.mxu3  ;;  %v2855_v37 = vadd.f32 %v2854_v31, %v2686_v24  ;;  %v2687_v39 = vpop.f32.mrf.mxu1  ;;  %v1464_v24 = vcvt.s32.f32 %v952_v10 }
 0x168   : > { %v2688_v43 = vadd.f32 %v2687_v39, %v2518_v38 }
 0x169   : > { %v7438_v44 = vadd.f32 %v3023_v32, %v2855_v37  ;;  %v1886_v32 = vpack.c.bf16 %v1470_v21, %v1462_v20  ;;  %v1888_v36 = vpack.c.bf16 %v1472_v26, %v1464_v24  ;;  %v1889_v37 = vpack.c.bf16 %v1473_v30, %v1465_v27 }
 0x16a   : > { %v990_v21 = vunpack.c.3.s8 %v694_v40  ;;  %v984_v24 = vunpack.c.2.s8 %v696_v42 }
 0x16e   : > { %v2856_v53 = vpop.f32.mrf.mxu2  ;;  %v2521_v58 = vpop.f32.mrf.mxu0 }
 0x16f   : > { %v3025_v54 = vpop.f32.mrf.mxu3  ;;  %v2857_v57 = vadd.f32 %v2856_v53, %v2688_v43  ;;  %v2690_v59 = vpop.f32.mrf.mxu1  ;;  %v697_v43 = vld [vmem:[%s7223_s13 + $0x198] sm:$0xff] }
 0x170   : > { %v2691_v62 = vadd.f32 %v2690_v59, %v2521_v58 }
 0x171   : > { %v7440_v63 = vadd.f32 %v3025_v54, %v2857_v57  ;;  %2560 = vmatmul.bf16.gmra.mxu0 %v1878_v55  ;;  %v976_v55 = vunpack.c.1.s8 %v696_v42  ;;  %v977_v57 = vunpack.c.1.s8 %v697_v43 }
 0x172   : > { %2729 = vmatmul.bf16.gmra.mxu1 %v1879_v56  ;;  %v969_v56 = vunpack.c.0.s8 %v697_v43 }
 0x173   : > { %2898 = vmatmul.bf16.gmra.mxu2 %v1880_v60  ;;  %v1478_v60 = vcvt.s32.f32 %v966_v45  ;;  %v1488_v2 = vcvt.s32.f32 %v976_v55  ;;  %v7471_v55 = vld [vmem:[%s7223_s13 + $0x1c0] sm:$0xff] }
 0x174   : > { %3067 = vmatmul.bf16.gmra.mxu3 %v1881_v61  ;;  %v1486_v61 = vcvt.s32.f32 %v974_v48  ;;  %v1481_v3 = vcvt.s32.f32 %v969_v56  ;;  %v7474_v56 = vld [vmem:[%s7223_s13 + $0x1c8] sm:$0xff] }
 0x176   : > { %v2859_v4 = vpop.f32.mrf.mxu2  ;;  %v2523_v12 = vpop.f32.mrf.mxu0  ;;  %v1894_v8 = vpack.c.bf16 %v1486_v61, %v1478_v60  ;;  %v998_v60 = vunpack.c.0.s8 %v7471_v55 }
 0x177   : > { %v3028_v5 = vpop.f32.mrf.mxu3  ;;  %v2860_v11 = vadd.f32 %v2859_v4, %v2691_v62  ;;  %v2692_v13 = vpop.f32.mrf.mxu1  ;;  %v1479_v62 = vcvt.s32.f32 %v967_v49  ;;  %v1489_v4 = vcvt.s32.f32 %v977_v57  ;;  %v7477_v57 = vld [vmem:[%s7223_s13 + $0x1d0] sm:$0xff] }
 0x178   : > { %v2693_v17 = vadd.f32 %v2692_v13, %v2523_v12  ;;  %v1896_v13 = vpack.c.bf16 %v1488_v2, %v1480_v1  ;;  %v999_v1 = vunpack.c.0.s8 %v7474_v56  ;;  %v1007_v2 = vunpack.c.1.s8 %v7474_v56 }
 0x179   : > { %v7453_v18 = vadd.f32 %v3028_v5, %v2860_v11  ;;  %v1895_v9 = vpack.c.bf16 %v1487_v0, %v1479_v62  ;;  %v1897_v14 = vpack.c.bf16 %v1489_v4, %v1481_v3  ;;  %v1006_v0 = vunpack.c.1.s8 %v7471_v55 }
 0x17a   : > { %v1000_v3 = vunpack.c.0.s8 %v7477_v57 }
 0x17e   : > { %v2861_v31 = vpop.f32.mrf.mxu2  ;;  %v2526_v34 = vpop.f32.mrf.mxu0 }
 0x17f   : > { %v3030_v28 = vpop.f32.mrf.mxu3  ;;  %v2862_v33 = vadd.f32 %v2861_v31, %v2693_v17  ;;  %v2695_v35 = vpop.f32.mrf.mxu1  ;;  %v982_v17 = vunpack.c.2.s8 %v694_v40  ;;  %v992_v31 = vunpack.c.3.s8 %v696_v42 }
 0x180   : > { %v2696_v38 = vadd.f32 %v2695_v35, %v2526_v34  ;;  %v1502_v35 = vcvt.s32.f32 %v990_v21 }
 0x181   : > { %v7456_v39 = vadd.f32 %v3030_v28, %v2862_v33  ;;  %2565 = vmatmul.bf16.gmra.mxu0 %v1886_v32  ;;  %v985_v28 = vunpack.c.2.s8 %v697_v43  ;;  %v993_v32 = vunpack.c.3.s8 %v697_v43  ;;  %v1494_v34 = vcvt.s32.f32 %v982_v17 }
 0x182   : > { %2734 = vmatmul.bf16.gmra.mxu1 %v1887_v29  ;;  %v1504_v45 = vcvt.s32.f32 %v992_v31  ;;  %v1519_v17 = vcvt.s32.f32 %v1007_v2 }
 0x183   : > { %2903 = vmatmul.bf16.gmra.mxu2 %v1888_v36  ;;  %v1495_v36 = vcvt.s32.f32 %v983_v22  ;;  %v1497_v40 = vcvt.s32.f32 %v985_v28  ;;  %v1902_v48 = vpack.c.bf16 %v1502_v35, %v1494_v34 }
 0x184   : > { %3072 = vmatmul.bf16.gmra.mxu3 %v1889_v37  ;;  %v1503_v37 = vcvt.s32.f32 %v991_v23 }
 0x186   : > { %v2864_v46 = vpop.f32.mrf.mxu2  ;;  %v2528_v53 = vpop.f32.mrf.mxu0  ;;  %v1903_v42 = vpack.c.bf16 %v1503_v37, %v1495_v36  ;;  %v6223_v36 = vld [vmem:[%s7324_s18 + $0x198] sm:$0xff] }
 0x187   : > { %v3033_v47 = vpop.f32.mrf.mxu3  ;;  %v2865_v52 = vadd.f32 %v2864_v46, %v2696_v38  ;;  %v2697_v54 = vpop.f32.mrf.mxu1  ;;  %v1496_v38 = vcvt.s32.f32 %v984_v24  ;;  %v1505_v46 = vcvt.s32.f32 %v993_v32  ;;  %v6207_v37 = vld [vmem:[%s7324_s18 + $0x118] sm:$0xff]  ;;  %3520 = vmatpush.bf16.msrb.mxu2 %v6223_v36 }
 0x188   : > { %v2698_v58 = vadd.f32 %v2697_v54, %v2528_v53  ;;  %3182 = vmatpush.bf16.msrb.mxu0 %v6207_v37 }
 0x189   : > { %v7462_v59 = vadd.f32 %v3033_v47, %v2865_v52  ;;  %v1904_v51 = vpack.c.bf16 %v1504_v45, %v1496_v38  ;;  %v1905_v52 = vpack.c.bf16 %v1505_v46, %v1497_v40  ;;  %v6231_v38 = vld [vmem:[%s7324_s18 + $0x1d8] sm:$0xff]  ;;  %v1014_v45 = vunpack.c.2.s8 %v7471_v55 }
 0x18a   : > { %3689 = vmatpush.bf16.msrb.mxu3 %v6231_v38 }
 0x18e   : > { %v2866_v5 = vpop.f32.mrf.mxu2  ;;  %v2531_v11 = vpop.f32.mrf.mxu0 }
 0x18f   : > { %v3035_v7 = vpop.f32.mrf.mxu3  ;;  %v2867_v10 = vadd.f32 %v2866_v5, %v2698_v58  ;;  %v2700_v12 = vpop.f32.mrf.mxu1  ;;  %v7480_v58 = vld [vmem:[%s7223_s13 + $0x1d8] sm:$0xff] }
 0x190   : > { %v2701_v15 = vadd.f32 %v2700_v12, %v2531_v11 }
 0x191   : > { %v7464_v16 = vadd.f32 %v3035_v7, %v2867_v10  ;;  %2570 = vmatmul.bf16.gmra.mxu0 %v1894_v8  ;;  %v1008_v8 = vunpack.c.1.s8 %v7477_v57  ;;  %v1009_v10 = vunpack.c.1.s8 %v7480_v58 }
 0x192   : > { %2739 = vmatmul.bf16.gmra.mxu1 %v1895_v9  ;;  %v1001_v9 = vunpack.c.0.s8 %v7480_v58 }
 0x193   : > { %2908 = vmatmul.bf16.gmra.mxu2 %v1896_v13  ;;  %v1510_v13 = vcvt.s32.f32 %v998_v60  ;;  %v1521_v22 = vcvt.s32.f32 %v1009_v10 }
 0x194   : > { %3077 = vmatmul.bf16.gmra.mxu3 %v1897_v14  ;;  %v1518_v14 = vcvt.s32.f32 %v1006_v0  ;;  %v1513_v21 = vcvt.s32.f32 %v1001_v9 }
 0x196   : > { %v2869_v19 = vpop.f32.mrf.mxu2  ;;  %v2533_v27 = vpop.f32.mrf.mxu0 }
 0x197   : > { %v3038_v20 = vpop.f32.mrf.mxu3  ;;  %v2870_v26 = vadd.f32 %v2869_v19, %v2701_v15  ;;  %v2702_v30 = vpop.f32.mrf.mxu1  ;;  %v1511_v15 = vcvt.s32.f32 %v999_v1  ;;  %v1512_v19 = vcvt.s32.f32 %v1000_v3 }
 0x198   : > { %v2703_v29 = vadd.f32 %v2702_v30, %v2533_v27 }
 0x199   : > { %v7466_v33 = vadd.f32 %v3038_v20, %v2870_v26  ;;  %v1520_v20 = vcvt.s32.f32 %v1008_v8  ;;  %v1910_v26 = vpack.c.bf16 %v1518_v14, %v1510_v13  ;;  %v1911_v27 = vpack.c.bf16 %v1519_v17, %v1511_v15 }
 0x19b   : > { %v1912_v32 = vpack.c.bf16 %v1520_v20, %v1512_v19  ;;  %v710_v19 = vld [vmem:[%s7223_s13 + $0x200] sm:$0xff]  ;;  %v711_v20 = vld [vmem:[%s7223_s13 + $0x208] sm:$0xff] }
 0x19e   : > { %v2871_v41 = vpop.f32.mrf.mxu2  ;;  %v2536_v49 = vpop.f32.mrf.mxu0 }
 0x19f   : > { %v3040_v47 = vpop.f32.mrf.mxu3  ;;  %v2872_v43 = vadd.f32 %v2871_v41, %v2703_v29  ;;  %v2705_v50 = vpop.f32.mrf.mxu1  ;;  %v1913_v29 = vpack.c.bf16 %v1521_v22, %v1513_v21  ;;  %v1022_v41 = vunpack.c.3.s8 %v7471_v55  ;;  %v6215_v55 = vld [vmem:[%s7324_s18 + $0x158] sm:$0xff]  ;;  %v712_v21 = vld [vmem:[%s7223_s13 + $0x210] sm:$0xff] }
 0x1a0   : > { %v2706_v53 = vadd.f32 %v2705_v50, %v2536_v49  ;;  %3351 = vmatpush.bf16.msrb.mxu1 %v6215_v55  ;;  %v713_v22 = vld [vmem:[%s7223_s13 + $0x218] sm:$0xff]  ;;  %v1040_v36 = vunpack.c.1.s8 %v712_v21 }
 0x1a1   : > { %v7468_v54 = vadd.f32 %v3040_v47, %v2872_v43  ;;  %2575 = vmatmul.bf16.gmra.mxu0 %v1902_v48  ;;  %v1015_v47 = vunpack.c.2.s8 %v7474_v56  ;;  %v1023_v48 = vunpack.c.3.s8 %v7474_v56  ;;  %v1534_v0 = vcvt.s32.f32 %v1022_v41 }
 0x1a2   : > { %2744 = vmatmul.bf16.gmra.mxu1 %v1903_v42  ;;  %v1016_v42 = vunpack.c.2.s8 %v7477_v57  ;;  %v1033_v37 = vunpack.c.0.s8 %v713_v22  ;;  %v1041_v38 = vunpack.c.1.s8 %v713_v22 }
 0x1a3   : > { %2913 = vmatmul.bf16.gmra.mxu2 %v1904_v51  ;;  %v1024_v51 = vunpack.c.3.s8 %v7477_v57  ;;  %v1527_v1 = vcvt.s32.f32 %v1015_v47  ;;  %v1535_v56 = vcvt.s32.f32 %v1023_v48 }
 0x1a4   : > { %3082 = vmatmul.bf16.gmra.mxu3 %v1905_v52  ;;  %v1017_v52 = vunpack.c.2.s8 %v7480_v58  ;;  %v1528_v2 = vcvt.s32.f32 %v1016_v42 }
 0x1a5   : > { %v1536_v3 = vcvt.s32.f32 %v1024_v51 }
 0x1a6   : > { %v2874_v61 = vpop.f32.mrf.mxu2  ;;  %v2538_v5 = vpop.f32.mrf.mxu0 }
 0x1a7   : > { %v3043_v62 = vpop.f32.mrf.mxu3  ;;  %v2875_v4 = vadd.f32 %v2874_v61, %v2706_v53  ;;  %v2707_v7 = vpop.f32.mrf.mxu1  ;;  %v1025_v53 = vunpack.c.3.s8 %v7480_v58  ;;  %v1919_v58 = vpack.c.bf16 %v1535_v56, %v1527_v1  ;;  %v1920_v13 = vpack.c.bf16 %v1536_v3, %v1528_v2 }
 0x1a8   : > { %v2708_v11 = vadd.f32 %v2707_v7, %v2538_v5 }
 0x1a9   : > { %v7490_v12 = vadd.f32 %v3043_v62, %v2875_v4  ;;  %v1526_v62 = vcvt.s32.f32 %v1014_v45  ;;  %v1529_v4 = vcvt.s32.f32 %v1017_v52  ;;  %v1537_v5 = vcvt.s32.f32 %v1025_v53 }
 0x1ab   : > { %v1918_v8 = vpack.c.bf16 %v1534_v0, %v1526_v62  ;;  %v1921_v14 = vpack.c.bf16 %v1537_v5, %v1529_v4  ;;  %v1046_v4 = vunpack.c.2.s8 %v710_v19 }
 0x1ae   : > { %v2876_v23 = vpop.f32.mrf.mxu2  ;;  %v2541_v31 = vpop.f32.mrf.mxu0 }
 0x1af   : > { %v3045_v24 = vpop.f32.mrf.mxu3  ;;  %v2877_v30 = vadd.f32 %v2876_v23, %v2708_v11  ;;  %v2710_v28 = vpop.f32.mrf.mxu1  ;;  %v1030_v23 = vunpack.c.0.s8 %v710_v19 }
 0x1b0   : > { %v2711_v34 = vadd.f32 %v2710_v28, %v2541_v31  ;;  %v1039_v31 = vunpack.c.1.s8 %v711_v20  ;;  %v1032_v28 = vunpack.c.0.s8 %v712_v21 }
 0x1b1   : > { %v7492_v35 = vadd.f32 %v3045_v24, %v2877_v30  ;;  %2580 = vmatmul.bf16.gmra.mxu0 %v1910_v26  ;;  %v1031_v30 = vunpack.c.0.s8 %v711_v20 }
 0x1b2   : > { %2749 = vmatmul.bf16.gmra.mxu1 %v1911_v27  ;;  %v1038_v27 = vunpack.c.1.s8 %v710_v19  ;;  %v1551_v48 = vcvt.s32.f32 %v1039_v31  ;;  %v1544_v42 = vcvt.s32.f32 %v1032_v28 }
 0x1b3   : > { %2918 = vmatmul.bf16.gmra.mxu2 %v1912_v32  ;;  %v1543_v47 = vcvt.s32.f32 %v1031_v30 }
 0x1b4   : > { %3087 = vmatmul.bf16.gmra.mxu3 %v1913_v29  ;;  %v1550_v41 = vcvt.s32.f32 %v1038_v27  ;;  %v1558_v27 = vcvt.s32.f32 %v1046_v4 }
 0x1b6   : > { %v2879_v40 = vpop.f32.mrf.mxu2  ;;  %v2543_v49 = vpop.f32.mrf.mxu0 }
 0x1b7   : > { %v3048_v46 = vpop.f32.mrf.mxu3  ;;  %v2880_v43 = vadd.f32 %v2879_v40, %v2711_v34  ;;  %v2712_v50 = vpop.f32.mrf.mxu1 }
 0x1b8   : > { %v2713_v60 = vadd.f32 %v2712_v50, %v2543_v49  ;;  %v1545_v49 = vcvt.s32.f32 %v1033_v37  ;;  %v1553_v50 = vcvt.s32.f32 %v1041_v38 }
 0x1b9   : > { %v7505_v61 = vadd.f32 %v3048_v46, %v2880_v43  ;;  %v1542_v46 = vcvt.s32.f32 %v1030_v23  ;;  %v1552_v43 = vcvt.s32.f32 %v1040_v36  ;;  %v1057_v23 = vunpack.c.3.s8 %v713_v22 }
 0x1ba   : > { %v1929_v56 = vpack.c.bf16 %v1553_v50, %v1545_v49  ;;  %v7529_v49 = vld [vmem:[%s7223_s13 + $0x250] sm:$0xff]  ;;  %v7532_v50 = vld [vmem:[%s7223_s13 + $0x258] sm:$0xff] }
 0x1bb   : > { %v1926_v53 = vpack.c.bf16 %v1550_v41, %v1542_v46  ;;  %v1928_v1 = vpack.c.bf16 %v1552_v43, %v1544_v42  ;;  %v7523_v42 = vld [vmem:[%s7223_s13 + $0x240] sm:$0xff]  ;;  %v7526_v43 = vld [vmem:[%s7223_s13 + $0x248] sm:$0xff]  ;;  %v1072_v4 = vunpack.c.1.s8 %v7529_v49 }
 0x1be   : > { %v2881_v7 = vpop.f32.mrf.mxu2  ;;  %v2546_v10 = vpop.f32.mrf.mxu0 }
 0x1bf   : > { %v3050_v57 = vpop.f32.mrf.mxu3  ;;  %v2882_v9 = vadd.f32 %v2881_v7, %v2713_v60  ;;  %v2715_v11 = vpop.f32.mrf.mxu1  ;;  %v1927_v60 = vpack.c.bf16 %v1551_v48, %v1543_v47 }
 0x1c0   : > { %v2716_v15 = vadd.f32 %v2715_v11, %v2546_v10 }
 0x1c1   : > { %v7508_v17 = vadd.f32 %v3050_v57, %v2882_v9  ;;  %2585 = vmatmul.bf16.gmra.mxu0 %v1918_v8  ;;  %v1054_v57 = vunpack.c.3.s8 %v710_v19  ;;  %v1047_v8 = vunpack.c.2.s8 %v711_v20  ;;  %v1048_v9 = vunpack.c.2.s8 %v712_v21 }
 0x1c2   : > { %2754 = vmatmul.bf16.gmra.mxu1 %v1919_v58  ;;  %v1055_v58 = vunpack.c.3.s8 %v711_v20 }
 0x1c3   : > { %2923 = vmatmul.bf16.gmra.mxu2 %v1920_v13  ;;  %v1566_v30 = vcvt.s32.f32 %v1054_v57  ;;  %v1559_v31 = vcvt.s32.f32 %v1047_v8 }
 0x1c4   : > { %3092 = vmatmul.bf16.gmra.mxu3 %v1921_v14  ;;  %v1056_v14 = vunpack.c.3.s8 %v712_v21  ;;  %v1567_v28 = vcvt.s32.f32 %v1055_v58 }
 0x1c5   : > { %v1934_v37 = vpack.c.bf16 %v1566_v30, %v1558_v27 }
 0x1c6   : > { %v2884_v24 = vpop.f32.mrf.mxu2  ;;  %v2548_v29 = vpop.f32.mrf.mxu0  ;;  %v1935_v21 = vpack.c.bf16 %v1567_v28, %v1559_v31 }
 0x1c7   : > { %v3053_v26 = vpop.f32.mrf.mxu3  ;;  %v2885_v32 = vadd.f32 %v2884_v24, %v2716_v15  ;;  %v2717_v34 = vpop.f32.mrf.mxu1  ;;  %v1049_v15 = vunpack.c.2.s8 %v713_v22 }
 0x1c8   : > { %v2718_v45 = vadd.f32 %v2717_v34, %v2548_v29  ;;  %v1568_v29 = vcvt.s32.f32 %v1056_v14  ;;  %v1569_v34 = vcvt.s32.f32 %v1057_v23  ;;  %v1584_v14 = vcvt.s32.f32 %v1072_v4 }
 0x1c9   : > { %v7514_v40 = vadd.f32 %v3053_v26, %v2885_v32  ;;  %v1560_v32 = vcvt.s32.f32 %v1048_v9  ;;  %v1561_v19 = vcvt.s32.f32 %v1049_v15 }
 0x1cb   : > { %v1936_v46 = vpack.c.bf16 %v1568_v29, %v1560_v32  ;;  %v1937_v41 = vpack.c.bf16 %v1569_v34, %v1561_v19 }
 0x1ce   : > { %v2886_v51 = vpop.f32.mrf.mxu2  ;;  %v2551_v62 = vpop.f32.mrf.mxu0 }
 0x1cf   : > { %v3055_v52 = vpop.f32.mrf.mxu3  ;;  %v2887_v55 = vadd.f32 %v2886_v51, %v2718_v45  ;;  %v2720_v0 = vpop.f32.mrf.mxu1  ;;  %v1062_v51 = vunpack.c.0.s8 %v7523_v42 }
 0x1d0   : > { %v2721_v2 = vadd.f32 %v2720_v0, %v2551_v62  ;;  %v1071_v62 = vunpack.c.1.s8 %v7526_v43  ;;  %v1064_v0 = vunpack.c.0.s8 %v7529_v49 }
 0x1d1   : > { %v7516_v3 = vadd.f32 %v3055_v52, %v2887_v55  ;;  %2590 = vmatmul.bf16.gmra.mxu0 %v1926_v53  ;;  %v1063_v55 = vunpack.c.0.s8 %v7526_v43  ;;  %v1574_v58 = vcvt.s32.f32 %v1062_v51  ;;  %v1087_v51 = vunpack.c.3.s8 %v7526_v43 }
 0x1d2   : > { %2759 = vmatmul.bf16.gmra.mxu1 %v1927_v60  ;;  %v1070_v60 = vunpack.c.1.s8 %v7523_v42 }
 0x1d3   : > { %2928 = vmatmul.bf16.gmra.mxu2 %v1928_v1 }
 0x1d4   : > { %3097 = vmatmul.bf16.gmra.mxu3 %v1929_v56  ;;  %v1582_v9 = vcvt.s32.f32 %v1070_v60 }
 0x1d6   : > { %v2889_v5 = vpop.f32.mrf.mxu2  ;;  %v2553_v11 = vpop.f32.mrf.mxu0  ;;  %v1942_v30 = vpack.c.bf16 %v1582_v9, %v1574_v58 }
 0x1d7   : > { %v3058_v7 = vpop.f32.mrf.mxu3  ;;  %v2890_v10 = vadd.f32 %v2889_v5, %v2721_v2  ;;  %v2722_v13 = vpop.f32.mrf.mxu1  ;;  %v1065_v5 = vunpack.c.0.s8 %v7532_v50 }
 0x1d8   : > { %v2723_v24 = vadd.f32 %v2722_v13, %v2553_v11  ;;  %v1583_v11 = vcvt.s32.f32 %v1071_v62  ;;  %v1576_v13 = vcvt.s32.f32 %v1064_v0  ;;  %v1088_v62 = vunpack.c.3.s8 %v7529_v49 }
 0x1d9   : > { %v7518_v26 = vadd.f32 %v3058_v7, %v2890_v10  ;;  %v1073_v7 = vunpack.c.1.s8 %v7532_v50  ;;  %v1575_v10 = vcvt.s32.f32 %v1063_v55  ;;  %v1577_v15 = vcvt.s32.f32 %v1065_v5 }
 0x1da   : > { %v1944_v19 = vpack.c.bf16 %v1584_v14, %v1576_v13  ;;  %v1081_v0 = vunpack.c.2.s8 %v7532_v50  ;;  %v1600_v58 = vcvt.s32.f32 %v1088_v62 }
 0x1db   : > { %v1585_v23 = vcvt.s32.f32 %v1073_v7  ;;  %v1943_v31 = vpack.c.bf16 %v1583_v11, %v1575_v10 }
 0x1dc   : > { %v1593_v9 = vcvt.s32.f32 %v1081_v0 }
 0x1dd   : > { %v1945_v34 = vpack.c.bf16 %v1585_v23, %v1577_v15 }
 0x1de   : > { %v2891_v20 = vpop.f32.mrf.mxu2  ;;  %v2556_v38 = vpop.f32.mrf.mxu0 }
 0x1df   : > { %v3060_v36 = vpop.f32.mrf.mxu3  ;;  %v2892_v22 = vadd.f32 %v2891_v20, %v2723_v24  ;;  %v2725_v45 = vpop.f32.mrf.mxu1 }
 0x1e0   : > { %v2726_v47 = vadd.f32 %v2725_v45, %v2556_v38  ;;  %v1078_v38 = vunpack.c.2.s8 %v7523_v42 }
 0x1e1   : > { %v7520_v48 = vadd.f32 %v3060_v36, %v2892_v22  ;;  %2595 = vmatmul.bf16.gmra.mxu0 %v1934_v37  ;;  %v6222_v37 = vld [vmem:[%s7324_s18 + $0x190] sm:$0xff] }
 0x1e2   : > { %2764 = vmatmul.bf16.gmra.mxu1 %v1935_v21  ;;  %v6206_v21 = vld [vmem:[%s7324_s18 + $0x110] sm:$0xff]  ;;  %3521 = vmatpush.bf16.msrb.mxu2 %v6222_v37  ;;  %v1590_v4 = vcvt.s32.f32 %v1078_v38 }
 0x1e3   : > { %2933 = vmatmul.bf16.gmra.mxu2 %v1936_v46  ;;  %v6230_v22 = vld [vmem:[%s7324_s18 + $0x1d0] sm:$0xff]  ;;  %3183 = vmatpush.bf16.msrb.mxu0 %v6206_v21 }
 0x1e4   : > { %3102 = vmatmul.bf16.gmra.mxu3 %v1937_v41  ;;  %v1086_v41 = vunpack.c.3.s8 %v7523_v42  ;;  %v6214_v42 = vld [vmem:[%s7324_s18 + $0x150] sm:$0xff] }
 0x1e5   : > { %3690 = vmatpush.bf16.msrb.mxu3 %v6230_v22  ;;  %3352 = vmatpush.bf16.msrb.mxu1 %v6214_v42 }
 0x1e6   : > { %v2894_v52 = vpop.f32.mrf.mxu2  ;;  %v2558_v56 = vpop.f32.mrf.mxu0  ;;  %v1598_v5 = vcvt.s32.f32 %v1086_v41 }
 0x1e7   : > { %v3063_v53 = vpop.f32.mrf.mxu3  ;;  %v2895_v1 = vadd.f32 %v2894_v52, %v2726_v47  ;;  %v2727_v2 = vpop.f32.mrf.mxu1  ;;  %v1079_v47 = vunpack.c.2.s8 %v7526_v43  ;;  %v1080_v52 = vunpack.c.2.s8 %v7529_v49  ;;  %v1599_v43 = vcvt.s32.f32 %v1087_v51 }
 0x1e8   : > { %v2728_v57 = vadd.f32 %v2727_v2, %v2558_v56  ;;  %v1950_v13 = vpack.c.bf16 %v1598_v5, %v1590_v4 }
 0x1e9   : > { %v7542_v8 = vadd.f32 %v3063_v53, %v2895_v1  ;;  %v1089_v1 = vunpack.c.3.s8 %v7532_v50  ;;  %v1591_v7 = vcvt.s32.f32 %v1079_v47 }
 0x1eb   : > { %v1601_v10 = vcvt.s32.f32 %v1089_v1  ;;  %v1951_v50 = vpack.c.bf16 %v1599_v43, %v1591_v7 }
 0x1ee   : > { %v2896_v24 = vpop.f32.mrf.mxu2  ;;  %v2561_v32 = vpop.f32.mrf.mxu0 }
 0x1ef   : > { %v3065_v27 = vpop.f32.mrf.mxu3  ;;  %v2897_v28 = vadd.f32 %v2896_v24, %v2728_v57  ;;  %v2730_v29 = vpop.f32.mrf.mxu1  ;;  %v1592_v57 = vcvt.s32.f32 %v1080_v52 }
 0x1f0   : > { %v2731_v20 = vadd.f32 %v2730_v29, %v2561_v32  ;;  %v727_v32 = vld [vmem:[%s7223_s13 + $0x288] sm:$0xff]  ;;  %v728_v29 = vld [vmem:[%s7223_s13 + $0x290] sm:$0xff] }
 0x1f1   : > { %v7544_v36 = vadd.f32 %v3065_v27, %v2897_v28  ;;  %2600 = vmatmul.bf16.gmra.mxu0 %v1942_v30  ;;  %v1952_v24 = vpack.c.bf16 %v1600_v58, %v1592_v57  ;;  %v1953_v27 = vpack.c.bf16 %v1601_v10, %v1593_v9  ;;  %v726_v28 = vld [vmem:[%s7223_s13 + $0x280] sm:$0xff]  ;;  %v1095_v22 = vunpack.c.0.s8 %v727_v32 }
 0x1f2   : > { %2769 = vmatmul.bf16.gmra.mxu1 %v1943_v31  ;;  %v1102_v21 = vunpack.c.1.s8 %v726_v28  ;;  %v1103_v38 = vunpack.c.1.s8 %v727_v32  ;;  %v1104_v51 = vunpack.c.1.s8 %v728_v29 }
 0x1f3   : > { %2938 = vmatmul.bf16.gmra.mxu2 %v1944_v19  ;;  %v729_v19 = vld [vmem:[%s7223_s13 + $0x298] sm:$0xff]  ;;  %v1607_v1 = vcvt.s32.f32 %v1095_v22 }
 0x1f4   : > { %3107 = vmatmul.bf16.gmra.mxu3 %v1945_v34  ;;  %v1094_v34 = vunpack.c.0.s8 %v726_v28  ;;  %v1097_v52 = vunpack.c.0.s8 %v729_v19  ;;  %v1614_v0 = vcvt.s32.f32 %v1102_v21  ;;  %v1616_v4 = vcvt.s32.f32 %v1104_v51 }
 0x1f6   : > { %v2899_v45 = vpop.f32.mrf.mxu2  ;;  %v2563_v60 = vpop.f32.mrf.mxu0  ;;  %v1606_v62 = vcvt.s32.f32 %v1094_v34  ;;  %v1609_v5 = vcvt.s32.f32 %v1097_v52  ;;  %v1111_v34 = vunpack.c.2.s8 %v727_v32 }
 0x1f7   : > { %v3068_v46 = vpop.f32.mrf.mxu3  ;;  %v2900_v53 = vadd.f32 %v2899_v45, %v2731_v20  ;;  %v2732_v55 = vpop.f32.mrf.mxu1  ;;  %v1096_v45 = vunpack.c.0.s8 %v728_v29 }
 0x1f8   : > { %v2733_v56 = vadd.f32 %v2732_v55, %v2563_v60  ;;  %v1958_v58 = vpack.c.bf16 %v1614_v0, %v1606_v62 }
 0x1f9   : > { %v7557_v2 = vadd.f32 %v3068_v46, %v2900_v53  ;;  %v1105_v53 = vunpack.c.1.s8 %v729_v19  ;;  %v1608_v42 = vcvt.s32.f32 %v1096_v45  ;;  %v1120_v45 = vunpack.c.3.s8 %v728_v29 }
 0x1fb   : > { %v1617_v7 = vcvt.s32.f32 %v1105_v53 }
 0x1fe   : > { %v2901_v11 = vpop.f32.mrf.mxu2  ;;  %v2566_v15 = vpop.f32.mrf.mxu0 }
 0x1ff   : > { %v3070_v49 = vpop.f32.mrf.mxu3  ;;  %v2902_v14 = vadd.f32 %v2901_v11, %v2733_v56  ;;  %v2735_v23 = vpop.f32.mrf.mxu1  ;;  %v1615_v56 = vcvt.s32.f32 %v1103_v38 }
 0x200   : > { %v2736_v30 = vadd.f32 %v2735_v23, %v2566_v15  ;;  %v1110_v23 = vunpack.c.2.s8 %v726_v28 }
 0x201   : > { %v7560_v31 = vadd.f32 %v3070_v49, %v2902_v14  ;;  %2605 = vmatmul.bf16.gmra.mxu0 %v1950_v13  ;;  %v1959_v9 = vpack.c.bf16 %v1615_v56, %v1607_v1  ;;  %v1960_v13 = vpack.c.bf16 %v1616_v4, %v1608_v42  ;;  %v1632_v1 = vcvt.s32.f32 %v1120_v45 }
 0x202   : > { %2774 = vmatmul.bf16.gmra.mxu1 %v1951_v50  ;;  %v1961_v50 = vpack.c.bf16 %v1617_v7, %v1609_v5  ;;  %v1622_v52 = vcvt.s32.f32 %v1110_v23 }
 0x203   : > { %2943 = vmatmul.bf16.gmra.mxu2 %v1952_v24 }
 0x204   : > { %3112 = vmatmul.bf16.gmra.mxu3 %v1953_v27 }
 0x206   : > { %v2904_v20 = vpop.f32.mrf.mxu2  ;;  %v2568_v41 = vpop.f32.mrf.mxu0 }
 0x207   : > { %v3073_v37 = vpop.f32.mrf.mxu3  ;;  %v2905_v46 = vadd.f32 %v2904_v20, %v2736_v30  ;;  %v2737_v47 = vpop.f32.mrf.mxu1  ;;  %v1118_v30 = vunpack.c.3.s8 %v726_v28  ;;  %v1119_v20 = vunpack.c.3.s8 %v727_v32 }
 0x208   : > { %v2738_v60 = vadd.f32 %v2737_v47, %v2568_v41  ;;  %v1121_v41 = vunpack.c.3.s8 %v729_v19 }
 0x209   : > { %v7566_v55 = vadd.f32 %v3073_v37, %v2905_v46  ;;  %v1112_v37 = vunpack.c.2.s8 %v728_v29  ;;  %v1113_v46 = vunpack.c.2.s8 %v729_v19  ;;  %v1630_v53 = vcvt.s32.f32 %v1118_v30 }
 0x20a   : > { %v1631_v62 = vcvt.s32.f32 %v1119_v20  ;;  %v1633_v56 = vcvt.s32.f32 %v1121_v41 }
 0x20b   : > { %v1624_v0 = vcvt.s32.f32 %v1112_v37  ;;  %v1625_v28 = vcvt.s32.f32 %v1113_v46  ;;  %v1966_v4 = vpack.c.bf16 %v1630_v53, %v1622_v52 }
 0x20e   : > { %v2906_v43 = vpop.f32.mrf.mxu2  ;;  %v2571_v11 = vpop.f32.mrf.mxu0 }
 0x20f   : > { %v3075_v57 = vpop.f32.mrf.mxu3  ;;  %v2907_v10 = vadd.f32 %v2906_v43, %v2738_v60  ;;  %v2740_v49 = vpop.f32.mrf.mxu1  ;;  %v1623_v60 = vcvt.s32.f32 %v1111_v34  ;;  %v1968_v43 = vpack.c.bf16 %v1632_v1, %v1624_v0 }
 0x210   : > { %v2741_v14 = vadd.f32 %v2740_v49, %v2571_v11  ;;  %v7578_v11 = vld [vmem:[%s7223_s13 + $0x2c8] sm:$0xff]  ;;  %v7581_v49 = vld [vmem:[%s7223_s13 + $0x2d0] sm:$0xff] }
 0x211   : > { %v7568_v15 = vadd.f32 %v3075_v57, %v2907_v10  ;;  %2610 = vmatmul.bf16.gmra.mxu0 %v1958_v58  ;;  %v1967_v29 = vpack.c.bf16 %v1631_v62, %v1623_v60  ;;  %v1969_v57 = vpack.c.bf16 %v1633_v56, %v1625_v28  ;;  %v7575_v10 = vld [vmem:[%s7223_s13 + $0x2c0] sm:$0xff]  ;;  %v1135_v30 = vunpack.c.1.s8 %v7578_v11 }
 0x212   : > { %2779 = vmatmul.bf16.gmra.mxu1 %v1959_v9  ;;  %v1128_v34 = vunpack.c.0.s8 %v7581_v49 }
 0x213   : > { %2948 = vmatmul.bf16.gmra.mxu2 %v1960_v13  ;;  %v7584_v13 = vld [vmem:[%s7223_s13 + $0x2d8] sm:$0xff]  ;;  %v1647_v60 = vcvt.s32.f32 %v1135_v30 }
 0x214   : > { %3117 = vmatmul.bf16.gmra.mxu3 %v1961_v50  ;;  %v1126_v50 = vunpack.c.0.s8 %v7575_v10  ;;  %v1137_v45 = vunpack.c.1.s8 %v7584_v13  ;;  %v1640_v62 = vcvt.s32.f32 %v1128_v34  ;;  %v1150_v34 = vunpack.c.3.s8 %v7575_v10 }
 0x216   : > { %v2909_v24 = vpop.f32.mrf.mxu2  ;;  %v2573_v22 = vpop.f32.mrf.mxu0  ;;  %v1649_v28 = vcvt.s32.f32 %v1137_v45 }
 0x217   : > { %v3078_v27 = vpop.f32.mrf.mxu3  ;;  %v2910_v21 = vadd.f32 %v2909_v24, %v2741_v14  ;;  %v2742_v38 = vpop.f32.mrf.mxu1  ;;  %v1134_v24 = vunpack.c.1.s8 %v7575_v10 }
 0x218   : > { %v2743_v47 = vadd.f32 %v2742_v38, %v2573_v22  ;;  %v1136_v22 = vunpack.c.1.s8 %v7581_v49  ;;  %v1129_v38 = vunpack.c.0.s8 %v7584_v13 }
 0x219   : > { %v7570_v51 = vadd.f32 %v3078_v27, %v2910_v21  ;;  %v1127_v27 = vunpack.c.0.s8 %v7578_v11  ;;  %v1646_v52 = vcvt.s32.f32 %v1134_v24  ;;  %v1142_v24 = vunpack.c.2.s8 %v7575_v10  ;;  %v6213_v10 = vld [vmem:[%s7324_s18 + $0x148] sm:$0xff] }
 0x21a   : > { %v1648_v0 = vcvt.s32.f32 %v1136_v22  ;;  %v1641_v1 = vcvt.s32.f32 %v1129_v38  ;;  %3353 = vmatpush.bf16.msrb.mxu1 %v6213_v10 }
 0x21b   : > { %v1639_v53 = vcvt.s32.f32 %v1127_v27 }
 0x21e   : > { %v2911_v32 = vpop.f32.mrf.mxu2  ;;  %v2576_v5 = vpop.f32.mrf.mxu0 }
 0x21f   : > { %v3080_v42 = vpop.f32.mrf.mxu3  ;;  %v2912_v19 = vadd.f32 %v2911_v32, %v2743_v47  ;;  %v2745_v7 = vpop.f32.mrf.mxu1  ;;  %v1638_v47 = vcvt.s32.f32 %v1126_v50  ;;  %v6221_v50 = vld [vmem:[%s7324_s18 + $0x188] sm:$0xff] }
 0x220   : > { %v2746_v58 = vadd.f32 %v2745_v7, %v2576_v5  ;;  %v1976_v7 = vpack.c.bf16 %v1648_v0, %v1640_v62  ;;  %3522 = vmatpush.bf16.msrb.mxu2 %v6221_v50  ;;  %v1654_v62 = vcvt.s32.f32 %v1142_v24  ;;  %v1662_v0 = vcvt.s32.f32 %v1150_v34  ;;  %v743_v24 = vld [vmem:[%s7223_s13 + $0x308] sm:$0xff] }
 0x221   : > { %v7572_v9 = vadd.f32 %v3080_v42, %v2912_v19  ;;  %2615 = vmatmul.bf16.gmra.mxu0 %v1966_v4  ;;  %v1974_v42 = vpack.c.bf16 %v1646_v52, %v1638_v47  ;;  %v1975_v4 = vpack.c.bf16 %v1647_v60, %v1639_v53  ;;  %v1145_v47 = vunpack.c.2.s8 %v7584_v13 }
 0x222   : > { %2784 = vmatmul.bf16.gmra.mxu1 %v1967_v29  ;;  %v1153_v52 = vunpack.c.3.s8 %v7584_v13 }
 0x223   : > { %2953 = vmatmul.bf16.gmra.mxu2 %v1968_v43  ;;  %v1977_v43 = vpack.c.bf16 %v1649_v28, %v1641_v1 }
 0x224   : > { %3122 = vmatmul.bf16.gmra.mxu3 %v1969_v57 }
 0x226   : > { %v2914_v14 = vpop.f32.mrf.mxu2  ;;  %v2578_v37 = vpop.f32.mrf.mxu0 }
 0x227   : > { %v3083_v23 = vpop.f32.mrf.mxu3  ;;  %v2915_v20 = vadd.f32 %v2914_v14, %v2746_v58  ;;  %v2747_v21 = vpop.f32.mrf.mxu1  ;;  %v6205_v14 = vld [vmem:[%s7324_s18 + $0x108] sm:$0xff] }
 0x228   : > { %v2748_v46 = vadd.f32 %v2747_v21, %v2578_v37  ;;  %3184 = vmatpush.bf16.msrb.mxu0 %v6205_v14  ;;  %v1151_v37 = vunpack.c.3.s8 %v7578_v11  ;;  %v1144_v21 = vunpack.c.2.s8 %v7581_v49 }
 0x229   : > { %v7594_v41 = vadd.f32 %v3083_v23, %v2915_v20  ;;  %v6229_v23 = vld [vmem:[%s7324_s18 + $0x1c8] sm:$0xff]  ;;  %v1143_v20 = vunpack.c.2.s8 %v7578_v11 }
 0x22a   : > { %3691 = vmatpush.bf16.msrb.mxu3 %v6229_v23  ;;  %v1663_v11 = vcvt.s32.f32 %v1151_v37  ;;  %v1656_v28 = vcvt.s32.f32 %v1144_v21  ;;  %v742_v23 = vld [vmem:[%s7223_s13 + $0x300] sm:$0xff] }
 0x22b   : > { %v1655_v1 = vcvt.s32.f32 %v1143_v20  ;;  %v1158_v34 = vunpack.c.0.s8 %v742_v23  ;;  %v1166_v21 = vunpack.c.1.s8 %v742_v23 }
 0x22d   : > { %v1983_v13 = vpack.c.bf16 %v1663_v11, %v1655_v1  ;;  %v1670_v11 = vcvt.s32.f32 %v1158_v34  ;;  %v1174_v34 = vunpack.c.2.s8 %v742_v23 }
 0x22e   : > { %v2916_v56 = vpop.f32.mrf.mxu2  ;;  %v2581_v19 = vpop.f32.mrf.mxu0 }
 0x22f   : > { %v3085_v32 = vpop.f32.mrf.mxu3  ;;  %v2917_v29 = vadd.f32 %v2916_v56, %v2748_v46  ;;  %v2750_v5 = vpop.f32.mrf.mxu1  ;;  %v1152_v46 = vunpack.c.3.s8 %v7581_v49 }
 0x230   : > { %v2751_v57 = vadd.f32 %v2750_v5, %v2581_v19 }
 0x231   : > { %v7596_v58 = vadd.f32 %v3085_v32, %v2917_v29  ;;  %2620 = vmatmul.bf16.gmra.mxu0 %v1974_v42  ;;  %v1664_v56 = vcvt.s32.f32 %v1152_v46  ;;  %v1657_v32 = vcvt.s32.f32 %v1145_v47  ;;  %v1665_v42 = vcvt.s32.f32 %v1153_v52 }
 0x232   : > { %2789 = vmatmul.bf16.gmra.mxu1 %v1975_v4  ;;  %v1982_v29 = vpack.c.bf16 %v1662_v0, %v1654_v62 }
 0x233   : > { %2958 = vmatmul.bf16.gmra.mxu2 %v1976_v7 }
 0x234   : > { %3127 = vmatmul.bf16.gmra.mxu3 %v1977_v43  ;;  %v1984_v43 = vpack.c.bf16 %v1664_v56, %v1656_v28  ;;  %v1678_v28 = vcvt.s32.f32 %v1166_v21 }
 0x236   : > { %v2919_v27 = vpop.f32.mrf.mxu2  ;;  %v2583_v38 = vpop.f32.mrf.mxu0 }
 0x237   : > { %v3088_v30 = vpop.f32.mrf.mxu3  ;;  %v2920_v22 = vadd.f32 %v2919_v27, %v2751_v57  ;;  %v2752_v45 = vpop.f32.mrf.mxu1  ;;  %v1985_v57 = vpack.c.bf16 %v1665_v42, %v1657_v32  ;;  %v744_v27 = vld [vmem:[%s7223_s13 + $0x310] sm:$0xff] }
 0x238   : > { %v2753_v53 = vadd.f32 %v2752_v45, %v2583_v38  ;;  %v1167_v38 = vunpack.c.1.s8 %v743_v24  ;;  %v1160_v45 = vunpack.c.0.s8 %v744_v27 }
 0x239   : > { %v7609_v60 = vadd.f32 %v3088_v30, %v2920_v22  ;;  %v745_v30 = vld [vmem:[%s7223_s13 + $0x318] sm:$0xff]  ;;  %v1159_v22 = vunpack.c.0.s8 %v743_v24 }
 0x23a   : > { %v1161_v10 = vunpack.c.0.s8 %v745_v30  ;;  %v1169_v62 = vunpack.c.1.s8 %v745_v30  ;;  %v1679_v32 = vcvt.s32.f32 %v1167_v38  ;;  %v1672_v42 = vcvt.s32.f32 %v1160_v45 }
 0x23b   : > { %v1671_v56 = vcvt.s32.f32 %v1159_v22  ;;  %v1182_v38 = vunpack.c.3.s8 %v742_v23  ;;  %v1175_v45 = vunpack.c.2.s8 %v743_v24 }
 0x23e   : > { %v2921_v4 = vpop.f32.mrf.mxu2  ;;  %v2586_v5 = vpop.f32.mrf.mxu0 }
 0x23f   : > { %v3090_v49 = vpop.f32.mrf.mxu3  ;;  %v2922_v19 = vadd.f32 %v2921_v4, %v2753_v53  ;;  %v2755_v7 = vpop.f32.mrf.mxu1  ;;  %v1168_v53 = vunpack.c.1.s8 %v744_v27 }
 0x240   : > { %v2756_v50 = vadd.f32 %v2755_v7, %v2586_v5  ;;  %v1990_v5 = vpack.c.bf16 %v1678_v28, %v1670_v11  ;;  %v1991_v7 = vpack.c.bf16 %v1679_v32, %v1671_v56  ;;  %v1177_v11 = vunpack.c.2.s8 %v745_v30 }
 0x241   : > { %v7612_v14 = vadd.f32 %v3090_v49, %v2922_v19  ;;  %2625 = vmatmul.bf16.gmra.mxu0 %v1982_v29  ;;  %v1680_v4 = vcvt.s32.f32 %v1168_v53  ;;  %v1673_v49 = vcvt.s32.f32 %v1161_v10  ;;  %v1681_v29 = vcvt.s32.f32 %v1169_v62 }
 0x242   : > { %2794 = vmatmul.bf16.gmra.mxu1 %v1983_v13  ;;  %v1185_v28 = vunpack.c.3.s8 %v745_v30  ;;  %v1689_v23 = vcvt.s32.f32 %v1177_v11 }
 0x243   : > { %8528 = vst [vmem:[#allocation28_spill] sm:$0xff] %v7612_v14  ;;  %2963 = vmatmul.bf16.gmra.mxu2 %v1984_v43  ;;  %v1993_v14 = vpack.c.bf16 %v1681_v29, %v1673_v49  ;;  %v1687_v49 = vcvt.s32.f32 %v1175_v45  ;;  %v7636_v45 = vld [vmem:[%s7223_s13 + $0x358] sm:$0xff] }
 0x244   : > { %3132 = vmatmul.bf16.gmra.mxu3 %v1985_v57 }
 0x246   : > { %v2924_v20 = vpop.f32.mrf.mxu2  ;;  %v2588_v47 = vpop.f32.mrf.mxu0 }
 0x247   : > { %v3093_v37 = vpop.f32.mrf.mxu3  ;;  %v2925_v46 = vadd.f32 %v2924_v20, %v2756_v50  ;;  %v2757_v52 = vpop.f32.mrf.mxu1  ;;  %v1992_v20 = vpack.c.bf16 %v1680_v4, %v1672_v42  ;;  %v1686_v42 = vcvt.s32.f32 %v1174_v34  ;;  %v1694_v4 = vcvt.s32.f32 %v1182_v38  ;;  %v7633_v38 = vld [vmem:[%s7223_s13 + $0x350] sm:$0xff] }
 0x248   : > { %v2758_v0 = vadd.f32 %v2757_v52, %v2588_v47  ;;  %v1176_v52 = vunpack.c.2.s8 %v744_v27  ;;  %v1192_v11 = vunpack.c.0.s8 %v7633_v38 }
 0x249   : > { %v7618_v1 = vadd.f32 %v3093_v37, %v2925_v46  ;;  %v1183_v46 = vunpack.c.3.s8 %v743_v24 }
 0x24a   : > { %v1688_v29 = vcvt.s32.f32 %v1176_v52 }
 0x24b   : > { %8529 = vst [vmem:[#allocation29_spill] sm:$0xff] %v7618_v1 }
 0x24e   : > { %v2926_v13 = vpop.f32.mrf.mxu2  ;;  %v2591_v57 = vpop.f32.mrf.mxu0 }
 0x24f   : > { %v3095_v19 = vpop.f32.mrf.mxu3  ;;  %v2927_v43 = vadd.f32 %v2926_v13, %v2758_v0  ;;  %v2760_v50 = vpop.f32.mrf.mxu1  ;;  %v1184_v0 = vunpack.c.3.s8 %v744_v27 }
 0x250   : > { %v2761_v47 = vadd.f32 %v2760_v50, %v2591_v57 }
 0x251   : > { %v7620_v37 = vadd.f32 %v3095_v19, %v2927_v43  ;;  %2630 = vmatmul.bf16.gmra.mxu0 %v1990_v5  ;;  %v1696_v13 = vcvt.s32.f32 %v1184_v0  ;;  %v1697_v19 = vcvt.s32.f32 %v1185_v28 }
 0x252   : > { %2799 = vmatmul.bf16.gmra.mxu1 %v1991_v7  ;;  %v1998_v7 = vpack.c.bf16 %v1694_v4, %v1686_v42  ;;  %v1200_v4 = vunpack.c.1.s8 %v7633_v38 }
 0x253   : > { %8530 = vst [vmem:[#allocation30_spill] sm:$0xff] %v7620_v37  ;;  %2968 = vmatmul.bf16.gmra.mxu2 %v1992_v20  ;;  %v2000_v50 = vpack.c.bf16 %v1696_v13, %v1688_v29  ;;  %v2001_v20 = vpack.c.bf16 %v1697_v19, %v1689_v23 }
 0x254   : > { %3137 = vmatmul.bf16.gmra.mxu3 %v1993_v14  ;;  %v1695_v14 = vcvt.s32.f32 %v1183_v46 }
 0x256   : > { %v2929_v21 = vpop.f32.mrf.mxu2  ;;  %v2593_v10 = vpop.f32.mrf.mxu0  ;;  %v1999_v27 = vpack.c.bf16 %v1695_v14, %v1687_v49  ;;  %v1193_v49 = vunpack.c.0.s8 %v7636_v45  ;;  %v1201_v14 = vunpack.c.1.s8 %v7636_v45 }
 0x257   : > { %v3098_v22 = vpop.f32.mrf.mxu3  ;;  %v2930_v53 = vadd.f32 %v2929_v21, %v2761_v47  ;;  %v2762_v62 = vpop.f32.mrf.mxu1  ;;  %v7627_v21 = vld [vmem:[%s7223_s13 + $0x340] sm:$0xff] }
 0x258   : > { %v2763_v56 = vadd.f32 %v2762_v62, %v2593_v10  ;;  %v1190_v46 = vunpack.c.0.s8 %v7627_v21  ;;  %v1198_v10 = vunpack.c.1.s8 %v7627_v21 }
 0x259   : > { %v7622_v32 = vadd.f32 %v3098_v22, %v2930_v53  ;;  %v7630_v22 = vld [vmem:[%s7223_s13 + $0x348] sm:$0xff] }
 0x25a   : > { %v1191_v62 = vunpack.c.0.s8 %v7630_v22  ;;  %v1199_v0 = vunpack.c.1.s8 %v7630_v22  ;;  %v1702_v23 = vcvt.s32.f32 %v1190_v46  ;;  %v1710_v19 = vcvt.s32.f32 %v1198_v10 }
 0x25b   : > { %8531 = vst [vmem:[#allocation31_spill] sm:$0xff] %v7622_v32 }
 0x25e   : > { %v2931_v24 = vpop.f32.mrf.mxu2  ;;  %v2596_v43 = vpop.f32.mrf.mxu0 }
 0x25f   : > { %v3100_v5 = vpop.f32.mrf.mxu3  ;;  %v2932_v30 = vadd.f32 %v2931_v24, %v2763_v56  ;;  %v2765_v57 = vpop.f32.mrf.mxu1  ;;  %v1703_v24 = vcvt.s32.f32 %v1191_v62  ;;  %v6220_v62 = vld [vmem:[%s7324_s18 + $0x180] sm:$0xff] }
 0x260   : > { %v2766_v47 = vadd.f32 %v2765_v57, %v2596_v43  ;;  %v1713_v43 = vcvt.s32.f32 %v1201_v14  ;;  %3523 = vmatpush.bf16.msrb.mxu2 %v6220_v62  ;;  %v1214_v14 = vunpack.c.3.s8 %v7627_v21 }
 0x261   : > { %v7624_v34 = vadd.f32 %v3100_v5, %v2932_v30  ;;  %2635 = vmatmul.bf16.gmra.mxu0 %v1998_v7  ;;  %v1711_v5 = vcvt.s32.f32 %v1199_v0  ;;  %v1704_v7 = vcvt.s32.f32 %v1192_v11  ;;  %v1705_v30 = vcvt.s32.f32 %v1193_v49  ;;  %v6204_v0 = vld [vmem:[%s7324_s18 + $0x100] sm:$0xff] }
 0x262   : > { %2804 = vmatmul.bf16.gmra.mxu1 %v1999_v27  ;;  %v1712_v27 = vcvt.s32.f32 %v1200_v4  ;;  %v6228_v11 = vld [vmem:[%s7324_s18 + $0x1c0] sm:$0xff]  ;;  %3185 = vmatpush.bf16.msrb.mxu0 %v6204_v0 }
 0x263   : > { %8532 = vst [vmem:[#allocation32_spill] sm:$0xff] %v7624_v34  ;;  %2973 = vmatmul.bf16.gmra.mxu2 %v2000_v50  ;;  %3692 = vmatpush.bf16.msrb.mxu3 %v6228_v11 }
 0x264   : > { %3142 = vmatmul.bf16.gmra.mxu3 %v2001_v20  ;;  %v2006_v20 = vpack.c.bf16 %v1710_v19, %v1702_v23  ;;  %v1208_v23 = vunpack.c.2.s8 %v7633_v38 }
 0x266   : > { %v2934_v52 = vpop.f32.mrf.mxu2  ;;  %v2598_v56 = vpop.f32.mrf.mxu0 }
 0x267   : > { %v3103_v53 = vpop.f32.mrf.mxu3  ;;  %v2935_v28 = vadd.f32 %v2934_v52, %v2766_v47  ;;  %v2767_v42 = vpop.f32.mrf.mxu1  ;;  %v2007_v47 = vpack.c.bf16 %v1711_v5, %v1703_v24 }
 0x268   : > { %v2768_v29 = vadd.f32 %v2767_v42, %v2598_v56  ;;  %v1206_v42 = vunpack.c.2.s8 %v7627_v21  ;;  %v6212_v21 = vld [vmem:[%s7324_s18 + $0x140] sm:$0xff] }
 0x269   : > { %v7646_v13 = vadd.f32 %v3103_v53, %v2935_v28  ;;  %v2008_v53 = vpack.c.bf16 %v1712_v27, %v1704_v7  ;;  %v2009_v28 = vpack.c.bf16 %v1713_v43, %v1705_v30  ;;  %v1216_v7 = vunpack.c.3.s8 %v7633_v38  ;;  %3354 = vmatpush.bf16.msrb.mxu1 %v6212_v21 }
 0x26a   : > { %v1209_v27 = vunpack.c.2.s8 %v7636_v45  ;;  %v1217_v30 = vunpack.c.3.s8 %v7636_v45 }
 0x26b   : > { %8533 = vst [vmem:[#allocation33_spill] sm:$0xff] %v7646_v13 }
 0x26e   : > { %v2936_v57 = vpop.f32.mrf.mxu2  ;;  %v2601_v34 = vpop.f32.mrf.mxu0 }
 0x26f   : > { %v3105_v50 = vpop.f32.mrf.mxu3  ;;  %v2937_v52 = vadd.f32 %v2936_v57, %v2768_v29  ;;  %v2770_v56 = vpop.f32.mrf.mxu1  ;;  %v1215_v29 = vunpack.c.3.s8 %v7630_v22 }
 0x270   : > { %v2771_v46 = vadd.f32 %v2770_v56, %v2601_v34  ;;  %v1207_v34 = vunpack.c.2.s8 %v7630_v22  ;;  %v1728_v56 = vcvt.s32.f32 %v1216_v7 }
 0x271   : > { %v7648_v10 = vadd.f32 %v3105_v50, %v2937_v52  ;;  %2640 = vmatmul.bf16.gmra.mxu0 %v2006_v20  ;;  %v1718_v50 = vcvt.s32.f32 %v1206_v42  ;;  %v1726_v20 = vcvt.s32.f32 %v1214_v14  ;;  %v1727_v22 = vcvt.s32.f32 %v1215_v29  ;;  %v758_v29 = vld [vmem:[%s7223_s13 + $0x380] sm:$0xff] }
 0x272   : > { %2809 = vmatmul.bf16.gmra.mxu1 %v2007_v47  ;;  %v1719_v47 = vcvt.s32.f32 %v1207_v34  ;;  %v1720_v52 = vcvt.s32.f32 %v1208_v23  ;;  %v759_v23 = vld [vmem:[%s7223_s13 + $0x388] sm:$0xff] }
 0x273   : > { %8534 = vst [vmem:[#allocation34_spill] sm:$0xff] %v7648_v10  ;;  %2978 = vmatmul.bf16.gmra.mxu2 %v2008_v53  ;;  %v1721_v53 = vcvt.s32.f32 %v1209_v27  ;;  %v2014_v62 = vpack.c.bf16 %v1726_v20, %v1718_v50  ;;  %v1231_v21 = vunpack.c.1.s8 %v759_v23 }
 0x274   : > { %3147 = vmatmul.bf16.gmra.mxu3 %v2009_v28  ;;  %v1729_v28 = vcvt.s32.f32 %v1217_v30  ;;  %v2015_v45 = vpack.c.bf16 %v1727_v22, %v1719_v47  ;;  %v2016_v42 = vpack.c.bf16 %v1728_v56, %v1720_v52  ;;  %v1230_v30 = vunpack.c.1.s8 %v758_v29 }
 0x276   : > { %v2939_v4 = vpop.f32.mrf.mxu2  ;;  %v2603_v24 = vpop.f32.mrf.mxu0 }
 0x277   : > { %v3108_v49 = vpop.f32.mrf.mxu3  ;;  %v2940_v19 = vadd.f32 %v2939_v4, %v2771_v46  ;;  %v2772_v5 = vpop.f32.mrf.mxu1 }
 0x278   : > { %v2773_v43 = vadd.f32 %v2772_v5, %v2603_v24  ;;  %v761_v24 = vld [vmem:[%s7223_s13 + $0x398] sm:$0xff]  ;;  %v1222_v5 = vunpack.c.0.s8 %v758_v29 }
 0x279   : > { %v7661_v57 = vadd.f32 %v3108_v49, %v2940_v19  ;;  %v2017_v49 = vpack.c.bf16 %v1729_v28, %v1721_v53  ;;  %v760_v19 = vld [vmem:[%s7223_s13 + $0x390] sm:$0xff]  ;;  %v1225_v56 = vunpack.c.0.s8 %v761_v24  ;;  %v1233_v53 = vunpack.c.1.s8 %v761_v24 }
 0x27a   : > { %v1224_v50 = vunpack.c.0.s8 %v760_v19  ;;  %v1232_v52 = vunpack.c.1.s8 %v760_v19 }
 0x27b   : > { %8535 = vst [vmem:[#allocation35_spill] sm:$0xff] %v7661_v57 }
 0x27e   : > { %v2941_v46 = vpop.f32.mrf.mxu2  ;;  %v2606_v11 = vpop.f32.mrf.mxu0 }
 0x27f   : > { %v3110_v38 = vpop.f32.mrf.mxu3  ;;  %v2942_v0 = vadd.f32 %v2941_v46, %v2773_v43  ;;  %v2775_v4 = vpop.f32.mrf.mxu1  ;;  %v1223_v43 = vunpack.c.0.s8 %v759_v23 }
 0x280   : > { %v2776_v14 = vadd.f32 %v2775_v4, %v2606_v11  ;;  %v1736_v11 = vcvt.s32.f32 %v1224_v50  ;;  %v1744_v4 = vcvt.s32.f32 %v1232_v52  ;;  %v1239_v50 = vunpack.c.2.s8 %v759_v23 }
 0x281   : > { %v7664_v34 = vadd.f32 %v3110_v38, %v2942_v0  ;;  %2645 = vmatmul.bf16.gmra.mxu0 %v2014_v62  ;;  %v1734_v38 = vcvt.s32.f32 %v1222_v5  ;;  %v1742_v62 = vcvt.s32.f32 %v1230_v30  ;;  %v1743_v0 = vcvt.s32.f32 %v1231_v21 }
 0x282   : > { %2814 = vmatmul.bf16.gmra.mxu1 %v2015_v45  ;;  %v1735_v45 = vcvt.s32.f32 %v1223_v43  ;;  %v2024_v37 = vpack.c.bf16 %v1744_v4, %v1736_v11  ;;  %v1238_v5 = vunpack.c.2.s8 %v758_v29  ;;  %v1246_v21 = vunpack.c.3.s8 %v758_v29 }
 0x283   : > { %8536 = vst [vmem:[#allocation36_spill] sm:$0xff] %v7664_v34  ;;  %2983 = vmatmul.bf16.gmra.mxu2 %v2016_v42  ;;  %v1737_v42 = vcvt.s32.f32 %v1225_v56  ;;  %v2022_v10 = vpack.c.bf16 %v1742_v62, %v1734_v38  ;;  %v1249_v38 = vunpack.c.3.s8 %v761_v24 }
 0x284   : > { %3152 = vmatmul.bf16.gmra.mxu3 %v2017_v49  ;;  %v1745_v49 = vcvt.s32.f32 %v1233_v53  ;;  %v1248_v53 = vunpack.c.3.s8 %v760_v19 }
 0x286   : > { %v2944_v7 = vpop.f32.mrf.mxu2  ;;  %v2608_v47 = vpop.f32.mrf.mxu0  ;;  %v2025_v1 = vpack.c.bf16 %v1745_v49, %v1737_v42 }
 0x287   : > { %v3113_v27 = vpop.f32.mrf.mxu3  ;;  %v2945_v20 = vadd.f32 %v2944_v7, %v2776_v14  ;;  %v2777_v22 = vpop.f32.mrf.mxu1  ;;  %v2023_v14 = vpack.c.bf16 %v1743_v0, %v1735_v45  ;;  %v1760_v45 = vcvt.s32.f32 %v1248_v53  ;;  %v1761_v0 = vcvt.s32.f32 %v1249_v38 }
 0x288   : > { %v2778_v28 = vadd.f32 %v2777_v22, %v2608_v47  ;;  %v1240_v22 = vunpack.c.2.s8 %v760_v19 }
 0x289   : > { %v7670_v46 = vadd.f32 %v3113_v27, %v2945_v20  ;;  %v1247_v20 = vunpack.c.3.s8 %v759_v23 }
 0x28a   : > { %v1752_v62 = vcvt.s32.f32 %v1240_v22 }
 0x28b   : > { %8537 = vst [vmem:[#allocation37_spill] sm:$0xff] %v7670_v46 }
 0x28e   : > { %v2946_v34 = vpop.f32.mrf.mxu2  ;;  %v2611_v13 = vpop.f32.mrf.mxu0 }
 0x28f   : > { %v3115_v57 = vpop.f32.mrf.mxu3  ;;  %v2947_v7 = vadd.f32 %v2946_v34, %v2778_v28  ;;  %v2780_v32 = vpop.f32.mrf.mxu1  ;;  %v1241_v28 = vunpack.c.2.s8 %v761_v24 }
 0x290   : > { %v2781_v47 = vadd.f32 %v2780_v32, %v2611_v13 }
 0x291   : > { %v7672_v27 = vadd.f32 %v3115_v57, %v2947_v7  ;;  %2650 = vmatmul.bf16.gmra.mxu0 %v2022_v10  ;;  %v1750_v10 = vcvt.s32.f32 %v1238_v5  ;;  %v1758_v57 = vcvt.s32.f32 %v1246_v21  ;;  %v1753_v29 = vcvt.s32.f32 %v1241_v28  ;;  %v768_v21 = vld [vmem:[%s7223_s13 + $0x3d0] sm:$0xff] }
 0x292   : > { %2819 = vmatmul.bf16.gmra.mxu1 %v2023_v14  ;;  %v2032_v14 = vpack.c.bf16 %v1760_v45, %v1752_v62  ;;  %v1256_v28 = vunpack.c.0.s8 %v768_v21 }
 0x293   : > { %8538 = vst [vmem:[#allocation38_spill] sm:$0xff] %v7672_v27  ;;  %2988 = vmatmul.bf16.gmra.mxu2 %v2024_v37  ;;  %v1751_v37 = vcvt.s32.f32 %v1239_v50  ;;  %v2030_v4 = vpack.c.bf16 %v1758_v57, %v1750_v10  ;;  %v2033_v7 = vpack.c.bf16 %v1761_v0, %v1753_v29  ;;  %v769_v50 = vld [vmem:[%s7223_s13 + $0x3d8] sm:$0xff]  ;;  %v1264_v57 = vunpack.c.1.s8 %v768_v21 }
 0x294   : > { %3157 = vmatmul.bf16.gmra.mxu3 %v2025_v1  ;;  %v1759_v1 = vcvt.s32.f32 %v1247_v20 }
 0x296   : > { %v2949_v30 = vpop.f32.mrf.mxu2  ;;  %v2613_v34 = vpop.f32.mrf.mxu0  ;;  %v2031_v19 = vpack.c.bf16 %v1759_v1, %v1751_v37  ;;  %v1257_v37 = vunpack.c.0.s8 %v769_v50  ;;  %v1265_v1 = vunpack.c.1.s8 %v769_v50 }
 0x297   : > { %v3118_v43 = vpop.f32.mrf.mxu3  ;;  %v2950_v52 = vadd.f32 %v2949_v30, %v2781_v47  ;;  %v2782_v56 = vpop.f32.mrf.mxu1  ;;  %v766_v30 = vld [vmem:[%s7223_s13 + $0x3c0] sm:$0xff] }
 0x298   : > { %v2783_v32 = vadd.f32 %v2782_v56, %v2613_v34  ;;  %v1254_v20 = vunpack.c.0.s8 %v766_v30  ;;  %v1262_v34 = vunpack.c.1.s8 %v766_v30 }
 0x299   : > { %v7674_v13 = vadd.f32 %v3118_v43, %v2950_v52  ;;  %v767_v43 = vld [vmem:[%s7223_s13 + $0x3c8] sm:$0xff] }
 0x29a   : > { %v1255_v56 = vunpack.c.0.s8 %v767_v43  ;;  %v1263_v53 = vunpack.c.1.s8 %v767_v43  ;;  %v1766_v29 = vcvt.s32.f32 %v1254_v20  ;;  %v1774_v0 = vcvt.s32.f32 %v1262_v34 }
 0x29b   : > { %8539 = vst [vmem:[#allocation39_spill] sm:$0xff] %v7674_v13  ;;  %v1270_v20 = vunpack.c.2.s8 %v766_v30 }
 0x29e   : > { %v2951_v23 = vpop.f32.mrf.mxu2  ;;  %v2616_v42 = vpop.f32.mrf.mxu0 }
 0x29f   : > { %v3120_v11 = vpop.f32.mrf.mxu3  ;;  %v2952_v24 = vadd.f32 %v2951_v23, %v2783_v32  ;;  %v2785_v49 = vpop.f32.mrf.mxu1  ;;  %v1767_v23 = vcvt.s32.f32 %v1255_v56 }
 0x2a0   : > { %v2786_v47 = vadd.f32 %v2785_v49, %v2616_v42  ;;  %v1777_v42 = vcvt.s32.f32 %v1265_v1 }
 0x2a1   : > { %v7676_v5 = vadd.f32 %v3120_v11, %v2952_v24  ;;  %2655 = vmatmul.bf16.gmra.mxu0 %v2030_v4  ;;  %v1775_v11 = vcvt.s32.f32 %v1263_v53  ;;  %v1768_v4 = vcvt.s32.f32 %v1256_v28  ;;  %v1769_v24 = vcvt.s32.f32 %v1257_v37 }
 0x2a2   : > { %2824 = vmatmul.bf16.gmra.mxu1 %v2031_v19  ;;  %v1776_v19 = vcvt.s32.f32 %v1264_v57  ;;  %v1278_v53 = vunpack.c.3.s8 %v766_v30  ;;  %v1271_v28 = vunpack.c.2.s8 %v767_v43 }
 0x2a3   : > { %8540 = vst [vmem:[#allocation40_spill] sm:$0xff] %v7676_v5  ;;  %2993 = vmatmul.bf16.gmra.mxu2 %v2032_v14  ;;  %v2041_v46 = vpack.c.bf16 %v1777_v42, %v1769_v24 }
 0x2a4   : > { %3162 = vmatmul.bf16.gmra.mxu3 %v2033_v7  ;;  %v2038_v7 = vpack.c.bf16 %v1774_v0, %v1766_v29  ;;  %v2040_v27 = vpack.c.bf16 %v1776_v19, %v1768_v4  ;;  %v1273_v29 = vunpack.c.2.s8 %v769_v50  ;;  %v1281_v0 = vunpack.c.3.s8 %v769_v50 }
 0x2a6   : > { %v2954_v22 = vpop.f32.mrf.mxu2  ;;  %v2618_v32 = vpop.f32.mrf.mxu0  ;;  %v1785_v30 = vcvt.s32.f32 %v1273_v29  ;;  %v1793_v24 = vcvt.s32.f32 %v1281_v0 }
 0x2a7   : > { %v3123_v52 = vpop.f32.mrf.mxu3  ;;  %v2955_v38 = vadd.f32 %v2954_v22, %v2786_v47  ;;  %v2787_v10 = vpop.f32.mrf.mxu1  ;;  %v2039_v47 = vpack.c.bf16 %v1775_v11, %v1767_v23  ;;  %v1782_v23 = vcvt.s32.f32 %v1270_v20  ;;  %v1790_v11 = vcvt.s32.f32 %v1278_v53  ;;  %v652_v53 = vld [vmem:[%s7223_s13 + $0x30] sm:$0xff] }
 0x2a8   : > { %v2788_v62 = vadd.f32 %v2787_v10, %v2618_v32  ;;  %v1272_v10 = vunpack.c.2.s8 %v768_v21  ;;  %v780_v29 = vunpack.c.0.s8 %v652_v53 }
 0x2a9   : > { %v7682_v45 = vadd.f32 %v3123_v52, %v2955_v38  ;;  %v1279_v38 = vunpack.c.3.s8 %v767_v43 }
 0x2aa   : > { %v1784_v4 = vcvt.s32.f32 %v1272_v10 }
 0x2ab   : > { %8541 = vst [vmem:[#allocation41_spill] sm:$0xff] %v7682_v45 }
 0x2ae   : > { %v2956_v49 = vpop.f32.mrf.mxu2  ;;  %v2621_v5 = vpop.f32.mrf.mxu0 }
 0x2af   : > { %v3125_v14 = vpop.f32.mrf.mxu3  ;;  %v2957_v22 = vadd.f32 %v2956_v49, %v2788_v62  ;;  %v2790_v13 = vpop.f32.mrf.mxu1  ;;  %v1280_v62 = vunpack.c.3.s8 %v768_v21  ;;  %v2046_v49 = vpack.c.bf16 %v1790_v11, %v1782_v23  ;;  %v788_v11 = vunpack.c.1.s8 %v652_v53 }
 0x2b0   : > { %v2791_v32 = vadd.f32 %v2790_v13, %v2621_v5 }
 0x2b1   : > { %v7684_v52 = vadd.f32 %v3125_v14, %v2957_v22  ;;  %2660 = vmatmul.bf16.gmra.mxu0 %v2038_v7  ;;  %v1792_v19 = vcvt.s32.f32 %v1280_v62  ;;  %v2049_v22 = vpack.c.bf16 %v1793_v24, %v1785_v30 }
 0x2b2   : > { %2829 = vmatmul.bf16.gmra.mxu1 %v2039_v47 }
 0x2b3   : > { %8542 = vst [vmem:[#allocation42_spill] sm:$0xff] %v7684_v52  ;;  %2998 = vmatmul.bf16.gmra.mxu2 %v2040_v27  ;;  %v1783_v27 = vcvt.s32.f32 %v1271_v28  ;;  %v2048_v47 = vpack.c.bf16 %v1792_v19, %v1784_v4  ;;  %v653_v28 = vld [vmem:[%s7223_s13 + $0x38] sm:$0xff] }
 0x2b4   : > { %3167 = vmatmul.bf16.gmra.mxu3 %v2041_v46  ;;  %v1791_v46 = vcvt.s32.f32 %v1279_v38 }
 0x2b6   : > { %v2959_v34 = vpop.f32.mrf.mxu2  ;;  %v2623_v37 = vpop.f32.mrf.mxu0  ;;  %v2047_v21 = vpack.c.bf16 %v1791_v46, %v1783_v27  ;;  %v781_v27 = vunpack.c.0.s8 %v653_v28  ;;  %v789_v46 = vunpack.c.1.s8 %v653_v28 }
 0x2b7   : > { %v3128_v56 = vpop.f32.mrf.mxu3  ;;  %v2960_v57 = vadd.f32 %v2959_v34, %v2791_v32  ;;  %v2792_v1 = vpop.f32.mrf.mxu1  ;;  %v650_v34 = vld [vmem:[%s7223_s13 + $0x20] sm:$0xff] }
 0x2b8   : > { %v2793_v13 = vadd.f32 %v2792_v1, %v2623_v37  ;;  %v778_v38 = vunpack.c.0.s8 %v650_v34  ;;  %v786_v37 = vunpack.c.1.s8 %v650_v34 }
 0x2b9   : > { %v7686_v5 = vadd.f32 %v3128_v56, %v2960_v57  ;;  %v651_v56 = vld [vmem:[%s7223_s13 + $0x28] sm:$0xff] }
 0x2ba   : > { %v779_v1 = vunpack.c.0.s8 %v651_v56  ;;  %v787_v62 = vunpack.c.1.s8 %v651_v56  ;;  %v1290_v30 = vcvt.s32.f32 %v778_v38  ;;  %v1298_v24 = vcvt.s32.f32 %v786_v37 }
 0x2bb   : > { %8543 = vst [vmem:[#allocation43_spill] sm:$0xff] %v7686_v5  ;;  %v794_v38 = vunpack.c.2.s8 %v650_v34 }
 0x2be   : > { %v2961_v43 = vpop.f32.mrf.mxu2  ;;  %v2626_v14 = vpop.f32.mrf.mxu0 }
 0x2bf   : > { %v3130_v42 = vpop.f32.mrf.mxu3  ;;  %v2962_v50 = vadd.f32 %v2961_v43, %v2793_v13  ;;  %v2795_v7 = vpop.f32.mrf.mxu1  ;;  %v1291_v43 = vcvt.s32.f32 %v779_v1 }
 0x2c0   : > { %v2796_v32 = vadd.f32 %v2795_v7, %v2626_v14  ;;  %v1301_v14 = vcvt.s32.f32 %v789_v46 }
 0x2c1   : > { %v7688_v20 = vadd.f32 %v3130_v42, %v2962_v50  ;;  %2665 = vmatmul.bf16.gmra.mxu0 %v2046_v49  ;;  %v1299_v42 = vcvt.s32.f32 %v787_v62  ;;  %v1292_v49 = vcvt.s32.f32 %v780_v29  ;;  %v1293_v50 = vcvt.s32.f32 %v781_v27 }
 0x2c2   : > { %2834 = vmatmul.bf16.gmra.mxu1 %v2047_v21  ;;  %v1300_v21 = vcvt.s32.f32 %v788_v11  ;;  %v802_v62 = vunpack.c.3.s8 %v650_v34  ;;  %v795_v29 = vunpack.c.2.s8 %v651_v56 }
 0x2c3   : > { %8544 = vst [vmem:[#allocation44_spill] sm:$0xff] %v7688_v20  ;;  %3003 = vmatmul.bf16.gmra.mxu2 %v2048_v47  ;;  %v1805_v45 = vpack.c.bf16 %v1301_v14, %v1293_v50 }
 0x2c4   : > { %3172 = vmatmul.bf16.gmra.mxu3 %v2049_v22  ;;  %v1802_v22 = vpack.c.bf16 %v1298_v24, %v1290_v30  ;;  %v1804_v52 = vpack.c.bf16 %v1300_v21, %v1292_v49  ;;  %v797_v30 = vunpack.c.2.s8 %v653_v28  ;;  %v805_v24 = vunpack.c.3.s8 %v653_v28 }
 0x2c6   : > { %v2964_v10 = vpop.f32.mrf.mxu2  ;;  %v2628_v13 = vpop.f32.mrf.mxu0  ;;  %v1309_v34 = vcvt.s32.f32 %v797_v30  ;;  %v1317_v50 = vcvt.s32.f32 %v805_v24 }
 0x2c7   : > { %v3133_v57 = vpop.f32.mrf.mxu3  ;;  %v2965_v0 = vadd.f32 %v2964_v10, %v2796_v32  ;;  %v2797_v23 = vpop.f32.mrf.mxu1  ;;  %v1803_v32 = vpack.c.bf16 %v1299_v42, %v1291_v43  ;;  %v1306_v43 = vcvt.s32.f32 %v794_v38  ;;  %v1314_v42 = vcvt.s32.f32 %v802_v62  ;;  %v660_v62 = vld [vmem:[%s7223_s13 + $0x70] sm:$0xff] }
 0x2c8   : > { %v2798_v4 = vadd.f32 %v2797_v23, %v2628_v13  ;;  %v796_v23 = vunpack.c.2.s8 %v652_v53  ;;  %v812_v30 = vunpack.c.0.s8 %v660_v62 }
 0x2c9   : > { %v7694_v19 = vadd.f32 %v3133_v57, %v2965_v0  ;;  %v803_v0 = vunpack.c.3.s8 %v651_v56 }
 0x2ca   : > { %v1308_v49 = vcvt.s32.f32 %v796_v23 }
 0x2cb   : > { %8545 = vst [vmem:[#allocation45_spill] sm:$0xff] %v7694_v19 }
 0x2ce   : > { %v2966_v7 = vpop.f32.mrf.mxu2  ;;  %v2631_v20 = vpop.f32.mrf.mxu0 }
 0x2cf   : > { %v3135_v47 = vpop.f32.mrf.mxu3  ;;  %v2967_v10 = vadd.f32 %v2966_v7, %v2798_v4  ;;  %v2800_v5 = vpop.f32.mrf.mxu1  ;;  %v804_v4 = vunpack.c.3.s8 %v652_v53  ;;  %v1810_v7 = vpack.c.bf16 %v1314_v42, %v1306_v43  ;;  %v820_v42 = vunpack.c.1.s8 %v660_v62 }
 0x2d0   : > { %v2801_v13 = vadd.f32 %v2800_v5, %v2631_v20 }
 0x2d1   : > { %v7696_v57 = vadd.f32 %v3135_v47, %v2967_v10  ;;  %3186 = vmatmul.bf16.vlgmr.msrb.gmra.mxu0 %v1802_v22  ;;  %v1316_v21 = vcvt.s32.f32 %v804_v4  ;;  %v1813_v10 = vpack.c.bf16 %v1317_v50, %v1309_v34 }
 0x2d2   : > { %3355 = vmatmul.bf16.vlgmr.msrb.gmra.mxu1 %v1803_v32 }
 0x2d3   : > { %8546 = vst [vmem:[#allocation46_spill] sm:$0xff] %v7696_v57  ;;  %3524 = vmatmul.bf16.vlgmr.msrb.gmra.mxu2 %v1804_v52  ;;  %v1307_v52 = vcvt.s32.f32 %v795_v29  ;;  %v1812_v32 = vpack.c.bf16 %v1316_v21, %v1308_v49  ;;  %v661_v29 = vld [vmem:[%s7223_s13 + $0x78] sm:$0xff] }
 0x2d4   : > { %3693 = vmatmul.bf16.vlgmr.msrb.gmra.mxu3 %v1805_v45  ;;  %v1315_v45 = vcvt.s32.f32 %v803_v0 }
 0x2d6   : > { %v2969_v37 = vpop.f32.mrf.mxu2  ;;  %v2633_v27 = vpop.f32.mrf.mxu0  ;;  %v1811_v53 = vpack.c.bf16 %v1315_v45, %v1307_v52  ;;  %v813_v52 = vunpack.c.0.s8 %v661_v29  ;;  %v821_v45 = vunpack.c.1.s8 %v661_v29 }
 0x2d7   : > { %v3138_v1 = vpop.f32.mrf.mxu3  ;;  %v2970_v11 = vadd.f32 %v2969_v37, %v2801_v13  ;;  %v2802_v46 = vpop.f32.mrf.mxu1  ;;  %v658_v37 = vld [vmem:[%s7223_s13 + $0x60] sm:$0xff] }
 0x2d8   : > { %v2803_v5 = vadd.f32 %v2802_v46, %v2633_v27  ;;  %v810_v0 = vunpack.c.0.s8 %v658_v37  ;;  %v818_v27 = vunpack.c.1.s8 %v658_v37 }
 0x2d9   : > { %v7698_v20 = vadd.f32 %v3138_v1, %v2970_v11  ;;  %v659_v1 = vld [vmem:[%s7223_s13 + $0x68] sm:$0xff] }
 0x2da   : > { %v811_v46 = vunpack.c.0.s8 %v659_v1  ;;  %v819_v4 = vunpack.c.1.s8 %v659_v1  ;;  %v1322_v34 = vcvt.s32.f32 %v810_v0  ;;  %v1330_v50 = vcvt.s32.f32 %v818_v27 }
 0x2db   : > { %8547 = vst [vmem:[#allocation47_spill] sm:$0xff] %v7698_v20  ;;  %v826_v0 = vunpack.c.2.s8 %v658_v37 }
 0x2de   : > { %v2971_v56 = vpop.f32.mrf.mxu2  ;;  %v2636_v47 = vpop.f32.mrf.mxu0 }
 0x2df   : > { %v3140_v14 = vpop.f32.mrf.mxu3  ;;  %v2972_v28 = vadd.f32 %v2971_v56, %v2803_v5  ;;  %v2805_v22 = vpop.f32.mrf.mxu1  ;;  %v1323_v56 = vcvt.s32.f32 %v811_v46 }
 0x2e0   : > { %v2806_v13 = vadd.f32 %v2805_v22, %v2636_v47  ;;  %v1333_v47 = vcvt.s32.f32 %v821_v45 }
 0x2e1   : > { %v7700_v38 = vadd.f32 %v3140_v14, %v2972_v28  ;;  %3191 = vmatmul.bf16.gmra.mxu0 %v1810_v7  ;;  %v1331_v14 = vcvt.s32.f32 %v819_v4  ;;  %v1324_v7 = vcvt.s32.f32 %v812_v30  ;;  %v1325_v28 = vcvt.s32.f32 %v813_v52 }
 0x2e2   : > { %3360 = vmatmul.bf16.gmra.mxu1 %v1811_v53  ;;  %v1332_v53 = vcvt.s32.f32 %v820_v42  ;;  %v834_v4 = vunpack.c.3.s8 %v658_v37  ;;  %v827_v30 = vunpack.c.2.s8 %v659_v1 }
 0x2e3   : > { %8548 = vst [vmem:[#allocation48_spill] sm:$0xff] %v7700_v38  ;;  %3529 = vmatmul.bf16.gmra.mxu2 %v1812_v32  ;;  %v1821_v19 = vpack.c.bf16 %v1333_v47, %v1325_v28 }
 0x2e4   : > { %3698 = vmatmul.bf16.gmra.mxu3 %v1813_v10  ;;  %v1818_v10 = vpack.c.bf16 %v1330_v50, %v1322_v34  ;;  %v1820_v57 = vpack.c.bf16 %v1332_v53, %v1324_v7  ;;  %v829_v34 = vunpack.c.2.s8 %v661_v29  ;;  %v837_v50 = vunpack.c.3.s8 %v661_v29 }
 0x2e6   : > { %v2974_v23 = vpop.f32.mrf.mxu2  ;;  %v2638_v5 = vpop.f32.mrf.mxu0  ;;  %v1341_v37 = vcvt.s32.f32 %v829_v34  ;;  %v1349_v28 = vcvt.s32.f32 %v837_v50 }
 0x2e7   : > { %v3143_v11 = vpop.f32.mrf.mxu3  ;;  %v2975_v24 = vadd.f32 %v2974_v23, %v2806_v13  ;;  %v2807_v43 = vpop.f32.mrf.mxu1  ;;  %v1819_v13 = vpack.c.bf16 %v1331_v14, %v1323_v56  ;;  %v1338_v56 = vcvt.s32.f32 %v826_v0  ;;  %v1346_v14 = vcvt.s32.f32 %v834_v4  ;;  %v668_v4 = vld [vmem:[%s7223_s13 + $0xb0] sm:$0xff] }
 0x2e8   : > { %v2808_v49 = vadd.f32 %v2807_v43, %v2638_v5  ;;  %v828_v43 = vunpack.c.2.s8 %v660_v62  ;;  %v844_v34 = vunpack.c.0.s8 %v668_v4 }
 0x2e9   : > { %v7706_v21 = vadd.f32 %v3143_v11, %v2975_v24  ;;  %v835_v24 = vunpack.c.3.s8 %v659_v1 }
 0x2ea   : > { %v1340_v7 = vcvt.s32.f32 %v828_v43 }
 0x2eb   : > { %8549 = vst [vmem:[#allocation49_spill] sm:$0xff] %v7706_v21 }
 0x2ee   : > { %v2976_v22 = vpop.f32.mrf.mxu2  ;;  %v2641_v38 = vpop.f32.mrf.mxu0 }
 0x2ef   : > { %v3145_v32 = vpop.f32.mrf.mxu3  ;;  %v2977_v23 = vadd.f32 %v2976_v22, %v2808_v49  ;;  %v2810_v20 = vpop.f32.mrf.mxu1  ;;  %v836_v49 = vunpack.c.3.s8 %v660_v62  ;;  %v1826_v22 = vpack.c.bf16 %v1346_v14, %v1338_v56  ;;  %v852_v14 = vunpack.c.1.s8 %v668_v4 }
 0x2f0   : > { %v2811_v5 = vadd.f32 %v2810_v20, %v2641_v38 }
 0x2f1   : > { %v7708_v11 = vadd.f32 %v3145_v32, %v2977_v23  ;;  %3196 = vmatmul.bf16.gmra.mxu0 %v1818_v10  ;;  %v1348_v53 = vcvt.s32.f32 %v836_v49  ;;  %v1829_v23 = vpack.c.bf16 %v1349_v28, %v1341_v37 }
 0x2f2   : > { %3365 = vmatmul.bf16.gmra.mxu1 %v1819_v13 }
 0x2f3   : > { %8550 = vst [vmem:[#allocation50_spill] sm:$0xff] %v7708_v11  ;;  %3534 = vmatmul.bf16.gmra.mxu2 %v1820_v57  ;;  %v1339_v57 = vcvt.s32.f32 %v827_v30  ;;  %v1828_v13 = vpack.c.bf16 %v1348_v53, %v1340_v7  ;;  %v669_v30 = vld [vmem:[%s7223_s13 + $0xb8] sm:$0xff] }
 0x2f4   : > { %3703 = vmatmul.bf16.gmra.mxu3 %v1821_v19  ;;  %v1347_v19 = vcvt.s32.f32 %v835_v24 }
 0x2f6   : > { %v2979_v27 = vpop.f32.mrf.mxu2  ;;  %v2643_v52 = vpop.f32.mrf.mxu0  ;;  %v1827_v62 = vpack.c.bf16 %v1347_v19, %v1339_v57  ;;  %v845_v57 = vunpack.c.0.s8 %v669_v30  ;;  %v853_v19 = vunpack.c.1.s8 %v669_v30 }
 0x2f7   : > { %v3148_v46 = vpop.f32.mrf.mxu3  ;;  %v2980_v42 = vadd.f32 %v2979_v27, %v2811_v5  ;;  %v2812_v45 = vpop.f32.mrf.mxu1  ;;  %v666_v27 = vld [vmem:[%s7223_s13 + $0xa0] sm:$0xff] }
 0x2f8   : > { %v2813_v20 = vadd.f32 %v2812_v45, %v2643_v52  ;;  %v842_v24 = vunpack.c.0.s8 %v666_v27  ;;  %v850_v52 = vunpack.c.1.s8 %v666_v27 }
 0x2f9   : > { %v7710_v38 = vadd.f32 %v3148_v46, %v2980_v42  ;;  %v667_v46 = vld [vmem:[%s7223_s13 + $0xa8] sm:$0xff] }
 0x2fa   : > { %v843_v45 = vunpack.c.0.s8 %v667_v46  ;;  %v851_v49 = vunpack.c.1.s8 %v667_v46  ;;  %v1354_v37 = vcvt.s32.f32 %v842_v24  ;;  %v1362_v28 = vcvt.s32.f32 %v850_v52 }
 0x2fb   : > { %8551 = vst [vmem:[#allocation51_spill] sm:$0xff] %v7710_v38  ;;  %v858_v24 = vunpack.c.2.s8 %v666_v27 }
 0x2fe   : > { %v2981_v1 = vpop.f32.mrf.mxu2  ;;  %v2646_v32 = vpop.f32.mrf.mxu0 }
 0x2ff   : > { %v3150_v47 = vpop.f32.mrf.mxu3  ;;  %v2982_v29 = vadd.f32 %v2981_v1, %v2813_v20  ;;  %v2815_v10 = vpop.f32.mrf.mxu1  ;;  %v1355_v1 = vcvt.s32.f32 %v843_v45 }
 0x300   : > { %v2816_v5 = vadd.f32 %v2815_v10, %v2646_v32  ;;  %v1365_v32 = vcvt.s32.f32 %v853_v19 }
 0x301   : > { %v7712_v0 = vadd.f32 %v3150_v47, %v2982_v29  ;;  %3201 = vmatmul.bf16.gmra.mxu0 %v1826_v22  ;;  %v1363_v47 = vcvt.s32.f32 %v851_v49  ;;  %v1356_v22 = vcvt.s32.f32 %v844_v34  ;;  %v1357_v29 = vcvt.s32.f32 %v845_v57 }
 0x302   : > { %3370 = vmatmul.bf16.gmra.mxu1 %v1827_v62  ;;  %v1364_v62 = vcvt.s32.f32 %v852_v14  ;;  %v866_v49 = vunpack.c.3.s8 %v666_v27  ;;  %v859_v34 = vunpack.c.2.s8 %v667_v46 }
 0x303   : > { %8552 = vst [vmem:[#allocation52_spill] sm:$0xff] %v7712_v0  ;;  %3539 = vmatmul.bf16.gmra.mxu2 %v1828_v13  ;;  %v1837_v21 = vpack.c.bf16 %v1365_v32, %v1357_v29 }
 0x304   : > { %3708 = vmatmul.bf16.gmra.mxu3 %v1829_v23  ;;  %v1834_v23 = vpack.c.bf16 %v1362_v28, %v1354_v37  ;;  %v1836_v11 = vpack.c.bf16 %v1364_v62, %v1356_v22  ;;  %v861_v37 = vunpack.c.2.s8 %v669_v30  ;;  %v869_v28 = vunpack.c.3.s8 %v669_v30 }
 0x306   : > { %v2984_v43 = vpop.f32.mrf.mxu2  ;;  %v2648_v20 = vpop.f32.mrf.mxu0  ;;  %v1373_v27 = vcvt.s32.f32 %v861_v37  ;;  %v1381_v29 = vcvt.s32.f32 %v869_v28 }
 0x307   : > { %v3153_v42 = vpop.f32.mrf.mxu3  ;;  %v2985_v50 = vadd.f32 %v2984_v43, %v2816_v5  ;;  %v2817_v56 = vpop.f32.mrf.mxu1  ;;  %v1835_v5 = vpack.c.bf16 %v1363_v47, %v1355_v1  ;;  %v1370_v1 = vcvt.s32.f32 %v858_v24  ;;  %v1378_v47 = vcvt.s32.f32 %v866_v49  ;;  %v676_v49 = vld [vmem:[%s7223_s13 + $0xf0] sm:$0xff] }
 0x308   : > { %v2818_v7 = vadd.f32 %v2817_v56, %v2648_v20  ;;  %v860_v56 = vunpack.c.2.s8 %v668_v4  ;;  %v876_v37 = vunpack.c.0.s8 %v676_v49 }
 0x309   : > { %v7718_v53 = vadd.f32 %v3153_v42, %v2985_v50  ;;  %v867_v50 = vunpack.c.3.s8 %v667_v46 }
 0x30a   : > { %v1372_v22 = vcvt.s32.f32 %v860_v56 }
 0x30b   : > { %8553 = vst [vmem:[#allocation53_spill] sm:$0xff] %v7718_v53 }
 0x30e   : > { %v2986_v10 = vpop.f32.mrf.mxu2  ;;  %v2651_v0 = vpop.f32.mrf.mxu0 }
 0x30f   : > { %v3155_v13 = vpop.f32.mrf.mxu3  ;;  %v2987_v43 = vadd.f32 %v2986_v10, %v2818_v7  ;;  %v2820_v38 = vpop.f32.mrf.mxu1  ;;  %v868_v7 = vunpack.c.3.s8 %v668_v4  ;;  %v1842_v10 = vpack.c.bf16 %v1378_v47, %v1370_v1  ;;  %v884_v47 = vunpack.c.1.s8 %v676_v49 }
 0x310   : > { %v2821_v20 = vadd.f32 %v2820_v38, %v2651_v0 }
 0x311   : > { %v7720_v42 = vadd.f32 %v3155_v13, %v2987_v43  ;;  %3206 = vmatmul.bf16.gmra.mxu0 %v1834_v23  ;;  %v1380_v62 = vcvt.s32.f32 %v868_v7  ;;  %v1845_v43 = vpack.c.bf16 %v1381_v29, %v1373_v27 }
 0x312   : > { %3375 = vmatmul.bf16.gmra.mxu1 %v1835_v5 }
 0x313   : > { %8554 = vst [vmem:[#allocation54_spill] sm:$0xff] %v7720_v42  ;;  %3544 = vmatmul.bf16.gmra.mxu2 %v1836_v11  ;;  %v1371_v11 = vcvt.s32.f32 %v859_v34  ;;  %v1844_v5 = vpack.c.bf16 %v1380_v62, %v1372_v22  ;;  %v677_v34 = vld [vmem:[%s7223_s13 + $0xf8] sm:$0xff] }
 0x314   : > { %3713 = vmatmul.bf16.gmra.mxu3 %v1837_v21  ;;  %v1379_v21 = vcvt.s32.f32 %v867_v50 }
 0x316   : > { %v2989_v52 = vpop.f32.mrf.mxu2  ;;  %v2653_v57 = vpop.f32.mrf.mxu0  ;;  %v1843_v4 = vpack.c.bf16 %v1379_v21, %v1371_v11  ;;  %v877_v11 = vunpack.c.0.s8 %v677_v34  ;;  %v885_v21 = vunpack.c.1.s8 %v677_v34 }
 0x317   : > { %v3158_v45 = vpop.f32.mrf.mxu3  ;;  %v2990_v14 = vadd.f32 %v2989_v52, %v2821_v20  ;;  %v2822_v19 = vpop.f32.mrf.mxu1  ;;  %v674_v52 = vld [vmem:[%s7223_s13 + $0xe0] sm:$0xff] }
 0x318   : > { %v2823_v38 = vadd.f32 %v2822_v19, %v2653_v57  ;;  %v874_v50 = vunpack.c.0.s8 %v674_v52  ;;  %v882_v57 = vunpack.c.1.s8 %v674_v52 }
 0x319   : > { %v7722_v0 = vadd.f32 %v3158_v45, %v2990_v14  ;;  %v675_v45 = vld [vmem:[%s7223_s13 + $0xe8] sm:$0xff] }
 0x31a   : > { %v875_v19 = vunpack.c.0.s8 %v675_v45  ;;  %v883_v7 = vunpack.c.1.s8 %v675_v45  ;;  %v1386_v27 = vcvt.s32.f32 %v874_v50  ;;  %v1394_v29 = vcvt.s32.f32 %v882_v57 }
 0x31b   : > { %8555 = vst [vmem:[#allocation55_spill] sm:$0xff] %v7722_v0  ;;  %v890_v50 = vunpack.c.2.s8 %v674_v52 }
 0x31e   : > { %v2991_v46 = vpop.f32.mrf.mxu2  ;;  %v2656_v13 = vpop.f32.mrf.mxu0 }
 0x31f   : > { %v3160_v32 = vpop.f32.mrf.mxu3  ;;  %v2992_v30 = vadd.f32 %v2991_v46, %v2823_v38  ;;  %v2825_v23 = vpop.f32.mrf.mxu1  ;;  %v1387_v46 = vcvt.s32.f32 %v875_v19 }
 0x320   : > { %v2826_v20 = vadd.f32 %v2825_v23, %v2656_v13  ;;  %v1397_v13 = vcvt.s32.f32 %v885_v21 }
 0x321   : > { %v7724_v24 = vadd.f32 %v3160_v32, %v2992_v30  ;;  %3211 = vmatmul.bf16.gmra.mxu0 %v1842_v10  ;;  %v1395_v32 = vcvt.s32.f32 %v883_v7  ;;  %v1388_v10 = vcvt.s32.f32 %v876_v37  ;;  %v1389_v30 = vcvt.s32.f32 %v877_v11 }
 0x322   : > { %3380 = vmatmul.bf16.gmra.mxu1 %v1843_v4  ;;  %v1396_v4 = vcvt.s32.f32 %v884_v47  ;;  %v898_v7 = vunpack.c.3.s8 %v674_v52  ;;  %v891_v37 = vunpack.c.2.s8 %v675_v45 }
 0x323   : > { %8556 = vst [vmem:[#allocation56_spill] sm:$0xff] %v7724_v24  ;;  %3549 = vmatmul.bf16.gmra.mxu2 %v1844_v5  ;;  %v1853_v53 = vpack.c.bf16 %v1397_v13, %v1389_v30 }
 0x324   : > { %3718 = vmatmul.bf16.gmra.mxu3 %v1845_v43  ;;  %v1850_v43 = vpack.c.bf16 %v1394_v29, %v1386_v27  ;;  %v1852_v42 = vpack.c.bf16 %v1396_v4, %v1388_v10  ;;  %v893_v27 = vunpack.c.2.s8 %v677_v34  ;;  %v901_v29 = vunpack.c.3.s8 %v677_v34 }
 0x326   : > { %v2994_v56 = vpop.f32.mrf.mxu2  ;;  %v2658_v38 = vpop.f32.mrf.mxu0  ;;  %v1405_v52 = vcvt.s32.f32 %v893_v27  ;;  %v1413_v30 = vcvt.s32.f32 %v901_v29 }
 0x327   : > { %v3163_v14 = vpop.f32.mrf.mxu3  ;;  %v2995_v28 = vadd.f32 %v2994_v56, %v2826_v20  ;;  %v2827_v1 = vpop.f32.mrf.mxu1  ;;  %v1851_v20 = vpack.c.bf16 %v1395_v32, %v1387_v46  ;;  %v1402_v46 = vcvt.s32.f32 %v890_v50  ;;  %v1410_v32 = vcvt.s32.f32 %v898_v7  ;;  %v7741_v7 = vld [vmem:[%s7223_s13 + $0x130] sm:$0xff] }
 0x328   : > { %v2828_v22 = vadd.f32 %v2827_v1, %v2658_v38  ;;  %v892_v1 = vunpack.c.2.s8 %v676_v49  ;;  %v908_v27 = vunpack.c.0.s8 %v7741_v7 }
 0x329   : > { %v7730_v62 = vadd.f32 %v3163_v14, %v2995_v28  ;;  %v899_v28 = vunpack.c.3.s8 %v675_v45 }
 0x32a   : > { %v1404_v10 = vcvt.s32.f32 %v892_v1 }
 0x32b   : > { %8557 = vst [vmem:[#allocation57_spill] sm:$0xff] %v7730_v62 }
 0x32e   : > { %v2996_v23 = vpop.f32.mrf.mxu2  ;;  %v2661_v24 = vpop.f32.mrf.mxu0 }
 0x32f   : > { %v3165_v5 = vpop.f32.mrf.mxu3  ;;  %v2997_v56 = vadd.f32 %v2996_v23, %v2828_v22  ;;  %v2830_v0 = vpop.f32.mrf.mxu1  ;;  %v900_v22 = vunpack.c.3.s8 %v676_v49  ;;  %v1858_v23 = vpack.c.bf16 %v1410_v32, %v1402_v46  ;;  %v916_v32 = vunpack.c.1.s8 %v7741_v7 }
 0x330   : > { %v2831_v38 = vadd.f32 %v2830_v0, %v2661_v24 }
 0x331   : > { %v7732_v14 = vadd.f32 %v3165_v5, %v2997_v56  ;;  %3216 = vmatmul.bf16.gmra.mxu0 %v1850_v43  ;;  %v1412_v4 = vcvt.s32.f32 %v900_v22  ;;  %v1861_v56 = vpack.c.bf16 %v1413_v30, %v1405_v52 }
 0x332   : > { %3385 = vmatmul.bf16.gmra.mxu1 %v1851_v20 }
 0x333   : > { %8558 = vst [vmem:[#allocation58_spill] sm:$0xff] %v7732_v14  ;;  %3554 = vmatmul.bf16.gmra.mxu2 %v1852_v42  ;;  %v1403_v42 = vcvt.s32.f32 %v891_v37  ;;  %v1860_v20 = vpack.c.bf16 %v1412_v4, %v1404_v10  ;;  %v7744_v37 = vld [vmem:[%s7223_s13 + $0x138] sm:$0xff] }
 0x334   : > { %3723 = vmatmul.bf16.gmra.mxu3 %v1853_v53  ;;  %v1411_v53 = vcvt.s32.f32 %v899_v28 }
 0x336   : > { %v2999_v57 = vpop.f32.mrf.mxu2  ;;  %v2663_v11 = vpop.f32.mrf.mxu0  ;;  %v1859_v49 = vpack.c.bf16 %v1411_v53, %v1403_v42  ;;  %v909_v42 = vunpack.c.0.s8 %v7744_v37  ;;  %v917_v53 = vunpack.c.1.s8 %v7744_v37 }
 0x337   : > { %v3168_v19 = vpop.f32.mrf.mxu3  ;;  %v3000_v47 = vadd.f32 %v2999_v57, %v2831_v38  ;;  %v2832_v21 = vpop.f32.mrf.mxu1  ;;  %v682_v57 = vld [vmem:[%s7223_s13 + $0x120] sm:$0xff] }
 0x338   : > { %v2833_v0 = vadd.f32 %v2832_v21, %v2663_v11  ;;  %v906_v28 = vunpack.c.0.s8 %v682_v57  ;;  %v914_v11 = vunpack.c.1.s8 %v682_v57 }
 0x339   : > { %v7734_v24 = vadd.f32 %v3168_v19, %v3000_v47  ;;  %v683_v19 = vld [vmem:[%s7223_s13 + $0x128] sm:$0xff] }
 0x33a   : > { %v907_v21 = vunpack.c.0.s8 %v683_v19  ;;  %v915_v22 = vunpack.c.1.s8 %v683_v19  ;;  %v1418_v52 = vcvt.s32.f32 %v906_v28  ;;  %v1426_v30 = vcvt.s32.f32 %v914_v11 }
 0x33b   : > { %8559 = vst [vmem:[#allocation59_spill] sm:$0xff] %v7734_v24  ;;  %v922_v11 = vunpack.c.2.s8 %v682_v57 }
 0x33e   : > { %v3001_v45 = vpop.f32.mrf.mxu2  ;;  %v2666_v5 = vpop.f32.mrf.mxu0 }
 0x33f   : > { %v3170_v13 = vpop.f32.mrf.mxu3  ;;  %v3002_v34 = vadd.f32 %v3001_v45, %v2833_v0  ;;  %v2835_v43 = vpop.f32.mrf.mxu1  ;;  %v1419_v45 = vcvt.s32.f32 %v907_v21 }
 0x340   : > { %v2836_v38 = vadd.f32 %v2835_v43, %v2666_v5  ;;  %v1429_v5 = vcvt.s32.f32 %v917_v53 }
 0x341   : > { %v7736_v50 = vadd.f32 %v3170_v13, %v3002_v34  ;;  %3221 = vmatmul.bf16.gmra.mxu0 %v1858_v23  ;;  %v1427_v13 = vcvt.s32.f32 %v915_v22  ;;  %v1420_v23 = vcvt.s32.f32 %v908_v27  ;;  %v1421_v34 = vcvt.s32.f32 %v909_v42 }
 0x342   : > { %3390 = vmatmul.bf16.gmra.mxu1 %v1859_v49  ;;  %v1428_v49 = vcvt.s32.f32 %v916_v32  ;;  %v930_v27 = vunpack.c.3.s8 %v682_v57  ;;  %v924_v32 = vunpack.c.2.s8 %v7741_v7 }
 0x343   : > { %8560 = vst [vmem:[#allocation60_spill] sm:$0xff] %v7736_v50  ;;  %3559 = vmatmul.bf16.gmra.mxu2 %v1860_v20  ;;  %v1869_v62 = vpack.c.bf16 %v1429_v5, %v1421_v34 }
 0x344   : > { %3728 = vmatmul.bf16.gmra.mxu3 %v1861_v56  ;;  %v1866_v56 = vpack.c.bf16 %v1426_v30, %v1418_v52  ;;  %v1868_v14 = vpack.c.bf16 %v1428_v49, %v1420_v23  ;;  %v932_v52 = vunpack.c.3.s8 %v7741_v7  ;;  %v1434_v30 = vcvt.s32.f32 %v922_v11  ;;  %v2055_v11 = vld [vmem:[#allocation2 + $0x1b0] sm:$0xff] }
 0x346   : > { %v3004_v1 = vpop.f32.mrf.mxu2  ;;  %v2668_v0 = vpop.f32.mrf.mxu0  ;;  %v1444_v49 = vcvt.s32.f32 %v932_v52 }
 0x347   : > { %v3173_v47 = vpop.f32.mrf.mxu3  ;;  %v3005_v29 = vadd.f32 %v3004_v1, %v2836_v38  ;;  %v2837_v46 = vpop.f32.mrf.mxu1  ;;  %v1867_v38 = vpack.c.bf16 %v1427_v13, %v1419_v45  ;;  %v1442_v45 = vcvt.s32.f32 %v930_v27  ;;  %v7762_v27 = vld [vmem:[%s7223_s13 + $0x160] sm:$0xff] }
 0x348   : > { %v2838_v10 = vadd.f32 %v2837_v46, %v2668_v0  ;;  %v931_v46 = vunpack.c.3.s8 %v683_v19 }
 0x349   : > { %v7750_v4 = vadd.f32 %v3173_v47, %v3005_v29  ;;  %v923_v29 = vunpack.c.2.s8 %v683_v19  ;;  %v1436_v19 = vcvt.s32.f32 %v924_v32  ;;  %v7768_v32 = vld [vmem:[%s7223_s13 + $0x170] sm:$0xff] }
 0x34a   : > { %v1443_v13 = vcvt.s32.f32 %v931_v46  ;;  %v7765_v46 = vld [vmem:[%s7223_s13 + $0x168] sm:$0xff] }
 0x34b   : > { %v1435_v57 = vcvt.s32.f32 %v923_v29 }
 0x34e   : > { %v3006_v43 = vpop.f32.mrf.mxu2  ;;  %v3187_v50 = vpop.f32.mrf.mxu0 }
 0x34f   : > { %v3175_v20 = vpop.f32.mrf.mxu3  ;;  %v3007_v1 = vadd.f32 %v3006_v43, %v2838_v10  ;;  %v3356_v24 = vpop.f32.mrf.mxu1  ;;  %v3188_v28 = vadd.f32 %v3187_v50, %v7414_v6  ;;  %v925_v6 = vunpack.c.2.s8 %v7744_v37  ;;  %v933_v50 = vunpack.c.3.s8 %v7744_v37 }
 0x350   : > { %v1875_v37 = vpack.c.bf16 %v1443_v13, %v1435_v57  ;;  %v948_v57 = vunpack.c.1.s8 %v7768_v32 }
 0x351   : > { %v7752_v0 = vadd.f32 %v3175_v20, %v3007_v1  ;;  %3226 = vmatmul.bf16.gmra.mxu0 %v1866_v56  ;;  %v3357_v47 = vadd.f32 %v3356_v24, %v3188_v28  ;;  %v1437_v34 = vcvt.s32.f32 %v925_v6  ;;  %v1445_v5 = vcvt.s32.f32 %v933_v50 }
 0x352   : > { %3395 = vmatmul.bf16.gmra.mxu1 %v1867_v38  ;;  %v1874_v56 = vpack.c.bf16 %v1442_v45, %v1434_v30  ;;  %v1876_v28 = vpack.c.bf16 %v1444_v49, %v1436_v19  ;;  %v939_v50 = vunpack.c.0.s8 %v7765_v46 }
 0x353   : > { %3564 = vmatmul.bf16.gmra.mxu2 %v1868_v14  ;;  %v2054_v14 = vld [vmem:[#allocation2 + $0xb0] sm:$0xff] }
 0x354   : > { %3733 = vmatmul.bf16.gmra.mxu3 %v1869_v62 }
 0x356   : > { %v3525_v21 = vpop.f32.mrf.mxu2  ;;  %v3189_v53 = vpop.f32.mrf.mxu0 }
 0x357   : > { %v3694_v22 = vpop.f32.mrf.mxu3  ;;  %v3526_v42 = vadd.f32 %v3525_v21, %v3357_v47  ;;  %v3358_v10 = vpop.f32.mrf.mxu1  ;;  %v3190_v24 = vadd.f32 %v3189_v53, %v7416_v25  ;;  %v1877_v47 = vpack.c.bf16 %v1445_v5, %v1437_v34 }
 0x359   : > { %v3695_v62 = vadd.f32 %v3694_v22, %v3526_v42  ;;  %v3359_v7 = vadd.f32 %v3358_v10, %v3190_v24  ;;  %v7771_v42 = vld [vmem:[%s7223_s13 + $0x178] sm:$0xff]  ;;  %v938_v10 = vunpack.c.0.s8 %v7762_v27 }
 0x35a   : > { %v941_v13 = vunpack.c.0.s8 %v7771_v42  ;;  %v949_v19 = vunpack.c.1.s8 %v7771_v42 }
 0x35b   : > { %v3854_v23 = vadd.f32 %v3695_v62, %v2054_v14  ;;  %v947_v14 = vunpack.c.1.s8 %v7765_v46  ;;  %v940_v62 = vunpack.c.0.s8 %v7768_v32  ;;  %v1450_v5 = vcvt.s32.f32 %v938_v10  ;;  %v2057_v10 = vld [vmem:[#allocation2 + $0x18] sm:$0xff] }
 0x35d   : > { %3918 = vst [vmem:[#allocation2 + $0xb0] sm:$0xff] %v3854_v23  ;;  %v2056_v23 = vld [vmem:[#allocation2 + $0xd8] sm:$0xff] }
 0x35e   : > { %v3527_v43 = vpop.f32.mrf.mxu2  ;;  %v3192_v25 = vpop.f32.mrf.mxu0 }
 0x35f   : > { %v3696_v20 = vpop.f32.mrf.mxu3  ;;  %v3528_v38 = vadd.f32 %v3527_v43, %v3359_v7  ;;  %v3361_v1 = vpop.f32.mrf.mxu1  ;;  %v3193_v22 = vadd.f32 %v3192_v25, %v7438_v44  ;;  %v946_v44 = vunpack.c.1.s8 %v7762_v27  ;;  %v1451_v43 = vcvt.s32.f32 %v939_v50 }
 0x360   : > { %v1453_v25 = vcvt.s32.f32 %v941_v13  ;;  %v955_v13 = vunpack.c.2.s8 %v7765_v46 }
 0x361   : > { %v3697_v21 = vadd.f32 %v3696_v20, %v3528_v38  ;;  %3231 = vmatmul.bf16.gmra.mxu0 %v1874_v56  ;;  %v3362_v53 = vadd.f32 %v3361_v1, %v3193_v22  ;;  %v1458_v7 = vcvt.s32.f32 %v946_v44  ;;  %v1459_v20 = vcvt.s32.f32 %v947_v14 }
 0x362   : > { %3400 = vmatmul.bf16.gmra.mxu1 %v1875_v37  ;;  %v1452_v56 = vcvt.s32.f32 %v940_v62  ;;  %v1460_v38 = vcvt.s32.f32 %v948_v57  ;;  %v1461_v1 = vcvt.s32.f32 %v949_v19  ;;  %v962_v57 = vunpack.c.3.s8 %v7762_v27 }
 0x363   : > { %v3855_v29 = vadd.f32 %v3697_v21, %v2055_v11  ;;  %3569 = vmatmul.bf16.gmra.mxu2 %v1876_v28  ;;  %v1882_v21 = vpack.c.bf16 %v1458_v7, %v1450_v5  ;;  %v1883_v22 = vpack.c.bf16 %v1459_v20, %v1451_v43  ;;  %v963_v19 = vunpack.c.3.s8 %v7765_v46  ;;  %v2058_v20 = vld [vmem:[#allocation2 + $0x50] sm:$0xff] }
 0x364   : > { %3738 = vmatmul.bf16.gmra.mxu3 %v1877_v47  ;;  %v964_v5 = vunpack.c.3.s8 %v7768_v32  ;;  %v957_v7 = vunpack.c.2.s8 %v7771_v42  ;;  %v965_v43 = vunpack.c.3.s8 %v7771_v42 }
 0x365   : > { %3919 = vst [vmem:[#allocation2 + $0x1b0] sm:$0xff] %v3855_v29 }
 0x366   : > { %v3530_v52 = vpop.f32.mrf.mxu2  ;;  %v3194_v30 = vpop.f32.mrf.mxu0 }
 0x367   : > { %v3699_v6 = vpop.f32.mrf.mxu3  ;;  %v3531_v24 = vadd.f32 %v3530_v52, %v3362_v53  ;;  %v3363_v45 = vpop.f32.mrf.mxu1  ;;  %v3195_v34 = vadd.f32 %v3194_v30, %v7440_v63  ;;  %v1885_v63 = vpack.c.bf16 %v1461_v1, %v1453_v25  ;;  %v1467_v25 = vcvt.s32.f32 %v955_v13 }
 0x368   : > { %v1475_v1 = vcvt.s32.f32 %v963_v19 }
 0x369   : > { %v3700_v49 = vadd.f32 %v3699_v6, %v3531_v24  ;;  %v3364_v28 = vadd.f32 %v3363_v45, %v3195_v34  ;;  %v1884_v6 = vpack.c.bf16 %v1460_v38, %v1452_v56  ;;  %v954_v24 = vunpack.c.2.s8 %v7762_v27 }
 0x36a   : > { %v1474_v38 = vcvt.s32.f32 %v962_v57  ;;  %v1891_v42 = vpack.c.bf16 %v1475_v1, %v1467_v25  ;;  %v7803_v57 = vld [vmem:[%s7223_s13 + $0x1b8] sm:$0xff] }
 0x36b   : > { %v3856_v37 = vadd.f32 %v3700_v49, %v2056_v23  ;;  %v956_v23 = vunpack.c.2.s8 %v7768_v32  ;;  %v1466_v27 = vcvt.s32.f32 %v954_v24 }
 0x36d   : > { %3920 = vst [vmem:[#allocation2 + $0xd8] sm:$0xff] %v3856_v37  ;;  %v1468_v46 = vcvt.s32.f32 %v956_v23 }
 0x36e   : > { %v3532_v47 = vpop.f32.mrf.mxu2  ;;  %v3197_v53 = vpop.f32.mrf.mxu0 }
 0x36f   : > { %v3701_v11 = vpop.f32.mrf.mxu3  ;;  %v3533_v29 = vadd.f32 %v3532_v47, %v3364_v28  ;;  %v3366_v52 = vpop.f32.mrf.mxu1  ;;  %v3198_v50 = vadd.f32 %v3197_v53, %v7453_v18  ;;  %v1476_v47 = vcvt.s32.f32 %v964_v5  ;;  %v1890_v53 = vpack.c.bf16 %v1474_v38, %v1466_v27  ;;  %v2060_v38 = vld [vmem:[#allocation2 + $0x130] sm:$0xff] }
 0x370   : > { %v981_v27 = vunpack.c.1.s8 %v7803_v57 }
 0x371   : > { %v3702_v44 = vadd.f32 %v3701_v11, %v3533_v29  ;;  %3236 = vmatmul.bf16.gmra.mxu0 %v1882_v21  ;;  %v3367_v62 = vadd.f32 %v3366_v52, %v3198_v50  ;;  %v1469_v11 = vcvt.s32.f32 %v957_v7  ;;  %v1477_v21 = vcvt.s32.f32 %v965_v43 }
 0x372   : > { %3405 = vmatmul.bf16.gmra.mxu1 %v1883_v22 }
 0x373   : > { %v3857_v14 = vadd.f32 %v3702_v44, %v2057_v10  ;;  %3574 = vmatmul.bf16.gmra.mxu2 %v1884_v6  ;;  %v1893_v10 = vpack.c.bf16 %v1477_v21, %v1469_v11  ;;  %v2059_v44 = vld [vmem:[#allocation2 + $0x168] sm:$0xff] }
 0x374   : > { %3743 = vmatmul.bf16.gmra.mxu3 %v1885_v63  ;;  %v1892_v63 = vpack.c.bf16 %v1476_v47, %v1468_v46 }
 0x375   : > { %3921 = vst [vmem:[#allocation2 + $0x18] sm:$0xff] %v3857_v14 }
 0x376   : > { %v3535_v30 = vpop.f32.mrf.mxu2  ;;  %v3199_v49 = vpop.f32.mrf.mxu0 }
 0x377   : > { %v3704_v45 = vpop.f32.mrf.mxu3  ;;  %v3536_v18 = vadd.f32 %v3535_v30, %v3367_v62  ;;  %v3368_v34 = vpop.f32.mrf.mxu1  ;;  %v3200_v37 = vadd.f32 %v3199_v49, %v7456_v39  ;;  %v7794_v62 = vld [vmem:[%s7223_s13 + $0x1a0] sm:$0xff]  ;;  %v7797_v30 = vld [vmem:[%s7223_s13 + $0x1a8] sm:$0xff] }
 0x378   : > { %v970_v19 = vunpack.c.0.s8 %v7794_v62  ;;  %v971_v49 = vunpack.c.0.s8 %v7797_v30 }
 0x379   : > { %v3705_v56 = vadd.f32 %v3704_v45, %v3536_v18  ;;  %v3369_v32 = vadd.f32 %v3368_v34, %v3200_v37  ;;  %v7800_v45 = vld [vmem:[%s7223_s13 + $0x1b0] sm:$0xff]  ;;  %v979_v34 = vunpack.c.1.s8 %v7797_v30  ;;  %v973_v37 = vunpack.c.0.s8 %v7803_v57 }
 0x37a   : > { %v972_v5 = vunpack.c.0.s8 %v7800_v45  ;;  %v1482_v46 = vcvt.s32.f32 %v970_v19  ;;  %v1483_v47 = vcvt.s32.f32 %v971_v49 }
 0x37b   : > { %v3858_v28 = vadd.f32 %v3705_v56, %v2058_v20  ;;  %v980_v56 = vunpack.c.1.s8 %v7800_v45  ;;  %v1491_v11 = vcvt.s32.f32 %v979_v34 }
 0x37c   : > { %v1484_v21 = vcvt.s32.f32 %v972_v5  ;;  %v994_v5 = vunpack.c.3.s8 %v7794_v62 }
 0x37d   : > { %3922 = vst [vmem:[#allocation2 + $0x50] sm:$0xff] %v3858_v28 }
 0x37e   : > { %v3537_v22 = vpop.f32.mrf.mxu2  ;;  %v3202_v39 = vpop.f32.mrf.mxu0 }
 0x37f   : > { %v3706_v29 = vpop.f32.mrf.mxu3  ;;  %v3538_v52 = vadd.f32 %v3537_v22, %v3369_v32  ;;  %v3371_v6 = vpop.f32.mrf.mxu1  ;;  %v3203_v14 = vadd.f32 %v3202_v39, %v7462_v59  ;;  %v978_v59 = vunpack.c.1.s8 %v7794_v62  ;;  %v1492_v22 = vcvt.s32.f32 %v980_v56 }
 0x381   : > { %v3707_v50 = vadd.f32 %v3706_v29, %v3538_v52  ;;  %3241 = vmatmul.bf16.gmra.mxu0 %v1890_v53  ;;  %v3372_v13 = vadd.f32 %v3371_v6, %v3203_v14  ;;  %v1490_v28 = vcvt.s32.f32 %v978_v59  ;;  %v1485_v29 = vcvt.s32.f32 %v973_v37 }
 0x382   : > { %3410 = vmatmul.bf16.gmra.mxu1 %v1891_v42  ;;  %v1493_v53 = vcvt.s32.f32 %v981_v27  ;;  %v1900_v14 = vpack.c.bf16 %v1492_v22, %v1484_v21  ;;  %v986_v59 = vunpack.c.2.s8 %v7794_v62  ;;  %v996_v27 = vunpack.c.3.s8 %v7800_v45 }
 0x383   : > { %v3859_v24 = vadd.f32 %v3707_v50, %v2059_v44  ;;  %3579 = vmatmul.bf16.gmra.mxu2 %v1892_v63  ;;  %v1898_v6 = vpack.c.bf16 %v1490_v28, %v1482_v46  ;;  %v1899_v63 = vpack.c.bf16 %v1491_v11, %v1483_v47  ;;  %v1506_v47 = vcvt.s32.f32 %v994_v5 }
 0x384   : > { %3748 = vmatmul.bf16.gmra.mxu3 %v1893_v10  ;;  %v1498_v62 = vcvt.s32.f32 %v986_v59  ;;  %v1508_v22 = vcvt.s32.f32 %v996_v27 }
 0x385   : > { %3923 = vst [vmem:[#allocation2 + $0x168] sm:$0xff] %v3859_v24  ;;  %v2061_v24 = vld [vmem:[#allocation2 + $0x48] sm:$0xff] }
 0x386   : > { %v3540_v23 = vpop.f32.mrf.mxu2  ;;  %v3204_v43 = vpop.f32.mrf.mxu0 }
 0x387   : > { %v3709_v18 = vpop.f32.mrf.mxu3  ;;  %v3541_v7 = vadd.f32 %v3540_v23, %v3372_v13  ;;  %v3373_v20 = vpop.f32.mrf.mxu1  ;;  %v3205_v1 = vadd.f32 %v3204_v43, %v7464_v16  ;;  %v1901_v16 = vpack.c.bf16 %v1493_v53, %v1485_v29  ;;  %v995_v43 = vunpack.c.3.s8 %v7797_v30 }
 0x389   : > { %v3710_v25 = vadd.f32 %v3709_v18, %v3541_v7  ;;  %v3374_v42 = vadd.f32 %v3373_v20, %v3205_v1  ;;  %v987_v7 = vunpack.c.2.s8 %v7797_v30  ;;  %v988_v20 = vunpack.c.2.s8 %v7800_v45  ;;  %v2062_v1 = vld [vmem:[#allocation2 + $0x180] sm:$0xff] }
 0x38a   : > { %v1507_v21 = vcvt.s32.f32 %v995_v43 }
 0x38b   : > { %v3860_v32 = vadd.f32 %v3710_v25, %v2060_v38  ;;  %v989_v38 = vunpack.c.2.s8 %v7803_v57  ;;  %v997_v25 = vunpack.c.3.s8 %v7803_v57  ;;  %v1499_v11 = vcvt.s32.f32 %v987_v7 }
 0x38c   : > { %v1500_v30 = vcvt.s32.f32 %v988_v20 }
 0x38d   : > { %3924 = vst [vmem:[#allocation2 + $0x130] sm:$0xff] %v3860_v32  ;;  %v1501_v29 = vcvt.s32.f32 %v989_v38  ;;  %v1509_v53 = vcvt.s32.f32 %v997_v25  ;;  %v1907_v57 = vpack.c.bf16 %v1507_v21, %v1499_v11 }
 0x38e   : > { %v3542_v52 = vpop.f32.mrf.mxu2  ;;  %v3207_v44 = vpop.f32.mrf.mxu0 }
 0x38f   : > { %v3711_v39 = vpop.f32.mrf.mxu3  ;;  %v3543_v10 = vadd.f32 %v3542_v52, %v3374_v42  ;;  %v3376_v50 = vpop.f32.mrf.mxu1  ;;  %v3208_v19 = vadd.f32 %v3207_v44, %v7466_v33  ;;  %v1909_v44 = vpack.c.bf16 %v1509_v53, %v1501_v29 }
 0x391   : > { %v3712_v13 = vadd.f32 %v3711_v39, %v3543_v10  ;;  %3246 = vmatmul.bf16.gmra.mxu0 %v1898_v6  ;;  %v3377_v18 = vadd.f32 %v3376_v50, %v3208_v19  ;;  %v1906_v39 = vpack.c.bf16 %v1506_v47, %v1498_v62  ;;  %v1908_v10 = vpack.c.bf16 %v1508_v22, %v1500_v30  ;;  %v2063_v50 = vld [vmem:[#allocation2 + $0x110] sm:$0xff]  ;;  %v7829_v19 = vld [vmem:[%s7223_s13 + $0x1e8] sm:$0xff] }
 0x392   : > { %3415 = vmatmul.bf16.gmra.mxu1 %v1899_v63  ;;  %v1003_v7 = vunpack.c.0.s8 %v7829_v19  ;;  %v1011_v43 = vunpack.c.1.s8 %v7829_v19 }
 0x393   : > { %v3861_v23 = vadd.f32 %v3712_v13, %v2061_v24  ;;  %3584 = vmatmul.bf16.gmra.mxu2 %v1900_v14  ;;  %v7826_v24 = vld [vmem:[%s7223_s13 + $0x1e0] sm:$0xff] }
 0x394   : > { %3753 = vmatmul.bf16.gmra.mxu3 %v1901_v16  ;;  %v1515_v11 = vcvt.s32.f32 %v1003_v7  ;;  %v1523_v21 = vcvt.s32.f32 %v1011_v43  ;;  %v1027_v7 = vunpack.c.3.s8 %v7829_v19 }
 0x395   : > { %3925 = vst [vmem:[#allocation2 + $0x48] sm:$0xff] %v3861_v23  ;;  %v7832_v23 = vld [vmem:[%s7223_s13 + $0x1f0] sm:$0xff] }
 0x396   : > { %v3545_v49 = vpop.f32.mrf.mxu2  ;;  %v3209_v56 = vpop.f32.mrf.mxu0  ;;  %v1004_v20 = vunpack.c.0.s8 %v7832_v23  ;;  %v1012_v27 = vunpack.c.1.s8 %v7832_v23  ;;  %v1020_v43 = vunpack.c.2.s8 %v7832_v23 }
 0x397   : > { %v3714_v34 = vpop.f32.mrf.mxu3  ;;  %v3546_v33 = vadd.f32 %v3545_v49, %v3377_v18  ;;  %v3378_v37 = vpop.f32.mrf.mxu1  ;;  %v3210_v28 = vadd.f32 %v3209_v56, %v7468_v54  ;;  %v7835_v18 = vld [vmem:[%s7223_s13 + $0x1f8] sm:$0xff]  ;;  %v1002_v49 = vunpack.c.0.s8 %v7826_v24 }
 0x398   : > { %v1005_v38 = vunpack.c.0.s8 %v7835_v18  ;;  %v1013_v25 = vunpack.c.1.s8 %v7835_v18  ;;  %v1516_v30 = vcvt.s32.f32 %v1004_v20  ;;  %v1524_v22 = vcvt.s32.f32 %v1012_v27 }
 0x399   : > { %v3715_v46 = vadd.f32 %v3714_v34, %v3546_v33  ;;  %v3379_v45 = vadd.f32 %v3378_v37, %v3210_v28  ;;  %v1514_v62 = vcvt.s32.f32 %v1002_v49  ;;  %v1029_v27 = vunpack.c.3.s8 %v7835_v18 }
 0x39a   : > { %v1517_v29 = vcvt.s32.f32 %v1005_v38  ;;  %v1525_v53 = vcvt.s32.f32 %v1013_v25  ;;  %v2066_v38 = vld [vmem:[#allocation2 + $0x120] sm:$0xff] }
 0x39b   : > { %v3862_v32 = vadd.f32 %v3715_v46, %v2062_v1  ;;  %v2064_v1 = vld [vmem:[#allocation2 + $0x118] sm:$0xff] }
 0x39d   : > { %3926 = vst [vmem:[#allocation2 + $0x180] sm:$0xff] %v3862_v32 }
 0x39e   : > { %v3547_v42 = vpop.f32.mrf.mxu2  ;;  %v3212_v54 = vpop.f32.mrf.mxu0 }
 0x39f   : > { %v3716_v52 = vpop.f32.mrf.mxu3  ;;  %v3548_v6 = vadd.f32 %v3547_v42, %v3379_v45  ;;  %v3381_v63 = vpop.f32.mrf.mxu1  ;;  %v3213_v16 = vadd.f32 %v3212_v54, %v7490_v12  ;;  %v1010_v12 = vunpack.c.1.s8 %v7826_v24 }
 0x3a1   : > { %v3717_v14 = vadd.f32 %v3716_v52, %v3548_v6  ;;  %3251 = vmatmul.bf16.gmra.mxu0 %v1906_v39  ;;  %v3382_v59 = vadd.f32 %v3381_v63, %v3213_v16  ;;  %v1522_v47 = vcvt.s32.f32 %v1010_v12  ;;  %v1019_v12 = vunpack.c.2.s8 %v7829_v19 }
 0x3a2   : > { %3420 = vmatmul.bf16.gmra.mxu1 %v1907_v57  ;;  %v1915_v57 = vpack.c.bf16 %v1523_v21, %v1515_v11  ;;  %v1532_v19 = vcvt.s32.f32 %v1020_v43 }
 0x3a3   : > { %v3863_v13 = vadd.f32 %v3717_v14, %v2063_v50  ;;  %3589 = vmatmul.bf16.gmra.mxu2 %v1908_v10  ;;  %v1914_v39 = vpack.c.bf16 %v1522_v47, %v1514_v62  ;;  %v1916_v10 = vpack.c.bf16 %v1524_v22, %v1516_v30  ;;  %v1539_v62 = vcvt.s32.f32 %v1027_v7 }
 0x3a4   : > { %3758 = vmatmul.bf16.gmra.mxu3 %v1909_v44  ;;  %v2065_v44 = vld [vmem:[#allocation2 + $0x98] sm:$0xff]  ;;  %v1541_v30 = vcvt.s32.f32 %v1029_v27 }
 0x3a5   : > { %3927 = vst [vmem:[#allocation2 + $0x110] sm:$0xff] %v3863_v13 }
 0x3a6   : > { %v3550_v34 = vpop.f32.mrf.mxu2  ;;  %v3214_v56 = vpop.f32.mrf.mxu0 }
 0x3a7   : > { %v3719_v5 = vpop.f32.mrf.mxu3  ;;  %v3551_v33 = vadd.f32 %v3550_v34, %v3382_v59  ;;  %v3383_v37 = vpop.f32.mrf.mxu1  ;;  %v3215_v28 = vadd.f32 %v3214_v56, %v7492_v35  ;;  %v1917_v35 = vpack.c.bf16 %v1525_v53, %v1517_v29  ;;  %v1018_v59 = vunpack.c.2.s8 %v7826_v24 }
 0x3a8   : > { %v1028_v56 = vunpack.c.3.s8 %v7832_v23 }
 0x3a9   : > { %v3720_v46 = vadd.f32 %v3719_v5, %v3551_v33  ;;  %v3384_v45 = vadd.f32 %v3383_v37, %v3215_v28  ;;  %v1026_v5 = vunpack.c.3.s8 %v7826_v24  ;;  %v1021_v37 = vunpack.c.2.s8 %v7835_v18 }
 0x3aa   : > { %v1530_v24 = vcvt.s32.f32 %v1018_v59  ;;  %v1531_v28 = vcvt.s32.f32 %v1019_v12  ;;  %v1540_v11 = vcvt.s32.f32 %v1028_v56 }
 0x3ab   : > { %v3864_v32 = vadd.f32 %v3720_v46, %v2064_v1  ;;  %v1538_v46 = vcvt.s32.f32 %v1026_v5  ;;  %v1533_v21 = vcvt.s32.f32 %v1021_v37 }
 0x3ac   : > { %v1923_v18 = vpack.c.bf16 %v1539_v62, %v1531_v28 }
 0x3ad   : > { %3928 = vst [vmem:[#allocation2 + $0x118] sm:$0xff] %v3864_v32  ;;  %v1922_v29 = vpack.c.bf16 %v1538_v46, %v1530_v24 }
 0x3ae   : > { %v3552_v42 = vpop.f32.mrf.mxu2  ;;  %v3217_v54 = vpop.f32.mrf.mxu0 }
 0x3af   : > { %v3721_v52 = vpop.f32.mrf.mxu3  ;;  %v3553_v6 = vadd.f32 %v3552_v42, %v3384_v45  ;;  %v3386_v63 = vpop.f32.mrf.mxu1  ;;  %v3218_v14 = vadd.f32 %v3217_v54, %v7505_v61  ;;  %v1924_v42 = vpack.c.bf16 %v1540_v11, %v1532_v19  ;;  %v7858_v54 = vld [vmem:[%s7223_s13 + $0x220] sm:$0xff] }
 0x3b1   : > { %v3722_v50 = vadd.f32 %v3721_v52, %v3553_v6  ;;  %3256 = vmatmul.bf16.gmra.mxu0 %v1914_v39  ;;  %v3387_v13 = vadd.f32 %v3386_v63, %v3218_v14  ;;  %v1925_v52 = vpack.c.bf16 %v1541_v30, %v1533_v21  ;;  %v2067_v39 = vld [vmem:[#allocation2 + $0x150] sm:$0xff]  ;;  %v1034_v14 = vunpack.c.0.s8 %v7858_v54 }
 0x3b2   : > { %3425 = vmatmul.bf16.gmra.mxu1 %v1915_v57 }
 0x3b3   : > { %v3865_v16 = vadd.f32 %v3722_v50, %v2065_v44  ;;  %3594 = vmatmul.bf16.gmra.mxu2 %v1916_v10  ;;  %v7861_v10 = vld [vmem:[%s7223_s13 + $0x228] sm:$0xff]  ;;  %v7867_v44 = vld [vmem:[%s7223_s13 + $0x238] sm:$0xff]  ;;  %v1546_v27 = vcvt.s32.f32 %v1034_v14 }
 0x3b4   : > { %3763 = vmatmul.bf16.gmra.mxu3 %v1917_v35  ;;  %v7864_v35 = vld [vmem:[%s7223_s13 + $0x230] sm:$0xff]  ;;  %v1035_v59 = vunpack.c.0.s8 %v7861_v10  ;;  %v1059_v14 = vunpack.c.3.s8 %v7861_v10 }
 0x3b5   : > { %3929 = vst [vmem:[#allocation2 + $0x98] sm:$0xff] %v3865_v16  ;;  %v1044_v43 = vunpack.c.1.s8 %v7864_v35 }
 0x3b6   : > { %v3555_v49 = vpop.f32.mrf.mxu2  ;;  %v3219_v20 = vpop.f32.mrf.mxu0 }
 0x3b7   : > { %v3724_v34 = vpop.f32.mrf.mxu3  ;;  %v3556_v61 = vadd.f32 %v3555_v49, %v3387_v13  ;;  %v3388_v33 = vpop.f32.mrf.mxu1  ;;  %v3220_v1 = vadd.f32 %v3219_v20, %v7508_v17  ;;  %v1043_v49 = vunpack.c.1.s8 %v7861_v10  ;;  %v1045_v20 = vunpack.c.1.s8 %v7867_v44 }
 0x3b8   : > { %v1556_v28 = vcvt.s32.f32 %v1044_v43 }
 0x3b9   : > { %v3725_v25 = vadd.f32 %v3724_v34, %v3556_v61  ;;  %v3389_v23 = vadd.f32 %v3388_v33, %v3220_v1  ;;  %v1036_v34 = vunpack.c.0.s8 %v7864_v35  ;;  %v1037_v61 = vunpack.c.0.s8 %v7867_v44  ;;  %v2068_v33 = vld [vmem:[#allocation2 + $0x108] sm:$0xff] }
 0x3ba   : > { %v1555_v1 = vcvt.s32.f32 %v1043_v49  ;;  %v1557_v19 = vcvt.s32.f32 %v1045_v20  ;;  %v1053_v49 = vunpack.c.2.s8 %v7867_v44  ;;  %v1571_v20 = vcvt.s32.f32 %v1059_v14  ;;  %v2072_v14 = vld [vmem:[#allocation2 + $0x138] sm:$0xff] }
 0x3bb   : > { %v3866_v47 = vadd.f32 %v3725_v25, %v2066_v38  ;;  %v1547_v25 = vcvt.s32.f32 %v1035_v59  ;;  %v1548_v24 = vcvt.s32.f32 %v1036_v34  ;;  %v1549_v62 = vcvt.s32.f32 %v1037_v61 }
 0x3bc   : > { %v1060_v59 = vunpack.c.3.s8 %v7864_v35  ;;  %v1061_v34 = vunpack.c.3.s8 %v7867_v44 }
 0x3bd   : > { %3930 = vst [vmem:[#allocation2 + $0x120] sm:$0xff] %v3866_v47 }
 0x3be   : > { %v3557_v32 = vpop.f32.mrf.mxu2  ;;  %v3222_v17 = vpop.f32.mrf.mxu0 }
 0x3bf   : > { %v3726_v22 = vpop.f32.mrf.mxu3  ;;  %v3558_v53 = vadd.f32 %v3557_v32, %v3389_v23  ;;  %v3391_v45 = vpop.f32.mrf.mxu1  ;;  %v3223_v6 = vadd.f32 %v3222_v17, %v7514_v40  ;;  %v1042_v40 = vunpack.c.1.s8 %v7858_v54  ;;  %v1931_v23 = vpack.c.bf16 %v1555_v1, %v1547_v25 }
 0x3c1   : > { %v3727_v57 = vadd.f32 %v3726_v22, %v3558_v53  ;;  %3261 = vmatmul.bf16.gmra.mxu0 %v1922_v29  ;;  %v3392_v50 = vadd.f32 %v3391_v45, %v3223_v6  ;;  %v1554_v38 = vcvt.s32.f32 %v1042_v40  ;;  %v2069_v53 = vld [vmem:[#allocation2 + $0x60] sm:$0xff] }
 0x3c2   : > { %3430 = vmatmul.bf16.gmra.mxu1 %v1923_v18  ;;  %v1932_v18 = vpack.c.bf16 %v1556_v28, %v1548_v24 }
 0x3c3   : > { %v3867_v63 = vadd.f32 %v3727_v57, %v2067_v39  ;;  %3599 = vmatmul.bf16.gmra.mxu2 %v1924_v42  ;;  %v1930_v30 = vpack.c.bf16 %v1554_v38, %v1546_v27  ;;  %v1050_v39 = vunpack.c.2.s8 %v7858_v54  ;;  %v1573_v27 = vcvt.s32.f32 %v1061_v34 }
 0x3c4   : > { %3768 = vmatmul.bf16.gmra.mxu3 %v1925_v52 }
 0x3c5   : > { %3931 = vst [vmem:[#allocation2 + $0x150] sm:$0xff] %v3867_v63  ;;  %v1058_v63 = vunpack.c.3.s8 %v7858_v54  ;;  %v1562_v54 = vcvt.s32.f32 %v1050_v39 }
 0x3c6   : > { %v3560_v16 = vpop.f32.mrf.mxu2  ;;  %v3224_v12 = vpop.f32.mrf.mxu0 }
 0x3c7   : > { %v3729_v13 = vpop.f32.mrf.mxu3  ;;  %v3561_v5 = vadd.f32 %v3560_v16, %v3392_v50  ;;  %v3393_v7 = vpop.f32.mrf.mxu1  ;;  %v3225_v37 = vadd.f32 %v3224_v12, %v7516_v3  ;;  %v1933_v3 = vpack.c.bf16 %v1557_v19, %v1549_v62  ;;  %v1051_v50 = vunpack.c.2.s8 %v7861_v10  ;;  %v2071_v19 = vld [vmem:[#allocation2 + $0x188] sm:$0xff] }
 0x3c8   : > { %v1052_v16 = vunpack.c.2.s8 %v7864_v35  ;;  %v1570_v43 = vcvt.s32.f32 %v1058_v63 }
 0x3c9   : > { %v3730_v56 = vadd.f32 %v3729_v13, %v3561_v5  ;;  %v3394_v47 = vadd.f32 %v3393_v7, %v3225_v37  ;;  %v2070_v5 = vld [vmem:[#allocation2 + $0xe0] sm:$0xff]  ;;  %v1563_v61 = vcvt.s32.f32 %v1051_v50  ;;  %v1565_v37 = vcvt.s32.f32 %v1053_v49 }
 0x3ca   : > { %v1564_v10 = vcvt.s32.f32 %v1052_v16  ;;  %v1938_v1 = vpack.c.bf16 %v1570_v43, %v1562_v54 }
 0x3cb   : > { %v3868_v46 = vadd.f32 %v3730_v56, %v2068_v33  ;;  %v1572_v56 = vcvt.s32.f32 %v1060_v59  ;;  %v1939_v44 = vpack.c.bf16 %v1571_v20, %v1563_v61  ;;  %v1941_v62 = vpack.c.bf16 %v1573_v27, %v1565_v37 }
 0x3cd   : > { %3932 = vst [vmem:[#allocation2 + $0x108] sm:$0xff] %v3868_v46  ;;  %v1940_v28 = vpack.c.bf16 %v1572_v56, %v1564_v10 }
 0x3ce   : > { %v3562_v11 = vpop.f32.mrf.mxu2  ;;  %v3227_v22 = vpop.f32.mrf.mxu0 }
 0x3cf   : > { %v3731_v21 = vpop.f32.mrf.mxu3  ;;  %v3563_v32 = vadd.f32 %v3562_v11, %v3394_v47  ;;  %v3396_v29 = vpop.f32.mrf.mxu1  ;;  %v3228_v45 = vadd.f32 %v3227_v22, %v7518_v26  ;;  %v7899_v22 = vld [vmem:[%s7223_s13 + $0x278] sm:$0xff] }
 0x3d0   : > { %v1069_v63 = vunpack.c.0.s8 %v7899_v22  ;;  %v1077_v50 = vunpack.c.1.s8 %v7899_v22 }
 0x3d1   : > { %v3732_v17 = vadd.f32 %v3731_v21, %v3563_v32  ;;  %3266 = vmatmul.bf16.gmra.mxu0 %v1930_v30  ;;  %v3397_v52 = vadd.f32 %v3396_v29, %v3228_v45  ;;  %v7890_v21 = vld [vmem:[%s7223_s13 + $0x260] sm:$0xff]  ;;  %v7896_v32 = vld [vmem:[%s7223_s13 + $0x270] sm:$0xff] }
 0x3d2   : > { %3435 = vmatmul.bf16.gmra.mxu1 %v1931_v23  ;;  %v7893_v23 = vld [vmem:[%s7223_s13 + $0x268] sm:$0xff]  ;;  %v1589_v54 = vcvt.s32.f32 %v1077_v50 }
 0x3d3   : > { %v3869_v42 = vadd.f32 %v3732_v17, %v2069_v53  ;;  %3604 = vmatmul.bf16.gmra.mxu2 %v1932_v18  ;;  %v1066_v18 = vunpack.c.0.s8 %v7890_v21  ;;  %v1067_v17 = vunpack.c.0.s8 %v7893_v23  ;;  %v1075_v45 = vunpack.c.1.s8 %v7893_v23 }
 0x3d4   : > { %3773 = vmatmul.bf16.gmra.mxu3 %v1933_v3 }
 0x3d5   : > { %3933 = vst [vmem:[#allocation2 + $0x60] sm:$0xff] %v3869_v42  ;;  %v1068_v42 = vunpack.c.0.s8 %v7896_v32  ;;  %v1579_v59 = vcvt.s32.f32 %v1067_v17  ;;  %v1587_v49 = vcvt.s32.f32 %v1075_v45 }
 0x3d6   : > { %v3565_v57 = vpop.f32.mrf.mxu2  ;;  %v3229_v13 = vpop.f32.mrf.mxu0 }
 0x3d7   : > { %v3734_v6 = vpop.f32.mrf.mxu3  ;;  %v3566_v26 = vadd.f32 %v3565_v57, %v3397_v52  ;;  %v3398_v40 = vpop.f32.mrf.mxu1  ;;  %v3230_v7 = vadd.f32 %v3229_v13, %v7520_v48  ;;  %v1578_v13 = vcvt.s32.f32 %v1066_v18  ;;  %v1580_v34 = vcvt.s32.f32 %v1068_v42 }
 0x3d8   : > { %v1092_v18 = vunpack.c.3.s8 %v7896_v32 }
 0x3d9   : > { %v3735_v12 = vadd.f32 %v3734_v6, %v3566_v26  ;;  %v3399_v35 = vadd.f32 %v3398_v40, %v3230_v7  ;;  %v1076_v6 = vunpack.c.1.s8 %v7896_v32  ;;  %v1581_v7 = vcvt.s32.f32 %v1069_v63 }
 0x3db   : > { %v3870_v33 = vadd.f32 %v3735_v12, %v2070_v5  ;;  %v1588_v12 = vcvt.s32.f32 %v1076_v6  ;;  %v1604_v6 = vcvt.s32.f32 %v1092_v18 }
 0x3dd   : > { %3934 = vst [vmem:[#allocation2 + $0xe0] sm:$0xff] %v3870_v33  ;;  %v1947_v33 = vpack.c.bf16 %v1587_v49, %v1579_v59 }
 0x3de   : > { %v3567_v38 = vpop.f32.mrf.mxu2  ;;  %v3232_v48 = vpop.f32.mrf.mxu0 }
 0x3df   : > { %v3736_v25 = vpop.f32.mrf.mxu3  ;;  %v3568_v24 = vadd.f32 %v3567_v38, %v3399_v35  ;;  %v3401_v46 = vpop.f32.mrf.mxu1  ;;  %v3233_v11 = vadd.f32 %v3232_v48, %v7542_v8  ;;  %v1074_v8 = vunpack.c.1.s8 %v7890_v21  ;;  %v1948_v35 = vpack.c.bf16 %v1588_v12, %v1580_v34  ;;  %v2073_v38 = vld [vmem:[#allocation2 + $0x140] sm:$0xff]  ;;  %v2075_v34 = vld [vmem:[#allocation2 + $0x1a8] sm:$0xff] }
 0x3e0   : > { %v1082_v48 = vunpack.c.2.s8 %v7890_v21 }
 0x3e1   : > { %v3737_v47 = vadd.f32 %v3736_v25, %v3568_v24  ;;  %3271 = vmatmul.bf16.gmra.mxu0 %v1938_v1  ;;  %v3402_v29 = vadd.f32 %v3401_v46, %v3233_v11  ;;  %v1586_v40 = vcvt.s32.f32 %v1074_v8  ;;  %v1084_v11 = vunpack.c.2.s8 %v7896_v32  ;;  %v2074_v8 = vld [vmem:[#allocation2 + $0x80] sm:$0xff] }
 0x3e2   : > { %3440 = vmatmul.bf16.gmra.mxu1 %v1939_v44 }
 0x3e3   : > { %v3871_v30 = vadd.f32 %v3737_v47, %v2071_v19  ;;  %3609 = vmatmul.bf16.gmra.mxu2 %v1940_v28  ;;  %v1946_v10 = vpack.c.bf16 %v1586_v40, %v1578_v13  ;;  %v1083_v19 = vunpack.c.2.s8 %v7893_v23  ;;  %v1091_v47 = vunpack.c.3.s8 %v7893_v23 }
 0x3e4   : > { %3778 = vmatmul.bf16.gmra.mxu3 %v1941_v62  ;;  %v1090_v62 = vunpack.c.3.s8 %v7890_v21  ;;  %v1594_v21 = vcvt.s32.f32 %v1082_v48  ;;  %v1596_v23 = vcvt.s32.f32 %v1084_v11 }
 0x3e5   : > { %3935 = vst [vmem:[#allocation2 + $0x188] sm:$0xff] %v3871_v30 }
 0x3e6   : > { %v3570_v3 = vpop.f32.mrf.mxu2  ;;  %v3234_v39 = vpop.f32.mrf.mxu0  ;;  %v1602_v42 = vcvt.s32.f32 %v1090_v62  ;;  %v1956_v59 = vpack.c.bf16 %v1604_v6, %v1596_v23  ;;  %v2077_v6 = vld [vmem:[#allocation2 + $0x28] sm:$0xff] }
 0x3e7   : > { %v3739_v53 = vpop.f32.mrf.mxu3  ;;  %v3571_v52 = vadd.f32 %v3570_v3, %v3402_v29  ;;  %v3403_v57 = vpop.f32.mrf.mxu1  ;;  %v3235_v26 = vadd.f32 %v3234_v39, %v7544_v36  ;;  %v1949_v36 = vpack.c.bf16 %v1589_v54, %v1581_v7  ;;  %v1085_v3 = vunpack.c.2.s8 %v7899_v22  ;;  %v7922_v7 = vld [vmem:[%s7223_s13 + $0x2a0] sm:$0xff] }
 0x3e8   : > { %v1603_v39 = vcvt.s32.f32 %v1091_v47 }
 0x3e9   : > { %v3740_v16 = vadd.f32 %v3739_v53, %v3571_v52  ;;  %v3404_v43 = vadd.f32 %v3403_v57, %v3235_v26  ;;  %v1093_v53 = vunpack.c.3.s8 %v7899_v22  ;;  %v1595_v52 = vcvt.s32.f32 %v1083_v19 }
 0x3ea   : > { %v1597_v63 = vcvt.s32.f32 %v1085_v3  ;;  %v1954_v26 = vpack.c.bf16 %v1602_v42, %v1594_v21 }
 0x3eb   : > { %v3872_v5 = vadd.f32 %v3740_v16, %v2072_v14  ;;  %v1605_v50 = vcvt.s32.f32 %v1093_v53  ;;  %v1955_v22 = vpack.c.bf16 %v1603_v39, %v1595_v52 }
 0x3ed   : > { %3936 = vst [vmem:[#allocation2 + $0x138] sm:$0xff] %v3872_v5  ;;  %v1957_v49 = vpack.c.bf16 %v1605_v50, %v1597_v63 }
 0x3ee   : > { %v3572_v61 = vpop.f32.mrf.mxu2  ;;  %v3237_v37 = vpop.f32.mrf.mxu0 }
 0x3ef   : > { %v3741_v20 = vpop.f32.mrf.mxu3  ;;  %v3573_v56 = vadd.f32 %v3572_v61, %v3404_v43  ;;  %v3406_v27 = vpop.f32.mrf.mxu1  ;;  %v3238_v1 = vadd.f32 %v3237_v37, %v7557_v2  ;;  %v7925_v43 = vld [vmem:[%s7223_s13 + $0x2a8] sm:$0xff]  ;;  %v7928_v61 = vld [vmem:[%s7223_s13 + $0x2b0] sm:$0xff] }
 0x3f1   : > { %v3742_v25 = vadd.f32 %v3741_v20, %v3573_v56  ;;  %3276 = vmatmul.bf16.gmra.mxu0 %v1946_v10  ;;  %v3407_v24 = vadd.f32 %v3406_v27, %v3238_v1  ;;  %v7931_v20 = vld [vmem:[%s7223_s13 + $0x2b8] sm:$0xff]  ;;  %v1099_v27 = vunpack.c.0.s8 %v7925_v43 }
 0x3f2   : > { %3445 = vmatmul.bf16.gmra.mxu1 %v1947_v33  ;;  %v1098_v33 = vunpack.c.0.s8 %v7922_v7  ;;  %v1109_v48 = vunpack.c.1.s8 %v7931_v20 }
 0x3f3   : > { %v3873_v44 = vadd.f32 %v3742_v25, %v2073_v38  ;;  %3614 = vmatmul.bf16.gmra.mxu2 %v1948_v35  ;;  %v1107_v35 = vunpack.c.1.s8 %v7925_v43  ;;  %v1611_v11 = vcvt.s32.f32 %v1099_v27 }
 0x3f4   : > { %3783 = vmatmul.bf16.gmra.mxu3 %v1949_v36  ;;  %v1100_v36 = vunpack.c.0.s8 %v7928_v61  ;;  %v1610_v19 = vcvt.s32.f32 %v1098_v33  ;;  %v1621_v53 = vcvt.s32.f32 %v1109_v48 }
 0x3f5   : > { %3937 = vst [vmem:[#allocation2 + $0x140] sm:$0xff] %v3873_v44  ;;  %v1108_v44 = vunpack.c.1.s8 %v7928_v61 }
 0x3f6   : > { %v3575_v46 = vpop.f32.mrf.mxu2  ;;  %v3239_v30 = vpop.f32.mrf.mxu0 }
 0x3f7   : > { %v3744_v28 = vpop.f32.mrf.mxu3  ;;  %v3576_v2 = vadd.f32 %v3575_v46, %v3407_v24  ;;  %v3408_v29 = vpop.f32.mrf.mxu1  ;;  %v3240_v45 = vadd.f32 %v3239_v30, %v7560_v31  ;;  %v1101_v24 = vunpack.c.0.s8 %v7931_v20  ;;  %v2076_v46 = vld [vmem:[#allocation2 + $0x1b8] sm:$0xff]  ;;  %v1612_v30 = vcvt.s32.f32 %v1100_v36 }
 0x3f8   : > { %v1620_v18 = vcvt.s32.f32 %v1108_v44 }
 0x3f9   : > { %v3745_v17 = vadd.f32 %v3744_v28, %v3576_v2  ;;  %v3409_v32 = vadd.f32 %v3408_v29, %v3240_v45  ;;  %v1619_v2 = vcvt.s32.f32 %v1107_v35  ;;  %v1613_v3 = vcvt.s32.f32 %v1101_v24 }
 0x3fb   : > { %v3874_v57 = vadd.f32 %v3745_v17, %v2074_v8  ;;  %v1963_v42 = vpack.c.bf16 %v1619_v2, %v1611_v11  ;;  %v7954_v2 = vld [vmem:[%s7223_s13 + $0x2e0] sm:$0xff] }
 0x3fd   : > { %3938 = vst [vmem:[#allocation2 + $0x80] sm:$0xff] %v3874_v57  ;;  %v1964_v57 = vpack.c.bf16 %v1620_v18, %v1612_v30  ;;  %v7960_v18 = vld [vmem:[%s7223_s13 + $0x2f0] sm:$0xff] }
 0x3fe   : > { %v3577_v14 = vpop.f32.mrf.mxu2  ;;  %v3242_v31 = vpop.f32.mrf.mxu0 }
 0x3ff   : > { %v3746_v16 = vpop.f32.mrf.mxu3  ;;  %v3578_v13 = vadd.f32 %v3577_v14, %v3409_v32  ;;  %v3411_v40 = vpop.f32.mrf.mxu1  ;;  %v3243_v12 = vadd.f32 %v3242_v31, %v7566_v55  ;;  %v1106_v55 = vunpack.c.1.s8 %v7922_v7  ;;  %v1115_v31 = vunpack.c.2.s8 %v7925_v43 }
 0x401   : > { %v3747_v5 = vadd.f32 %v3746_v16, %v3578_v13  ;;  %3281 = vmatmul.bf16.gmra.mxu0 %v1954_v26  ;;  %v3412_v10 = vadd.f32 %v3411_v40, %v3243_v12  ;;  %v1618_v47 = vcvt.s32.f32 %v1106_v55  ;;  %v1114_v16 = vunpack.c.2.s8 %v7922_v7 }
 0x402   : > { %3450 = vmatmul.bf16.gmra.mxu1 %v1955_v22  ;;  %v1122_v13 = vunpack.c.3.s8 %v7922_v7  ;;  %v1123_v40 = vunpack.c.3.s8 %v7925_v43  ;;  %v1117_v12 = vunpack.c.2.s8 %v7931_v20  ;;  %v1627_v55 = vcvt.s32.f32 %v1115_v31 }
 0x403   : > { %v3875_v54 = vadd.f32 %v3747_v5, %v2075_v34  ;;  %3619 = vmatmul.bf16.gmra.mxu2 %v1956_v59  ;;  %v1962_v21 = vpack.c.bf16 %v1618_v47, %v1610_v19  ;;  %v1116_v59 = vunpack.c.2.s8 %v7928_v61  ;;  %v1124_v5 = vunpack.c.3.s8 %v7928_v61  ;;  %v2079_v19 = vld [vmem:[#allocation2 + $0xf8] sm:$0xff] }
 0x404   : > { %3788 = vmatmul.bf16.gmra.mxu3 %v1957_v49  ;;  %v1626_v7 = vcvt.s32.f32 %v1114_v16  ;;  %v1635_v27 = vcvt.s32.f32 %v1123_v40 }
 0x405   : > { %3939 = vst [vmem:[#allocation2 + $0x1a8] sm:$0xff] %v3875_v54  ;;  %v1125_v54 = vunpack.c.3.s8 %v7931_v20  ;;  %v1628_v43 = vcvt.s32.f32 %v1116_v59  ;;  %v1636_v36 = vcvt.s32.f32 %v1124_v5 }
 0x406   : > { %v3580_v56 = vpop.f32.mrf.mxu2  ;;  %v3244_v25 = vpop.f32.mrf.mxu0  ;;  %v1971_v20 = vpack.c.bf16 %v1635_v27, %v1627_v55  ;;  %v2081_v55 = vld [vmem:[#allocation2 + $0x30] sm:$0xff] }
 0x407   : > { %v3749_v37 = vpop.f32.mrf.mxu3  ;;  %v3581_v38 = vadd.f32 %v3580_v56, %v3412_v10  ;;  %v3413_v1 = vpop.f32.mrf.mxu1  ;;  %v3245_v62 = vadd.f32 %v3244_v25, %v7568_v15  ;;  %v1965_v15 = vpack.c.bf16 %v1621_v53, %v1613_v3  ;;  %v2078_v10 = vld [vmem:[#allocation2 + $0x1e8] sm:$0xff]  ;;  %v1637_v25 = vcvt.s32.f32 %v1125_v54  ;;  %v7963_v3 = vld [vmem:[%s7223_s13 + $0x2f8] sm:$0xff] }
 0x409   : > { %v3750_v28 = vadd.f32 %v3749_v37, %v3581_v38  ;;  %v3414_v8 = vadd.f32 %v3413_v1, %v3245_v62  ;;  %v1634_v37 = vcvt.s32.f32 %v1122_v13  ;;  %v1629_v38 = vcvt.s32.f32 %v1117_v12 }
 0x40b   : > { %v3876_v29 = vadd.f32 %v3750_v28, %v2076_v46  ;;  %v1970_v24 = vpack.c.bf16 %v1634_v37, %v1626_v7  ;;  %v1972_v28 = vpack.c.bf16 %v1636_v36, %v1628_v43  ;;  %v1973_v62 = vpack.c.bf16 %v1637_v25, %v1629_v38 }
 0x40c   : > { %v1146_v38 = vunpack.c.2.s8 %v7954_v2 }
 0x40d   : > { %3940 = vst [vmem:[#allocation2 + $0x1b8] sm:$0xff] %v3876_v29  ;;  %v7957_v29 = vld [vmem:[%s7223_s13 + $0x2e8] sm:$0xff] }
 0x40e   : > { %v3582_v17 = vpop.f32.mrf.mxu2  ;;  %v3247_v39 = vpop.f32.mrf.mxu0 }
 0x40f   : > { %v3751_v45 = vpop.f32.mrf.mxu3  ;;  %v3583_v52 = vadd.f32 %v3582_v17, %v3414_v8  ;;  %v3416_v23 = vpop.f32.mrf.mxu1  ;;  %v3248_v50 = vadd.f32 %v3247_v39, %v7570_v51  ;;  %v1130_v8 = vunpack.c.0.s8 %v7954_v2 }
 0x411   : > { %v3752_v63 = vadd.f32 %v3751_v45, %v3583_v52  ;;  %3286 = vmatmul.bf16.gmra.mxu0 %v1962_v21  ;;  %v3417_v14 = vadd.f32 %v3416_v23, %v3248_v50  ;;  %v1131_v21 = vunpack.c.0.s8 %v7957_v29  ;;  %v1132_v52 = vunpack.c.0.s8 %v7960_v18  ;;  %v2080_v50 = vld [vmem:[#allocation2 + $0x160] sm:$0xff] }
 0x412   : > { %3455 = vmatmul.bf16.gmra.mxu1 %v1963_v42  ;;  %v1139_v42 = vunpack.c.1.s8 %v7957_v29  ;;  %v1642_v16 = vcvt.s32.f32 %v1130_v8 }
 0x413   : > { %v3877_v32 = vadd.f32 %v3752_v63, %v2077_v6  ;;  %3624 = vmatmul.bf16.gmra.mxu2 %v1964_v57  ;;  %v1133_v6 = vunpack.c.0.s8 %v7963_v3  ;;  %v1141_v63 = vunpack.c.1.s8 %v7963_v3  ;;  %v1644_v31 = vcvt.s32.f32 %v1132_v52 }
 0x414   : > { %3793 = vmatmul.bf16.gmra.mxu3 %v1965_v15  ;;  %v1140_v15 = vunpack.c.1.s8 %v7960_v18  ;;  %v1651_v13 = vcvt.s32.f32 %v1139_v42 }
 0x415   : > { %3941 = vst [vmem:[#allocation2 + $0x28] sm:$0xff] %v3877_v32 }
 0x416   : > { %v3585_v26 = vpop.f32.mrf.mxu2  ;;  %v3249_v49 = vpop.f32.mrf.mxu0  ;;  %v1652_v59 = vcvt.s32.f32 %v1140_v15 }
 0x417   : > { %v3754_v22 = vpop.f32.mrf.mxu3  ;;  %v3586_v51 = vadd.f32 %v3585_v26, %v3417_v14  ;;  %v3418_v34 = vpop.f32.mrf.mxu1  ;;  %v3250_v56 = vadd.f32 %v3249_v49, %v7572_v9  ;;  %v1653_v49 = vcvt.s32.f32 %v1141_v63 }
 0x418   : > { %v1980_v37 = vpack.c.bf16 %v1652_v59, %v1644_v31  ;;  %v7989_v31 = vld [vmem:[%s7223_s13 + $0x328] sm:$0xff]  ;;  %v7995_v59 = vld [vmem:[%s7223_s13 + $0x338] sm:$0xff] }
 0x419   : > { %v3755_v33 = vadd.f32 %v3754_v22, %v3586_v51  ;;  %v3419_v61 = vadd.f32 %v3418_v34, %v3250_v56  ;;  %v1643_v22 = vcvt.s32.f32 %v1131_v21  ;;  %v1645_v51 = vcvt.s32.f32 %v1133_v6 }
 0x41b   : > { %v3878_v35 = vadd.f32 %v3755_v33, %v2078_v10  ;;  %v1979_v10 = vpack.c.bf16 %v1651_v13, %v1643_v22  ;;  %v7986_v22 = vld [vmem:[%s7223_s13 + $0x320] sm:$0xff] }
 0x41d   : > { %3942 = vst [vmem:[#allocation2 + $0x1e8] sm:$0xff] %v3878_v35 }
 0x41e   : > { %v3587_v1 = vpop.f32.mrf.mxu2  ;;  %v3252_v9 = vpop.f32.mrf.mxu0 }
 0x41f   : > { %v3756_v44 = vpop.f32.mrf.mxu3  ;;  %v3588_v48 = vadd.f32 %v3587_v1, %v3419_v61  ;;  %v3421_v46 = vpop.f32.mrf.mxu1  ;;  %v3253_v11 = vadd.f32 %v3252_v9, %v7594_v41  ;;  %v1138_v41 = vunpack.c.1.s8 %v7954_v2  ;;  %v1154_v1 = vunpack.c.3.s8 %v7954_v2 }
 0x420   : > { %v1658_v2 = vcvt.s32.f32 %v1146_v38 }
 0x421   : > { %v3757_v47 = vadd.f32 %v3756_v44, %v3588_v48  ;;  %3291 = vmatmul.bf16.gmra.mxu0 %v1970_v24  ;;  %v3422_v53 = vadd.f32 %v3421_v46, %v3253_v11  ;;  %v1650_v26 = vcvt.s32.f32 %v1138_v41  ;;  %v1147_v44 = vunpack.c.2.s8 %v7957_v29  ;;  %v8561_v11 = vld [vmem:[#allocation28_spill] sm:$0xff] }
 0x422   : > { %3460 = vmatmul.bf16.gmra.mxu1 %v1971_v20  ;;  %v1155_v24 = vunpack.c.3.s8 %v7957_v29  ;;  %v1148_v20 = vunpack.c.2.s8 %v7960_v18  ;;  %v1156_v46 = vunpack.c.3.s8 %v7960_v18 }
 0x423   : > { %v3879_v30 = vadd.f32 %v3757_v47, %v2079_v19  ;;  %3629 = vmatmul.bf16.gmra.mxu2 %v1972_v28  ;;  %v1978_v54 = vpack.c.bf16 %v1650_v26, %v1642_v16  ;;  %v1149_v28 = vunpack.c.2.s8 %v7963_v3  ;;  %v2082_v19 = vld [vmem:[#allocation2 + $0x1e0] sm:$0xff]  ;;  %v1659_v8 = vcvt.s32.f32 %v1147_v44  ;;  %v8562_v16 = vld [vmem:[#allocation29_spill] sm:$0xff] }
 0x424   : > { %3798 = vmatmul.bf16.gmra.mxu3 %v1973_v62  ;;  %v1157_v62 = vunpack.c.3.s8 %v7963_v3  ;;  %v1660_v29 = vcvt.s32.f32 %v1148_v20  ;;  %v1668_v41 = vcvt.s32.f32 %v1156_v46 }
 0x425   : > { %3943 = vst [vmem:[#allocation2 + $0xf8] sm:$0xff] %v3879_v30  ;;  %v1661_v21 = vcvt.s32.f32 %v1149_v28 }
 0x426   : > { %v3590_v17 = vpop.f32.mrf.mxu2  ;;  %v3254_v23 = vpop.f32.mrf.mxu0  ;;  %v1669_v42 = vcvt.s32.f32 %v1157_v62  ;;  %v1988_v63 = vpack.c.bf16 %v1668_v41, %v1660_v29 }
 0x427   : > { %v3759_v45 = vpop.f32.mrf.mxu3  ;;  %v3591_v39 = vadd.f32 %v3590_v17, %v3422_v53  ;;  %v3423_v57 = vpop.f32.mrf.mxu1  ;;  %v3255_v14 = vadd.f32 %v3254_v23, %v7596_v58  ;;  %v1981_v58 = vpack.c.bf16 %v1653_v49, %v1645_v51  ;;  %v1666_v53 = vcvt.s32.f32 %v1154_v1 }
 0x428   : > { %v1667_v17 = vcvt.s32.f32 %v1155_v24  ;;  %v1162_v49 = vunpack.c.0.s8 %v7986_v22 }
 0x429   : > { %v3760_v32 = vadd.f32 %v3759_v45, %v3591_v39  ;;  %v3424_v34 = vadd.f32 %v3423_v57, %v3255_v14  ;;  %v1986_v23 = vpack.c.bf16 %v1666_v53, %v1658_v2 }
 0x42a   : > { %v1987_v3 = vpack.c.bf16 %v1667_v17, %v1659_v8  ;;  %v2085_v17 = vld [vmem:[#allocation2 + $0x8] sm:$0xff] }
 0x42b   : > { %v3880_v40 = vadd.f32 %v3760_v32, %v2080_v50  ;;  %v1989_v50 = vpack.c.bf16 %v1669_v42, %v1661_v21  ;;  %v2083_v32 = vld [vmem:[#allocation2] sm:$0xff] }
 0x42d   : > { %3944 = vst [vmem:[#allocation2 + $0x160] sm:$0xff] %v3880_v40  ;;  %v7992_v40 = vld [vmem:[%s7223_s13 + $0x330] sm:$0xff] }
 0x42e   : > { %v3592_v5 = vpop.f32.mrf.mxu2  ;;  %v3257_v56 = vpop.f32.mrf.mxu0 }
 0x42f   : > { %v3761_v12 = vpop.f32.mrf.mxu3  ;;  %v3593_v33 = vadd.f32 %v3592_v5, %v3424_v34  ;;  %v3426_v7 = vpop.f32.mrf.mxu1  ;;  %v3258_v43 = vadd.f32 %v3257_v56, %v7609_v60 }
 0x431   : > { %v3762_v27 = vadd.f32 %v3761_v12, %v3593_v33  ;;  %3296 = vmatmul.bf16.gmra.mxu0 %v1978_v54  ;;  %v3427_v36 = vadd.f32 %v3426_v7, %v3258_v43  ;;  %v1170_v12 = vunpack.c.1.s8 %v7986_v22  ;;  %v1163_v54 = vunpack.c.0.s8 %v7989_v31  ;;  %v2084_v43 = vld [vmem:[#allocation2 + $0xf0] sm:$0xff] }
 0x432   : > { %3465 = vmatmul.bf16.gmra.mxu1 %v1979_v10  ;;  %v1171_v10 = vunpack.c.1.s8 %v7989_v31  ;;  %v1164_v33 = vunpack.c.0.s8 %v7992_v40 }
 0x433   : > { %v3881_v35 = vadd.f32 %v3762_v27, %v2081_v55  ;;  %3634 = vmatmul.bf16.gmra.mxu2 %v1980_v37  ;;  %v1165_v55 = vunpack.c.0.s8 %v7995_v59  ;;  %v1173_v27 = vunpack.c.1.s8 %v7995_v59  ;;  %v1675_v1 = vcvt.s32.f32 %v1163_v54 }
 0x434   : > { %3803 = vmatmul.bf16.gmra.mxu3 %v1981_v58  ;;  %v1172_v58 = vunpack.c.1.s8 %v7992_v40  ;;  %v1683_v44 = vcvt.s32.f32 %v1171_v10  ;;  %v1676_v24 = vcvt.s32.f32 %v1164_v33 }
 0x435   : > { %3945 = vst [vmem:[#allocation2 + $0x30] sm:$0xff] %v3881_v35 }
 0x436   : > { %v3595_v25 = vpop.f32.mrf.mxu2  ;;  %v3259_v48 = vpop.f32.mrf.mxu0 }
 0x437   : > { %v3764_v61 = vpop.f32.mrf.mxu3  ;;  %v3596_v60 = vadd.f32 %v3595_v25, %v3427_v36  ;;  %v3428_v9 = vpop.f32.mrf.mxu1  ;;  %v3260_v30 = vadd.f32 %v3259_v48, %v8561_v11  ;;  %v8563_v36 = vld [vmem:[#allocation30_spill] sm:$0xff]  ;;  %v1674_v25 = vcvt.s32.f32 %v1162_v49  ;;  %v1677_v48 = vcvt.s32.f32 %v1165_v55 }
 0x439   : > { %v3765_v47 = vadd.f32 %v3764_v61, %v3596_v60  ;;  %v3429_v18 = vadd.f32 %v3428_v9, %v3260_v30  ;;  %v1682_v61 = vcvt.s32.f32 %v1170_v12  ;;  %v1684_v60 = vcvt.s32.f32 %v1172_v58 }
 0x43a   : > { %v1685_v9 = vcvt.s32.f32 %v1173_v27 }
 0x43b   : > { %v3882_v45 = vadd.f32 %v3765_v47, %v2082_v19  ;;  %v1994_v19 = vpack.c.bf16 %v1682_v61, %v1674_v25  ;;  %v1995_v47 = vpack.c.bf16 %v1683_v44, %v1675_v1  ;;  %v1996_v53 = vpack.c.bf16 %v1684_v60, %v1676_v24  ;;  %v8566_v61 = vld [vmem:[#allocation33_spill] sm:$0xff]  ;;  %v8018_v44 = vld [vmem:[%s7223_s13 + $0x360] sm:$0xff] }
 0x43c   : > { %v1997_v8 = vpack.c.bf16 %v1685_v9, %v1677_v48  ;;  %v8024_v60 = vld [vmem:[%s7223_s13 + $0x370] sm:$0xff]  ;;  %v8027_v48 = vld [vmem:[%s7223_s13 + $0x378] sm:$0xff] }
 0x43d   : > { %3946 = vst [vmem:[#allocation2 + $0x1e0] sm:$0xff] %v3882_v45  ;;  %v8564_v45 = vld [vmem:[#allocation31_spill] sm:$0xff] }
 0x43e   : > { %v3597_v52 = vpop.f32.mrf.mxu2  ;;  %v3262_v15 = vpop.f32.mrf.mxu0 }
 0x43f   : > { %v3766_v39 = vpop.f32.mrf.mxu3  ;;  %v3598_v57 = vadd.f32 %v3597_v52, %v3429_v18  ;;  %v3431_v6 = vpop.f32.mrf.mxu1  ;;  %v3263_v26 = vadd.f32 %v3262_v15, %v8562_v16  ;;  %v1178_v18 = vunpack.c.2.s8 %v7986_v22  ;;  %v1180_v15 = vunpack.c.2.s8 %v7992_v40 }
 0x440   : > { %v1189_v16 = vunpack.c.3.s8 %v7995_v59 }
 0x441   : > { %v3767_v14 = vadd.f32 %v3766_v39, %v3598_v57  ;;  %3301 = vmatmul.bf16.gmra.mxu0 %v1986_v23  ;;  %v3432_v51 = vadd.f32 %v3431_v6, %v3263_v26  ;;  %v1186_v23 = vunpack.c.3.s8 %v7986_v22  ;;  %v1187_v57 = vunpack.c.3.s8 %v7989_v31  ;;  %v2086_v26 = vld [vmem:[#allocation2 + $0x148] sm:$0xff] }
 0x442   : > { %3470 = vmatmul.bf16.gmra.mxu1 %v1987_v3  ;;  %v1179_v3 = vunpack.c.2.s8 %v7989_v31  ;;  %v1690_v22 = vcvt.s32.f32 %v1178_v18  ;;  %v1692_v31 = vcvt.s32.f32 %v1180_v15 }
 0x443   : > { %v3883_v13 = vadd.f32 %v3767_v14, %v2083_v32  ;;  %3639 = vmatmul.bf16.gmra.mxu2 %v1988_v63  ;;  %v1188_v32 = vunpack.c.3.s8 %v7992_v40  ;;  %v1181_v14 = vunpack.c.2.s8 %v7995_v59  ;;  %v1699_v12 = vcvt.s32.f32 %v1187_v57 }
 0x444   : > { %3808 = vmatmul.bf16.gmra.mxu3 %v1989_v50 }
 0x445   : > { %3947 = vst [vmem:[#allocation2] sm:$0xff] %v3883_v13  ;;  %v1700_v10 = vcvt.s32.f32 %v1188_v32  ;;  %v1693_v33 = vcvt.s32.f32 %v1181_v14 }
 0x446   : > { %v3600_v34 = vpop.f32.mrf.mxu2  ;;  %v3264_v7 = vpop.f32.mrf.mxu0 }
 0x447   : > { %v3769_v5 = vpop.f32.mrf.mxu3  ;;  %v3601_v56 = vadd.f32 %v3600_v34, %v3432_v51  ;;  %v3433_v37 = vpop.f32.mrf.mxu1  ;;  %v3265_v38 = vadd.f32 %v3264_v7, %v8563_v36  ;;  %v8565_v51 = vld [vmem:[#allocation32_spill] sm:$0xff]  ;;  %v1698_v34 = vcvt.s32.f32 %v1186_v23 }
 0x449   : > { %v3770_v35 = vadd.f32 %v3769_v5, %v3601_v56  ;;  %v3434_v46 = vadd.f32 %v3433_v37, %v3265_v38  ;;  %v1691_v5 = vcvt.s32.f32 %v1179_v3  ;;  %v1701_v56 = vcvt.s32.f32 %v1189_v16  ;;  %v2087_v38 = vld [vmem:[#allocation2 + $0x1d0] sm:$0xff] }
 0x44a   : > { %v2002_v58 = vpack.c.bf16 %v1698_v34, %v1690_v22 }
 0x44b   : > { %v3884_v20 = vadd.f32 %v3770_v35, %v2084_v43  ;;  %v2003_v59 = vpack.c.bf16 %v1699_v12, %v1691_v5  ;;  %v2004_v35 = vpack.c.bf16 %v1700_v10, %v1692_v31  ;;  %v2005_v36 = vpack.c.bf16 %v1701_v56, %v1693_v33  ;;  %v2089_v12 = vld [vmem:[#allocation2 + $0xc8] sm:$0xff] }
 0x44d   : > { %3948 = vst [vmem:[#allocation2 + $0xf0] sm:$0xff] %v3884_v20  ;;  %v8021_v20 = vld [vmem:[%s7223_s13 + $0x368] sm:$0xff] }
 0x44e   : > { %v3602_v28 = vpop.f32.mrf.mxu2  ;;  %v3267_v30 = vpop.f32.mrf.mxu0 }
 0x44f   : > { %v3771_v62 = vpop.f32.mrf.mxu3  ;;  %v3603_v11 = vadd.f32 %v3602_v28, %v3434_v46  ;;  %v3436_v2 = vpop.f32.mrf.mxu1  ;;  %v3268_v41 = vadd.f32 %v3267_v30, %v8564_v45  ;;  %v1194_v46 = vunpack.c.0.s8 %v8018_v44  ;;  %v1196_v30 = vunpack.c.0.s8 %v8024_v60 }
 0x450   : > { %v1205_v45 = vunpack.c.1.s8 %v8027_v48 }
 0x451   : > { %v3772_v29 = vadd.f32 %v3771_v62, %v3603_v11  ;;  %3306 = vmatmul.bf16.gmra.mxu0 %v1994_v19  ;;  %v3437_v42 = vadd.f32 %v3436_v2, %v3268_v41  ;;  %v1202_v19 = vunpack.c.1.s8 %v8018_v44  ;;  %v1203_v11 = vunpack.c.1.s8 %v8021_v20  ;;  %v2088_v41 = vld [vmem:[#allocation2 + $0x100] sm:$0xff] }
 0x452   : > { %3475 = vmatmul.bf16.gmra.mxu1 %v1995_v47  ;;  %v1195_v47 = vunpack.c.0.s8 %v8021_v20  ;;  %v1708_v57 = vcvt.s32.f32 %v1196_v30 }
 0x453   : > { %v3885_v21 = vadd.f32 %v3772_v29, %v2085_v17  ;;  %3644 = vmatmul.bf16.gmra.mxu2 %v1996_v53  ;;  %v1204_v17 = vunpack.c.1.s8 %v8024_v60  ;;  %v1197_v29 = vunpack.c.0.s8 %v8027_v48  ;;  %v1715_v3 = vcvt.s32.f32 %v1203_v11 }
 0x454   : > { %3813 = vmatmul.bf16.gmra.mxu3 %v1997_v8  ;;  %v1707_v23 = vcvt.s32.f32 %v1195_v47 }
 0x455   : > { %3949 = vst [vmem:[#allocation2 + $0x8] sm:$0xff] %v3885_v21 }
 0x456   : > { %v3605_v52 = vpop.f32.mrf.mxu2  ;;  %v3269_v63 = vpop.f32.mrf.mxu0 }
 0x457   : > { %v3774_v39 = vpop.f32.mrf.mxu3  ;;  %v3606_v6 = vadd.f32 %v3605_v52, %v3437_v42  ;;  %v3438_v50 = vpop.f32.mrf.mxu1  ;;  %v3270_v49 = vadd.f32 %v3269_v63, %v8565_v51  ;;  %v8567_v42 = vld [vmem:[#allocation34_spill] sm:$0xff]  ;;  %v1706_v52 = vcvt.s32.f32 %v1194_v46  ;;  %v1709_v63 = vcvt.s32.f32 %v1197_v29 }
 0x459   : > { %v3775_v13 = vadd.f32 %v3774_v39, %v3606_v6  ;;  %v3439_v40 = vadd.f32 %v3438_v50, %v3270_v49  ;;  %v1714_v39 = vcvt.s32.f32 %v1202_v19  ;;  %v1716_v6 = vcvt.s32.f32 %v1204_v17 }
 0x45a   : > { %v1717_v50 = vcvt.s32.f32 %v1205_v45 }
 0x45b   : > { %v3886_v54 = vadd.f32 %v3775_v13, %v2086_v26  ;;  %v2010_v26 = vpack.c.bf16 %v1714_v39, %v1706_v52  ;;  %v2011_v13 = vpack.c.bf16 %v1715_v3, %v1707_v23  ;;  %v2012_v34 = vpack.c.bf16 %v1716_v6, %v1708_v57  ;;  %v8570_v39 = vld [vmem:[#allocation37_spill] sm:$0xff]  ;;  %v8050_v3 = vld [vmem:[%s7223_s13 + $0x3a0] sm:$0xff] }
 0x45c   : > { %v2013_v5 = vpack.c.bf16 %v1717_v50, %v1709_v63  ;;  %v8056_v6 = vld [vmem:[%s7223_s13 + $0x3b0] sm:$0xff]  ;;  %v8059_v63 = vld [vmem:[%s7223_s13 + $0x3b8] sm:$0xff] }
 0x45d   : > { %3950 = vst [vmem:[#allocation2 + $0x148] sm:$0xff] %v3886_v54  ;;  %v8568_v54 = vld [vmem:[#allocation35_spill] sm:$0xff] }
 0x45e   : > { %v3607_v7 = vpop.f32.mrf.mxu2  ;;  %v3272_v27 = vpop.f32.mrf.mxu0 }
 0x45f   : > { %v3776_v37 = vpop.f32.mrf.mxu3  ;;  %v3608_v55 = vadd.f32 %v3607_v7, %v3439_v40  ;;  %v3441_v43 = vpop.f32.mrf.mxu1  ;;  %v3273_v1 = vadd.f32 %v3272_v27, %v8566_v61  ;;  %v1210_v40 = vunpack.c.2.s8 %v8018_v44  ;;  %v1212_v27 = vunpack.c.2.s8 %v8024_v60 }
 0x460   : > { %v1221_v61 = vunpack.c.3.s8 %v8027_v48 }
 0x461   : > { %v3777_v25 = vadd.f32 %v3776_v37, %v3608_v55  ;;  %3311 = vmatmul.bf16.gmra.mxu0 %v2002_v58  ;;  %v3442_v9 = vadd.f32 %v3441_v43, %v3273_v1  ;;  %v1218_v58 = vunpack.c.3.s8 %v8018_v44  ;;  %v1219_v55 = vunpack.c.3.s8 %v8021_v20  ;;  %v2090_v1 = vld [vmem:[#allocation2 + $0x40] sm:$0xff] }
 0x462   : > { %3480 = vmatmul.bf16.gmra.mxu1 %v2003_v59  ;;  %v1211_v59 = vunpack.c.2.s8 %v8021_v20  ;;  %v1722_v44 = vcvt.s32.f32 %v1210_v40  ;;  %v1724_v20 = vcvt.s32.f32 %v1212_v27 }
 0x463   : > { %v3887_v24 = vadd.f32 %v3777_v25, %v2087_v38  ;;  %3649 = vmatmul.bf16.gmra.mxu2 %v2004_v35  ;;  %v1220_v38 = vunpack.c.3.s8 %v8024_v60  ;;  %v1213_v25 = vunpack.c.2.s8 %v8027_v48  ;;  %v1731_v19 = vcvt.s32.f32 %v1219_v55 }
 0x464   : > { %3818 = vmatmul.bf16.gmra.mxu3 %v2005_v36 }
 0x465   : > { %3951 = vst [vmem:[#allocation2 + $0x1d0] sm:$0xff] %v3887_v24  ;;  %v1732_v11 = vcvt.s32.f32 %v1220_v38  ;;  %v1725_v30 = vcvt.s32.f32 %v1213_v25 }
 0x466   : > { %v3610_v28 = vpop.f32.mrf.mxu2  ;;  %v3274_v53 = vpop.f32.mrf.mxu0 }
 0x467   : > { %v3779_v62 = vpop.f32.mrf.mxu3  ;;  %v3611_v2 = vadd.f32 %v3610_v28, %v3442_v9  ;;  %v3443_v8 = vpop.f32.mrf.mxu1  ;;  %v3275_v18 = vadd.f32 %v3274_v53, %v8567_v42  ;;  %v8569_v9 = vld [vmem:[#allocation36_spill] sm:$0xff]  ;;  %v1730_v28 = vcvt.s32.f32 %v1218_v58 }
 0x469   : > { %v3780_v21 = vadd.f32 %v3779_v62, %v3611_v2  ;;  %v3444_v32 = vadd.f32 %v3443_v8, %v3275_v18  ;;  %v1723_v62 = vcvt.s32.f32 %v1211_v59  ;;  %v1733_v2 = vcvt.s32.f32 %v1221_v61  ;;  %v2091_v18 = vld [vmem:[#allocation2 + $0x1f8] sm:$0xff] }
 0x46a   : > { %v2018_v17 = vpack.c.bf16 %v1730_v28, %v1722_v44 }
 0x46b   : > { %v3888_v15 = vadd.f32 %v3780_v21, %v2088_v41  ;;  %v2019_v48 = vpack.c.bf16 %v1731_v19, %v1723_v62  ;;  %v2020_v21 = vpack.c.bf16 %v1732_v11, %v1724_v20  ;;  %v2021_v42 = vpack.c.bf16 %v1733_v2, %v1725_v30  ;;  %v2093_v19 = vld [vmem:[#allocation2 + $0x128] sm:$0xff] }
 0x46d   : > { %3952 = vst [vmem:[#allocation2 + $0x100] sm:$0xff] %v3888_v15  ;;  %v8053_v15 = vld [vmem:[%s7223_s13 + $0x3a8] sm:$0xff] }
 0x46e   : > { %v3612_v14 = vpop.f32.mrf.mxu2  ;;  %v3277_v49 = vpop.f32.mrf.mxu0 }
 0x46f   : > { %v3781_v16 = vpop.f32.mrf.mxu3  ;;  %v3613_v51 = vadd.f32 %v3612_v14, %v3444_v32  ;;  %v3446_v22 = vpop.f32.mrf.mxu1  ;;  %v3278_v10 = vadd.f32 %v3277_v49, %v8568_v54  ;;  %v1226_v32 = vunpack.c.0.s8 %v8050_v3  ;;  %v1228_v49 = vunpack.c.0.s8 %v8056_v6 }
 0x470   : > { %v1237_v54 = vunpack.c.1.s8 %v8059_v63 }
 0x471   : > { %v3782_v31 = vadd.f32 %v3781_v16, %v3613_v51  ;;  %3316 = vmatmul.bf16.gmra.mxu0 %v2010_v26  ;;  %v3447_v56 = vadd.f32 %v3446_v22, %v3278_v10  ;;  %v1234_v26 = vunpack.c.1.s8 %v8050_v3  ;;  %v1235_v51 = vunpack.c.1.s8 %v8053_v15  ;;  %v2092_v10 = vld [vmem:[#allocation2 + $0x20] sm:$0xff] }
 0x472   : > { %3485 = vmatmul.bf16.gmra.mxu1 %v2011_v13  ;;  %v1227_v13 = vunpack.c.0.s8 %v8053_v15  ;;  %v1740_v55 = vcvt.s32.f32 %v1228_v49 }
 0x473   : > { %v3889_v33 = vadd.f32 %v3782_v31, %v2089_v12  ;;  %3654 = vmatmul.bf16.gmra.mxu2 %v2012_v34  ;;  %v1236_v12 = vunpack.c.1.s8 %v8056_v6  ;;  %v1229_v31 = vunpack.c.0.s8 %v8059_v63  ;;  %v1747_v59 = vcvt.s32.f32 %v1235_v51 }
 0x474   : > { %3823 = vmatmul.bf16.gmra.mxu3 %v2013_v5  ;;  %v1739_v58 = vcvt.s32.f32 %v1227_v13 }
 0x475   : > { %3953 = vst [vmem:[#allocation2 + $0xc8] sm:$0xff] %v3889_v33 }
 0x476   : > { %v3615_v7 = vpop.f32.mrf.mxu2  ;;  %v3279_v35 = vpop.f32.mrf.mxu0 }
 0x477   : > { %v3784_v37 = vpop.f32.mrf.mxu3  ;;  %v3616_v43 = vadd.f32 %v3615_v7, %v3447_v56  ;;  %v3448_v36 = vpop.f32.mrf.mxu1  ;;  %v3280_v46 = vadd.f32 %v3279_v35, %v8569_v9  ;;  %v8571_v56 = vld [vmem:[#allocation38_spill] sm:$0xff]  ;;  %v1738_v7 = vcvt.s32.f32 %v1226_v32  ;;  %v1741_v35 = vcvt.s32.f32 %v1229_v31 }
 0x479   : > { %v3785_v24 = vadd.f32 %v3784_v37, %v3616_v43  ;;  %v3449_v60 = vadd.f32 %v3448_v36, %v3280_v46  ;;  %v1746_v37 = vcvt.s32.f32 %v1234_v26  ;;  %v1748_v43 = vcvt.s32.f32 %v1236_v12 }
 0x47a   : > { %v1749_v36 = vcvt.s32.f32 %v1237_v54 }
 0x47b   : > { %v3890_v47 = vadd.f32 %v3785_v24, %v2090_v1  ;;  %v2026_v1 = vpack.c.bf16 %v1746_v37, %v1738_v7  ;;  %v2027_v24 = vpack.c.bf16 %v1747_v59, %v1739_v58  ;;  %v2028_v28 = vpack.c.bf16 %v1748_v43, %v1740_v55  ;;  %v8574_v37 = vld [vmem:[#allocation41_spill] sm:$0xff]  ;;  %v8082_v59 = vld [vmem:[%s7223_s13 + $0x3e0] sm:$0xff] }
 0x47c   : > { %v2029_v62 = vpack.c.bf16 %v1749_v36, %v1741_v35  ;;  %v8088_v43 = vld [vmem:[%s7223_s13 + $0x3f0] sm:$0xff]  ;;  %v8091_v35 = vld [vmem:[%s7223_s13 + $0x3f8] sm:$0xff] }
 0x47d   : > { %3954 = vst [vmem:[#allocation2 + $0x40] sm:$0xff] %v3890_v47  ;;  %v8572_v47 = vld [vmem:[#allocation39_spill] sm:$0xff] }
 0x47e   : > { %v3617_v53 = vpop.f32.mrf.mxu2  ;;  %v3282_v45 = vpop.f32.mrf.mxu0 }
 0x47f   : > { %v3786_v8 = vpop.f32.mrf.mxu3  ;;  %v3618_v29 = vadd.f32 %v3617_v53, %v3449_v60  ;;  %v3451_v41 = vpop.f32.mrf.mxu1  ;;  %v3283_v23 = vadd.f32 %v3282_v45, %v8570_v39  ;;  %v1242_v60 = vunpack.c.2.s8 %v8050_v3  ;;  %v1244_v45 = vunpack.c.2.s8 %v8056_v6 }
 0x480   : > { %v1253_v39 = vunpack.c.3.s8 %v8059_v63 }
 0x481   : > { %v3787_v52 = vadd.f32 %v3786_v8, %v3618_v29  ;;  %3321 = vmatmul.bf16.gmra.mxu0 %v2018_v17  ;;  %v3452_v50 = vadd.f32 %v3451_v41, %v3283_v23  ;;  %v1250_v17 = vunpack.c.3.s8 %v8050_v3  ;;  %v1251_v29 = vunpack.c.3.s8 %v8053_v15  ;;  %v2094_v23 = vld [vmem:[#allocation2 + $0x1a0] sm:$0xff] }
 0x482   : > { %3490 = vmatmul.bf16.gmra.mxu1 %v2019_v48  ;;  %v1243_v48 = vunpack.c.2.s8 %v8053_v15  ;;  %v1754_v3 = vcvt.s32.f32 %v1242_v60  ;;  %v1756_v15 = vcvt.s32.f32 %v1244_v45 }
 0x483   : > { %v3891_v57 = vadd.f32 %v3787_v52, %v2091_v18  ;;  %3659 = vmatmul.bf16.gmra.mxu2 %v2020_v21  ;;  %v1252_v18 = vunpack.c.3.s8 %v8056_v6  ;;  %v1245_v52 = vunpack.c.2.s8 %v8059_v63  ;;  %v1763_v26 = vcvt.s32.f32 %v1251_v29 }
 0x484   : > { %3828 = vmatmul.bf16.gmra.mxu3 %v2021_v42 }
 0x485   : > { %3955 = vst [vmem:[#allocation2 + $0x1f8] sm:$0xff] %v3891_v57  ;;  %v1764_v51 = vcvt.s32.f32 %v1252_v18  ;;  %v1757_v49 = vcvt.s32.f32 %v1245_v52 }
 0x486   : > { %v3620_v14 = vpop.f32.mrf.mxu2  ;;  %v3284_v34 = vpop.f32.mrf.mxu0 }
 0x487   : > { %v3789_v16 = vpop.f32.mrf.mxu3  ;;  %v3621_v22 = vadd.f32 %v3620_v14, %v3452_v50  ;;  %v3453_v5 = vpop.f32.mrf.mxu1  ;;  %v3285_v40 = vadd.f32 %v3284_v34, %v8571_v56  ;;  %v8573_v50 = vld [vmem:[#allocation40_spill] sm:$0xff]  ;;  %v1762_v14 = vcvt.s32.f32 %v1250_v17 }
 0x489   : > { %v3790_v33 = vadd.f32 %v3789_v16, %v3621_v22  ;;  %v3454_v38 = vadd.f32 %v3453_v5, %v3285_v40  ;;  %v1755_v16 = vcvt.s32.f32 %v1243_v48  ;;  %v1765_v22 = vcvt.s32.f32 %v1253_v39  ;;  %v2095_v40 = vld [vmem:[#allocation2 + $0x1f0] sm:$0xff] }
 0x48a   : > { %v2034_v12 = vpack.c.bf16 %v1762_v14, %v1754_v3 }
 0x48b   : > { %v3892_v27 = vadd.f32 %v3790_v33, %v2092_v10  ;;  %v2035_v63 = vpack.c.bf16 %v1763_v26, %v1755_v16  ;;  %v2036_v33 = vpack.c.bf16 %v1764_v51, %v1756_v15  ;;  %v2037_v56 = vpack.c.bf16 %v1765_v22, %v1757_v49  ;;  %v2097_v26 = vld [vmem:[#allocation2 + $0x78] sm:$0xff] }
 0x48d   : > { %3956 = vst [vmem:[#allocation2 + $0x20] sm:$0xff] %v3892_v27  ;;  %v8085_v27 = vld [vmem:[%s7223_s13 + $0x3e8] sm:$0xff] }
 0x48e   : > { %v3622_v25 = vpop.f32.mrf.mxu2  ;;  %v3287_v46 = vpop.f32.mrf.mxu0 }
 0x48f   : > { %v3791_v61 = vpop.f32.mrf.mxu3  ;;  %v3623_v9 = vadd.f32 %v3622_v25, %v3454_v38  ;;  %v3456_v44 = vpop.f32.mrf.mxu1  ;;  %v3288_v11 = vadd.f32 %v3287_v46, %v8572_v47  ;;  %v1258_v38 = vunpack.c.0.s8 %v8082_v59  ;;  %v1260_v46 = vunpack.c.0.s8 %v8088_v43 }
 0x490   : > { %v1269_v47 = vunpack.c.1.s8 %v8091_v35 }
 0x491   : > { %v3792_v20 = vadd.f32 %v3791_v61, %v3623_v9  ;;  %3326 = vmatmul.bf16.gmra.mxu0 %v2026_v1  ;;  %v3457_v2 = vadd.f32 %v3456_v44, %v3288_v11  ;;  %v1266_v1 = vunpack.c.1.s8 %v8082_v59  ;;  %v1267_v9 = vunpack.c.1.s8 %v8085_v27  ;;  %v2096_v11 = vld [vmem:[#allocation2 + $0xe8] sm:$0xff] }
 0x492   : > { %3495 = vmatmul.bf16.gmra.mxu1 %v2027_v24  ;;  %v1259_v24 = vunpack.c.0.s8 %v8085_v27  ;;  %v1772_v29 = vcvt.s32.f32 %v1260_v46 }
 0x493   : > { %v3893_v30 = vadd.f32 %v3792_v20, %v2093_v19  ;;  %3664 = vmatmul.bf16.gmra.mxu2 %v2028_v28  ;;  %v1268_v19 = vunpack.c.1.s8 %v8088_v43  ;;  %v1261_v20 = vunpack.c.0.s8 %v8091_v35  ;;  %v1779_v48 = vcvt.s32.f32 %v1267_v9 }
 0x494   : > { %3833 = vmatmul.bf16.gmra.mxu3 %v2029_v62  ;;  %v1771_v17 = vcvt.s32.f32 %v1259_v24 }
 0x495   : > { %3957 = vst [vmem:[#allocation2 + $0x128] sm:$0xff] %v3893_v30 }
 0x496   : > { %v3625_v53 = vpop.f32.mrf.mxu2  ;;  %v3289_v21 = vpop.f32.mrf.mxu0 }
 0x497   : > { %v3794_v8 = vpop.f32.mrf.mxu3  ;;  %v3626_v41 = vadd.f32 %v3625_v53, %v3457_v2  ;;  %v3458_v42 = vpop.f32.mrf.mxu1  ;;  %v3290_v32 = vadd.f32 %v3289_v21, %v8573_v50  ;;  %v8575_v2 = vld [vmem:[#allocation42_spill] sm:$0xff]  ;;  %v1770_v53 = vcvt.s32.f32 %v1258_v38  ;;  %v1773_v21 = vcvt.s32.f32 %v1261_v20 }
 0x499   : > { %v3795_v57 = vadd.f32 %v3794_v8, %v3626_v41  ;;  %v3459_v6 = vadd.f32 %v3458_v42, %v3290_v32  ;;  %v1778_v8 = vcvt.s32.f32 %v1266_v1  ;;  %v1780_v41 = vcvt.s32.f32 %v1268_v19 }
 0x49a   : > { %v1781_v42 = vcvt.s32.f32 %v1269_v47 }
 0x49b   : > { %v3894_v13 = vadd.f32 %v3795_v57, %v2094_v23  ;;  %v2042_v23 = vpack.c.bf16 %v1778_v8, %v1770_v53  ;;  %v2043_v57 = vpack.c.bf16 %v1779_v48, %v1771_v17  ;;  %v2044_v14 = vpack.c.bf16 %v1780_v41, %v1772_v29  ;;  %v8578_v8 = vld [vmem:[#allocation45_spill] sm:$0xff] }
 0x49c   : > { %v2045_v16 = vpack.c.bf16 %v1781_v42, %v1773_v21 }
 0x49d   : > { %3958 = vst [vmem:[#allocation2 + $0x1a0] sm:$0xff] %v3894_v13  ;;  %v8576_v13 = vld [vmem:[#allocation43_spill] sm:$0xff] }
 0x49e   : > { %v3627_v34 = vpop.f32.mrf.mxu2  ;;  %v3292_v54 = vpop.f32.mrf.mxu0 }
 0x49f   : > { %v3796_v5 = vpop.f32.mrf.mxu3  ;;  %v3628_v31 = vadd.f32 %v3627_v34, %v3459_v6  ;;  %v3461_v10 = vpop.f32.mrf.mxu1  ;;  %v3293_v58 = vadd.f32 %v3292_v54, %v8574_v37  ;;  %v1274_v6 = vunpack.c.2.s8 %v8082_v59  ;;  %v1276_v54 = vunpack.c.2.s8 %v8088_v43 }
 0x4a0   : > { %v1285_v37 = vunpack.c.3.s8 %v8091_v35 }
 0x4a1   : > { %v3797_v7 = vadd.f32 %v3796_v5, %v3628_v31  ;;  %3331 = vmatmul.bf16.gmra.mxu0 %v2034_v12  ;;  %v3462_v36 = vadd.f32 %v3461_v10, %v3293_v58  ;;  %v1282_v12 = vunpack.c.3.s8 %v8082_v59  ;;  %v1283_v31 = vunpack.c.3.s8 %v8085_v27  ;;  %v2098_v58 = vld [vmem:[#allocation2 + $0x70] sm:$0xff] }
 0x4a2   : > { %3500 = vmatmul.bf16.gmra.mxu1 %v2035_v63  ;;  %v1275_v63 = vunpack.c.2.s8 %v8085_v27  ;;  %v1786_v59 = vcvt.s32.f32 %v1274_v6  ;;  %v1788_v27 = vcvt.s32.f32 %v1276_v54 }
 0x4a3   : > { %v3895_v55 = vadd.f32 %v3797_v7, %v2095_v40  ;;  %3669 = vmatmul.bf16.gmra.mxu2 %v2036_v33  ;;  %v1284_v40 = vunpack.c.3.s8 %v8088_v43  ;;  %v1277_v7 = vunpack.c.2.s8 %v8091_v35  ;;  %v1795_v1 = vcvt.s32.f32 %v1283_v31 }
 0x4a4   : > { %3838 = vmatmul.bf16.gmra.mxu3 %v2037_v56 }
 0x4a5   : > { %3959 = vst [vmem:[#allocation2 + $0x1f0] sm:$0xff] %v3895_v55  ;;  %v1796_v9 = vcvt.s32.f32 %v1284_v40  ;;  %v1789_v46 = vcvt.s32.f32 %v1277_v7 }
 0x4a6   : > { %v3630_v25 = vpop.f32.mrf.mxu2  ;;  %v3294_v28 = vpop.f32.mrf.mxu0 }
 0x4a7   : > { %v3799_v61 = vpop.f32.mrf.mxu3  ;;  %v3631_v44 = vadd.f32 %v3630_v25, %v3462_v36  ;;  %v3463_v62 = vpop.f32.mrf.mxu1  ;;  %v3295_v60 = vadd.f32 %v3294_v28, %v8575_v2  ;;  %v8577_v36 = vld [vmem:[#allocation44_spill] sm:$0xff]  ;;  %v1794_v25 = vcvt.s32.f32 %v1282_v12 }
 0x4a9   : > { %v3800_v30 = vadd.f32 %v3799_v61, %v3631_v44  ;;  %v3464_v18 = vadd.f32 %v3463_v62, %v3295_v60  ;;  %v1787_v61 = vcvt.s32.f32 %v1275_v63  ;;  %v1797_v44 = vcvt.s32.f32 %v1285_v37  ;;  %v2099_v60 = vld [vmem:[#allocation2 + $0x90] sm:$0xff] }
 0x4aa   : > { %v2050_v19 = vpack.c.bf16 %v1794_v25, %v1786_v59  ;;  %v2103_v25 = vld [vmem:[#allocation2 + $0x88] sm:$0xff] }
 0x4ab   : > { %v3896_v45 = vadd.f32 %v3800_v30, %v2096_v11  ;;  %v2051_v20 = vpack.c.bf16 %v1795_v1, %v1787_v61  ;;  %v2052_v30 = vpack.c.bf16 %v1796_v9, %v1788_v27  ;;  %v2053_v2 = vpack.c.bf16 %v1797_v44, %v1789_v46  ;;  %v8582_v1 = vld [vmem:[#allocation49_spill] sm:$0xff] }
 0x4ad   : > { %3960 = vst [vmem:[#allocation2 + $0xe8] sm:$0xff] %v3896_v45 }
 0x4ae   : > { %v3632_v52 = vpop.f32.mrf.mxu2  ;;  %v3297_v32 = vpop.f32.mrf.mxu0 }
 0x4af   : > { %v3801_v39 = vpop.f32.mrf.mxu3  ;;  %v3633_v50 = vadd.f32 %v3632_v52, %v3464_v18  ;;  %v3466_v3 = vpop.f32.mrf.mxu1  ;;  %v3298_v51 = vadd.f32 %v3297_v32, %v8576_v13  ;;  %v2100_v52 = vld [vmem:[#allocation2 + $0x1d8] sm:$0xff]  ;;  %v2101_v13 = vld [vmem:[#allocation2 + $0xd0] sm:$0xff] }
 0x4b1   : > { %v3802_v15 = vadd.f32 %v3801_v39, %v3633_v50  ;;  %3336 = vmatmul.bf16.gmra.mxu0 %v2042_v23  ;;  %v3467_v22 = vadd.f32 %v3466_v3, %v3298_v51  ;;  %v8579_v23 = vld [vmem:[#allocation46_spill] sm:$0xff] }
 0x4b2   : > { %3505 = vmatmul.bf16.gmra.mxu1 %v2043_v57 }
 0x4b3   : > { %v3897_v49 = vadd.f32 %v3802_v15, %v2097_v26  ;;  %3674 = vmatmul.bf16.gmra.mxu2 %v2044_v14 }
 0x4b4   : > { %3843 = vmatmul.bf16.gmra.mxu3 %v2045_v16 }
 0x4b5   : > { %3961 = vst [vmem:[#allocation2 + $0x78] sm:$0xff] %v3897_v49  ;;  %v8580_v49 = vld [vmem:[#allocation47_spill] sm:$0xff] }
 0x4b6   : > { %v3635_v34 = vpop.f32.mrf.mxu2  ;;  %v3299_v33 = vpop.f32.mrf.mxu0 }
 0x4b7   : > { %v3804_v5 = vpop.f32.mrf.mxu3  ;;  %v3636_v10 = vadd.f32 %v3635_v34, %v3467_v22  ;;  %v3468_v56 = vpop.f32.mrf.mxu1  ;;  %v3300_v38 = vadd.f32 %v3299_v33, %v8577_v36 }
 0x4b9   : > { %v3805_v55 = vadd.f32 %v3804_v5, %v3636_v10  ;;  %v3469_v28 = vadd.f32 %v3468_v56, %v3300_v38  ;;  %v2102_v10 = vld [vmem:[#allocation2 + $0xb8] sm:$0xff]  ;;  %v8581_v56 = vld [vmem:[#allocation48_spill] sm:$0xff] }
 0x4bb   : > { %v3898_v24 = vadd.f32 %v3805_v55, %v2098_v58 }
 0x4bd   : > { %3962 = vst [vmem:[#allocation2 + $0x70] sm:$0xff] %v3898_v24 }
 0x4be   : > { %v3637_v43 = vpop.f32.mrf.mxu2  ;;  %v3302_v47 = vpop.f32.mrf.mxu0 }
 0x4bf   : > { %v3806_v62 = vpop.f32.mrf.mxu3  ;;  %v3638_v35 = vadd.f32 %v3637_v43, %v3469_v28  ;;  %v3471_v11 = vpop.f32.mrf.mxu1  ;;  %v3303_v17 = vadd.f32 %v3302_v47, %v8578_v8 }
 0x4c1   : > { %v3807_v53 = vadd.f32 %v3806_v62, %v3638_v35  ;;  %3341 = vmatmul.bf16.gmra.mxu0 %v2050_v19  ;;  %v3472_v29 = vadd.f32 %v3471_v11, %v3303_v17  ;;  %v2104_v19 = vld [vmem:[#allocation2 + $0xa8] sm:$0xff]  ;;  %v8583_v35 = vld [vmem:[#allocation50_spill] sm:$0xff] }
 0x4c2   : > { %3510 = vmatmul.bf16.gmra.mxu1 %v2051_v20 }
 0x4c3   : > { %v3899_v48 = vadd.f32 %v3807_v53, %v2099_v60  ;;  %3679 = vmatmul.bf16.gmra.mxu2 %v2052_v30 }
 0x4c4   : > { %3848 = vmatmul.bf16.gmra.mxu3 %v2053_v2 }
 0x4c5   : > { %3963 = vst [vmem:[#allocation2 + $0x90] sm:$0xff] %v3899_v48  ;;  %v2105_v48 = vld [vmem:[#allocation2 + $0x1c8] sm:$0xff] }
 0x4c6   : > { %v3640_v45 = vpop.f32.mrf.mxu2  ;;  %v3304_v42 = vpop.f32.mrf.mxu0 }
 0x4c7   : > { %v3809_v41 = vpop.f32.mrf.mxu3  ;;  %v3641_v21 = vadd.f32 %v3640_v45, %v3472_v29  ;;  %v3473_v18 = vpop.f32.mrf.mxu1  ;;  %v3305_v57 = vadd.f32 %v3304_v42, %v8579_v23  ;;  %v8584_v45 = vld [vmem:[#allocation51_spill] sm:$0xff] }
 0x4c9   : > { %v3810_v39 = vadd.f32 %v3809_v41, %v3641_v21  ;;  %v3474_v32 = vadd.f32 %v3473_v18, %v3305_v57 }
 0x4cb   : > { %v3900_v50 = vadd.f32 %v3810_v39, %v2100_v52 }
 0x4cd   : > { %3964 = vst [vmem:[#allocation2 + $0x1d8] sm:$0xff] %v3900_v50  ;;  %v2106_v50 = vld [vmem:[#allocation2 + $0x170] sm:$0xff] }
 0x4ce   : > { %v3642_v3 = vpop.f32.mrf.mxu2  ;;  %v3307_v26 = vpop.f32.mrf.mxu0 }
 0x4cf   : > { %v3811_v14 = vpop.f32.mrf.mxu3  ;;  %v3643_v16 = vadd.f32 %v3642_v3, %v3474_v32  ;;  %v3476_v15 = vpop.f32.mrf.mxu1  ;;  %v3308_v22 = vadd.f32 %v3307_v26, %v8580_v49  ;;  %v8585_v3 = vld [vmem:[#allocation52_spill] sm:$0xff] }
 0x4d1   : > { %v3812_v51 = vadd.f32 %v3811_v14, %v3643_v16  ;;  %v3477_v34 = vadd.f32 %v3476_v15, %v3308_v22 }
 0x4d3   : > { %v3901_v6 = vadd.f32 %v3812_v51, %v2101_v13 }
 0x4d5   : > { %3965 = vst [vmem:[#allocation2 + $0xd0] sm:$0xff] %v3901_v6  ;;  %v2107_v6 = vld [vmem:[#allocation2 + $0x178] sm:$0xff] }
 0x4d6   : > { %v3645_v5 = vpop.f32.mrf.mxu2  ;;  %v3309_v31 = vpop.f32.mrf.mxu0 }
 0x4d7   : > { %v3814_v12 = vpop.f32.mrf.mxu3  ;;  %v3646_v63 = vadd.f32 %v3645_v5, %v3477_v34  ;;  %v3478_v54 = vpop.f32.mrf.mxu1  ;;  %v3310_v40 = vadd.f32 %v3309_v31, %v8581_v56  ;;  %v8586_v5 = vld [vmem:[#allocation53_spill] sm:$0xff] }
 0x4d9   : > { %v3815_v33 = vadd.f32 %v3814_v12, %v3646_v63  ;;  %v3479_v37 = vadd.f32 %v3478_v54, %v3310_v40 }
 0x4db   : > { %v3902_v7 = vadd.f32 %v3815_v33, %v2102_v10 }
 0x4dd   : > { %3966 = vst [vmem:[#allocation2 + $0xb8] sm:$0xff] %v3902_v7  ;;  %v2108_v7 = vld [vmem:[#allocation2 + $0x68] sm:$0xff] }
 0x4de   : > { %v3647_v58 = vpop.f32.mrf.mxu2  ;;  %v3312_v38 = vpop.f32.mrf.mxu0 }
 0x4df   : > { %v3816_v55 = vpop.f32.mrf.mxu3  ;;  %v3648_v36 = vadd.f32 %v3647_v58, %v3479_v37  ;;  %v3481_v59 = vpop.f32.mrf.mxu1  ;;  %v3313_v27 = vadd.f32 %v3312_v38, %v8582_v1  ;;  %v8587_v58 = vld [vmem:[#allocation54_spill] sm:$0xff] }
 0x4e1   : > { %v3817_v61 = vadd.f32 %v3816_v55, %v3648_v36  ;;  %v3482_v9 = vadd.f32 %v3481_v59, %v3313_v27 }
 0x4e3   : > { %v3903_v24 = vadd.f32 %v3817_v61, %v2103_v25 }
 0x4e5   : > { %3967 = vst [vmem:[#allocation2 + $0x88] sm:$0xff] %v3903_v24  ;;  %v2109_v24 = vld [vmem:[#allocation2 + $0x190] sm:$0xff] }
 0x4e6   : > { %v3650_v46 = vpop.f32.mrf.mxu2  ;;  %v3314_v43 = vpop.f32.mrf.mxu0 }
 0x4e7   : > { %v3819_v44 = vpop.f32.mrf.mxu3  ;;  %v3651_v28 = vadd.f32 %v3650_v46, %v3482_v9  ;;  %v3483_v62 = vpop.f32.mrf.mxu1  ;;  %v3315_v47 = vadd.f32 %v3314_v43, %v8583_v35  ;;  %v8588_v46 = vld [vmem:[#allocation55_spill] sm:$0xff] }
 0x4e9   : > { %v3820_v20 = vadd.f32 %v3819_v44, %v3651_v28  ;;  %v3484_v30 = vadd.f32 %v3483_v62, %v3315_v47 }
 0x4eb   : > { %v3904_v11 = vadd.f32 %v3820_v20, %v2104_v19 }
 0x4ed   : > { %3968 = vst [vmem:[#allocation2 + $0xa8] sm:$0xff] %v3904_v11  ;;  %v2110_v11 = vld [vmem:[#allocation2 + $0x198] sm:$0xff] }
 0x4ee   : > { %v3652_v2 = vpop.f32.mrf.mxu2  ;;  %v3317_v8 = vpop.f32.mrf.mxu0 }
 0x4ef   : > { %v3821_v60 = vpop.f32.mrf.mxu3  ;;  %v3653_v53 = vadd.f32 %v3652_v2, %v3484_v30  ;;  %v3486_v17 = vpop.f32.mrf.mxu1  ;;  %v3318_v41 = vadd.f32 %v3317_v8, %v8584_v45  ;;  %v8589_v2 = vld [vmem:[#allocation56_spill] sm:$0xff] }
 0x4f1   : > { %v3822_v29 = vadd.f32 %v3821_v60, %v3653_v53  ;;  %v3487_v42 = vadd.f32 %v3486_v17, %v3318_v41 }
 0x4f3   : > { %v3905_v21 = vadd.f32 %v3822_v29, %v2105_v48 }
 0x4f5   : > { %3969 = vst [vmem:[#allocation2 + $0x1c8] sm:$0xff] %v3905_v21  ;;  %v2111_v21 = vld [vmem:[#allocation2 + $0x38] sm:$0xff] }
 0x4f6   : > { %v3655_v18 = vpop.f32.mrf.mxu2  ;;  %v3319_v23 = vpop.f32.mrf.mxu0 }
 0x4f7   : > { %v3824_v52 = vpop.f32.mrf.mxu3  ;;  %v3656_v39 = vadd.f32 %v3655_v18, %v3487_v42  ;;  %v3488_v57 = vpop.f32.mrf.mxu1  ;;  %v3320_v14 = vadd.f32 %v3319_v23, %v8585_v3  ;;  %v8590_v18 = vld [vmem:[#allocation57_spill] sm:$0xff] }
 0x4f9   : > { %v3825_v32 = vadd.f32 %v3824_v52, %v3656_v39  ;;  %v3489_v26 = vadd.f32 %v3488_v57, %v3320_v14 }
 0x4fb   : > { %v3906_v16 = vadd.f32 %v3825_v32, %v2106_v50 }
 0x4fd   : > { %3970 = vst [vmem:[#allocation2 + $0x170] sm:$0xff] %v3906_v16  ;;  %v2112_v16 = vld [vmem:[#allocation2 + $0xc0] sm:$0xff] }
 0x4fe   : > { %v3657_v15 = vpop.f32.mrf.mxu2  ;;  %v3322_v49 = vpop.f32.mrf.mxu0 }
 0x4ff   : > { %v3826_v13 = vpop.f32.mrf.mxu3  ;;  %v3658_v51 = vadd.f32 %v3657_v15, %v3489_v26  ;;  %v3491_v22 = vpop.f32.mrf.mxu1  ;;  %v3323_v12 = vadd.f32 %v3322_v49, %v8586_v5  ;;  %v8591_v15 = vld [vmem:[#allocation58_spill] sm:$0xff] }
 0x501   : > { %v3827_v34 = vadd.f32 %v3826_v13, %v3658_v51  ;;  %v3492_v31 = vadd.f32 %v3491_v22, %v3323_v12 }
 0x503   : > { %v3907_v63 = vadd.f32 %v3827_v34, %v2107_v6 }
 0x505   : > { %3971 = vst [vmem:[#allocation2 + $0x178] sm:$0xff] %v3907_v63  ;;  %v2113_v63 = vld [vmem:[#allocation2 + $0x1c0] sm:$0xff] }
 0x506   : > { %v3660_v54 = vpop.f32.mrf.mxu2  ;;  %v3324_v56 = vpop.f32.mrf.mxu0 }
 0x507   : > { %v3829_v10 = vpop.f32.mrf.mxu3  ;;  %v3661_v33 = vadd.f32 %v3660_v54, %v3492_v31  ;;  %v3493_v40 = vpop.f32.mrf.mxu1  ;;  %v3325_v55 = vadd.f32 %v3324_v56, %v8587_v58  ;;  %v8592_v54 = vld [vmem:[#allocation59_spill] sm:$0xff] }
 0x509   : > { %v3830_v37 = vadd.f32 %v3829_v10, %v3661_v33  ;;  %v3494_v38 = vadd.f32 %v3493_v40, %v3325_v55  ;;  %v2114_v55 = vld [vmem:[#allocation2 + $0x158] sm:$0xff] }
 0x50b   : > { %v3908_v36 = vadd.f32 %v3830_v37, %v2108_v7 }
 0x50d   : > { %3972 = vst [vmem:[#allocation2 + $0x68] sm:$0xff] %v3908_v36 }
 0x50e   : > { %v3662_v59 = vpop.f32.mrf.mxu2  ;;  %v3327_v1 = vpop.f32.mrf.mxu0 }
 0x50f   : > { %v3831_v25 = vpop.f32.mrf.mxu3  ;;  %v3663_v61 = vadd.f32 %v3662_v59, %v3494_v38  ;;  %v3496_v27 = vpop.f32.mrf.mxu1  ;;  %v3328_v44 = vadd.f32 %v3327_v1, %v8588_v46  ;;  %v8593_v59 = vld [vmem:[#allocation60_spill] sm:$0xff] }
 0x511   : > { %v3832_v9 = vadd.f32 %v3831_v25, %v3663_v61  ;;  %v3497_v43 = vadd.f32 %v3496_v27, %v3328_v44  ;;  %v2115_v44 = vld [vmem:[#allocation2 + $0x10] sm:$0xff] }
 0x513   : > { %v3909_v28 = vadd.f32 %v3832_v9, %v2109_v24 }
 0x515   : > { %3973 = vst [vmem:[#allocation2 + $0x190] sm:$0xff] %v3909_v28 }
 0x516   : > { %v3665_v62 = vpop.f32.mrf.mxu2  ;;  %v3329_v35 = vpop.f32.mrf.mxu0 }
 0x517   : > { %v3834_v19 = vpop.f32.mrf.mxu3  ;;  %v3666_v20 = vadd.f32 %v3665_v62, %v3497_v43  ;;  %v3498_v47 = vpop.f32.mrf.mxu1  ;;  %v3330_v60 = vadd.f32 %v3329_v35, %v8589_v2  ;;  %v2116_v2 = vld [vmem:[#allocation2 + $0x58] sm:$0xff] }
 0x519   : > { %v3835_v30 = vadd.f32 %v3834_v19, %v3666_v20  ;;  %v3499_v8 = vadd.f32 %v3498_v47, %v3330_v60 }
 0x51b   : > { %v3910_v53 = vadd.f32 %v3835_v30, %v2110_v11 }
 0x51d   : > { %3974 = vst [vmem:[#allocation2 + $0x198] sm:$0xff] %v3910_v53 }
 0x51e   : > { %v3667_v17 = vpop.f32.mrf.mxu2  ;;  %v3332_v45 = vpop.f32.mrf.mxu0 }
 0x51f   : > { %v3836_v48 = vpop.f32.mrf.mxu3  ;;  %v3668_v29 = vadd.f32 %v3667_v17, %v3499_v8  ;;  %v3501_v41 = vpop.f32.mrf.mxu1  ;;  %v3333_v52 = vadd.f32 %v3332_v45, %v8590_v18 }
 0x521   : > { %v3837_v42 = vadd.f32 %v3836_v48, %v3668_v29  ;;  %v3502_v23 = vadd.f32 %v3501_v41, %v3333_v52  ;;  %v2117_v41 = vld [vmem:[#allocation2 + $0xa0] sm:$0xff] }
 0x523   : > { %v3911_v39 = vadd.f32 %v3837_v42, %v2111_v21 }
 0x525   : > { %3975 = vst [vmem:[#allocation2 + $0x38] sm:$0xff] %v3911_v39 }
 0x526   : > { %v3670_v57 = vpop.f32.mrf.mxu2  ;;  %v3334_v3 = vpop.f32.mrf.mxu0 }
 0x527   : > { %v3839_v50 = vpop.f32.mrf.mxu3  ;;  %v3671_v32 = vadd.f32 %v3670_v57, %v3502_v23  ;;  %v3503_v14 = vpop.f32.mrf.mxu1  ;;  %v3335_v13 = vadd.f32 %v3334_v3, %v8591_v15 }
 0x529   : > { %v3840_v26 = vadd.f32 %v3839_v50, %v3671_v32  ;;  %v3504_v49 = vadd.f32 %v3503_v14, %v3335_v13 }
 0x52b   : > { %v3912_v51 = vadd.f32 %v3840_v26, %v2112_v16 }
 0x52d   : > { %3976 = vst [vmem:[#allocation2 + $0xc0] sm:$0xff] %v3912_v51 }
 0x52e   : > { %v3672_v22 = vpop.f32.mrf.mxu2  ;;  %v3337_v5 = vpop.f32.mrf.mxu0 }
 0x52f   : > { %v3841_v6 = vpop.f32.mrf.mxu3  ;;  %v3673_v34 = vadd.f32 %v3672_v22, %v3504_v49  ;;  %v3506_v12 = vpop.f32.mrf.mxu1  ;;  %v3338_v10 = vadd.f32 %v3337_v5, %v8592_v54 }
 0x531   : > { %v3842_v31 = vadd.f32 %v3841_v6, %v3673_v34  ;;  %v3507_v56 = vadd.f32 %v3506_v12, %v3338_v10 }
 0x533   : > { %v3913_v33 = vadd.f32 %v3842_v31, %v2113_v63 }
 0x535   : > { %3977 = vst [vmem:[#allocation2 + $0x1c0] sm:$0xff] %v3913_v33 }
 0x536   : > { %v3675_v40 = vpop.f32.mrf.mxu2  ;;  %v3339_v58 = vpop.f32.mrf.mxu0 }
 0x537   : > { %v3844_v7 = vpop.f32.mrf.mxu3  ;;  %v3676_v37 = vadd.f32 %v3675_v40, %v3507_v56  ;;  %v3508_v36 = vpop.f32.mrf.mxu1  ;;  %v3340_v25 = vadd.f32 %v3339_v58, %v8593_v59 }
 0x539   : > { %v3845_v38 = vadd.f32 %v3844_v7, %v3676_v37  ;;  %v3509_v1 = vadd.f32 %v3508_v36, %v3340_v25 }
 0x53b   : > { %v3914_v61 = vadd.f32 %v3845_v38, %v2114_v55 }
 0x53d   : > { %3978 = vst [vmem:[#allocation2 + $0x158] sm:$0xff] %v3914_v61 }
 0x53e   : > { %v3677_v27 = vpop.f32.mrf.mxu2  ;;  %v3342_v46 = vpop.f32.mrf.mxu0 }
 0x53f   : > { %v3846_v24 = vpop.f32.mrf.mxu3  ;;  %v3678_v9 = vadd.f32 %v3677_v27, %v3509_v1  ;;  %v3343_v43 = vadd.f32 %v3342_v46, %v7750_v4  ;;  %v3511_v62 = vpop.f32.mrf.mxu1 }
 0x541   : > { %v3847_v28 = vadd.f32 %v3846_v24, %v3678_v9  ;;  %v3512_v20 = vadd.f32 %v3511_v62, %v3343_v43 }
 0x543   : > { %v3915_v19 = vadd.f32 %v3847_v28, %v2115_v44 }
 0x545   : > { %3979 = vst [vmem:[#allocation2 + $0x10] sm:$0xff] %v3915_v19 }
 0x546   : > { %v3680_v35 = vpop.f32.mrf.mxu2  ;;  %v3344_v30 = vpop.f32.mrf.mxu0 }
 0x547   : > { %v3849_v47 = vpop.f32.mrf.mxu3  ;;  %v3681_v11 = vadd.f32 %v3680_v35, %v3512_v20  ;;  %v3345_v53 = vadd.f32 %v3344_v30, %v7752_v0  ;;  %v3513_v17 = vpop.f32.mrf.mxu1 }
 0x549   : > { %v3850_v60 = vadd.f32 %v3849_v47, %v3681_v11  ;;  %v3514_v48 = vadd.f32 %v3513_v17, %v3345_v53 }
 0x54b   : > { %v3916_v8 = vadd.f32 %v3850_v60, %v2116_v2 }
 0x54d   : > { %3980 = vst [vmem:[#allocation2 + $0x58] sm:$0xff] %v3916_v8 }
 0x54e   : > { %v3682_v29 = vpop.f32.mrf.mxu2 }
 0x54f   : > { %v3683_v45 = vadd.f32 %v3682_v29, %v3514_v48  ;;  %v3851_v4 = vpop.f32.mrf.mxu3 }
 0x551   : > { %v3852_v21 = vadd.f32 %v3851_v4, %v3683_v45  ;;  %3985 = sbr.rel (%p5972_p1) target bundleno = 1885 (0x75d), region = 80 }
 0x553   : > { %v3917_v42 = vadd.f32 %v3852_v21, %v2117_v41 }
 0x555   : > { %3981 = vst [vmem:[#allocation2 + $0xa0] sm:$0xff] %v3917_v42 }
 0x556   : > { %v4084_v0 = vld [vmem:[%s7254_s30 + $0x110] sm:$0xff]  ;;  %v4082_v18 = vld [vmem:[%s7254_s30 + $0x100] sm:$0xff]  ;;  %v6981_v39 = vmov 0   ;;  %v4085_v23 = vld [vmem:[%s7254_s30 + $0x118] sm:$0xff] }
 0x557   : > { %v4050_v52 = vld [vmem:[%s7254_s30] sm:$0xff]  ;;  %6650 = vset.pattern.permute.xlu2 %v6981_v39  ;;  %6649 = vset.pattern.permute.xlu1 %v6981_v39  ;;  %v4083_v57 = vld [vmem:[%s7254_s30 + $0x108] sm:$0xff]  ;;  %v4052_v3 = vld [vmem:[%s7254_s30 + $0x10] sm:$0xff] }
 0x558   : > { %6648 = vset.pattern.permute.xlu0 %v6981_v39  ;;  %4286 = vperm.xlu2 %6650, %v4084_v0   ;;  %v4051_v50 = vld [vmem:[%s7254_s30 + $0x8] sm:$0xff]  ;;  %v4086_v32 = vld [vmem:[%s7254_s30 + $0x120] sm:$0xff]  ;;  %v4053_v14 = vld [vmem:[%s7254_s30 + $0x18] sm:$0xff] }
 0x559   : > { %4276 = vperm.xlu0 %6648, %v4082_v18   ;;  %4116 = vperm.xlu1 %6649, %v4050_v52   ;;  %v4055_v16 = vld [vmem:[%s7254_s30 + $0x28] sm:$0xff]  ;;  %v4054_v15 = vld [vmem:[%s7254_s30 + $0x20] sm:$0xff]  ;;  %v4056_v13 = vld [vmem:[%s7254_s30 + $0x30] sm:$0xff] }
 0x55a   : > { %v4087_v26 = vld [vmem:[%s7254_s30 + $0x128] sm:$0xff]  ;;  %v4088_v51 = vld [vmem:[%s7254_s30 + $0x130] sm:$0xff]  ;;  %v4089_v49 = vld [vmem:[%s7254_s30 + $0x138] sm:$0xff] }
 0x55b   : > { %v4091_v22 = vld [vmem:[%s7254_s30 + $0x148] sm:$0xff]  ;;  %v4057_v6 = vld [vmem:[%s7254_s30 + $0x38] sm:$0xff]  ;;  %v4090_v34 = vld [vmem:[%s7254_s30 + $0x140] sm:$0xff] }
 0x55c   : > { %v4092_v5 = vld [vmem:[%s7254_s30 + $0x150] sm:$0xff]  ;;  %v4058_v12 = vld [vmem:[%s7254_s30 + $0x40] sm:$0xff]  ;;  %v4059_v63 = vld [vmem:[%s7254_s30 + $0x48] sm:$0xff] }
 0x55d   : > { %v6283_v31 = vld [vmem:[#allocation10 + $0x38] sm:$0xff]  ;;  %v4060_v33 = vld [vmem:[%s7254_s30 + $0x50] sm:$0xff]  ;;  %v4062_v7 = vld [vmem:[%s7254_s30 + $0x60] sm:$0xff] }
 0x55e   : > { %6476 = vmatpush.bf16.msra.mxu2 %v6283_v31  ;;  %4866 = vmatpush.bf16.msra.mxu0 %v6283_v31  ;;  %v4061_v54 = vld [vmem:[%s7254_s30 + $0x58] sm:$0xff]  ;;  %v6282_v56 = vld [vmem:[#allocation10 + $0x30] sm:$0xff]  ;;  %v4094_v37 = vld [vmem:[%s7254_s30 + $0x160] sm:$0xff] }
 0x55f   : > { %v4093_v10 = vld [vmem:[%s7254_s30 + $0x158] sm:$0xff]  ;;  %v4095_v58 = vld [vmem:[%s7254_s30 + $0x168] sm:$0xff]  ;;  %v6280_v36 = vld [vmem:[#allocation10 + $0x20] sm:$0xff] }
 0x560   : > { %4291 = vperm.xlu2 %6650, %v4085_v23   ;;  %v6243_v40 = vld [vmem:[#allocation9 + $0x38] sm:$0xff]  ;;  %v6281_v55 = vld [vmem:[#allocation10 + $0x28] sm:$0xff]  ;;  %v6242_v38 = vld [vmem:[#allocation9 + $0x30] sm:$0xff] }
 0x561   : > { %4281 = vperm.xlu0 %6648, %v4083_v57   ;;  %4121 = vperm.xlu1 %6649, %v4051_v50   ;;  %v4097_v59 = vld [vmem:[%s7254_s30 + $0x178] sm:$0xff]  ;;  %v4063_v25 = vld [vmem:[%s7254_s30 + $0x68] sm:$0xff]  ;;  %v4096_v61 = vld [vmem:[%s7254_s30 + $0x170] sm:$0xff] }
 0x562   : > { %6477 = vmatpush.bf16.msra.mxu2 %v6282_v56  ;;  %5083 = vmatpush.bf16.msra.mxu1 %v6243_v40  ;;  %v6279_v1 = vld [vmem:[#allocation10 + $0x18] sm:$0xff]  ;;  %v6241_v27 = vld [vmem:[#allocation9 + $0x28] sm:$0xff]  ;;  %v6278_v24 = vld [vmem:[#allocation10 + $0x10] sm:$0xff] }
 0x563   : > { %6484 = vmatpush.bf16.msra.mxu3 %v6243_v40  ;;  %4867 = vmatpush.bf16.msra.mxu0 %v6282_v56  ;;  %v6240_v9 = vld [vmem:[#allocation9 + $0x20] sm:$0xff]  ;;  %v4064_v44 = vld [vmem:[%s7254_s30 + $0x70] sm:$0xff]  ;;  %v4065_v28 = vld [vmem:[%s7254_s30 + $0x78] sm:$0xff] }
 0x564   : > { %v4098_v46 = vld [vmem:[%s7254_s30 + $0x180] sm:$0xff]  ;;  %v6277_v43 = vld [vmem:[#allocation10 + $0x8] sm:$0xff]  ;;  %v6239_v62 = vld [vmem:[#allocation9 + $0x18] sm:$0xff] }
 0x565   : > { %v6276_v19 = vld [vmem:[#allocation10] sm:$0xff]  ;;  %v6238_v20 = vld [vmem:[#allocation9 + $0x10] sm:$0xff]  ;;  %v4067_v35 = vld [vmem:[%s7254_s30 + $0x88] sm:$0xff] }
 0x566   : > { %6478 = vmatpush.bf16.msra.mxu2 %v6281_v55  ;;  %5084 = vmatpush.bf16.msra.mxu1 %v6242_v38  ;;  %v4099_v47 = vld [vmem:[%s7254_s30 + $0x188] sm:$0xff]  ;;  %v4066_v11 = vld [vmem:[%s7254_s30 + $0x80] sm:$0xff]  ;;  %v4068_v8 = vld [vmem:[%s7254_s30 + $0x90] sm:$0xff] }
 0x567   : > { %4868 = vmatpush.bf16.msra.mxu0 %v6281_v55  ;;  %6485 = vmatpush.bf16.msra.mxu3 %v6242_v38  ;;  %v6260_v30 = vld [vmem:[%s7236_s27 + $0x80] sm:$0xff]  ;;  %v6237_v2 = vld [vmem:[#allocation9 + $0x8] sm:$0xff]  ;;  %v4100_v17 = vld [vmem:[%s7254_s30 + $0x190] sm:$0xff] }
 0x568   : > { %4296 = vperm.xlu2 %6650, %v4086_v32   ;;  %v6236_v60 = vld [vmem:[#allocation9] sm:$0xff]  ;;  %v4101_v48 = vld [vmem:[%s7254_s30 + $0x198] sm:$0xff]  ;;  %v4103_v29 = vld [vmem:[%s7254_s30 + $0x1a8] sm:$0xff] }
 0x569   : > { %4126 = vperm.xlu0 %6648, %v4052_v3   ;;  %4131 = vperm.xlu1 %6649, %v4053_v14   ;;  %v6244_v53 = vld [vmem:[%s7236_s27] sm:$0xff]  ;;  %v4069_v45 = vld [vmem:[%s7254_s30 + $0x98] sm:$0xff]  ;;  %v6261_v4 = vld [vmem:[%s7236_s27 + $0x88] sm:$0xff] }
 0x56a   : > { %6479 = vmatpush.bf16.msra.mxu2 %v6280_v36  ;;  %5085 = vmatpush.bf16.msra.mxu1 %v6241_v27  ;;  %v4102_v41 = vld [vmem:[%s7254_s30 + $0x1a0] sm:$0xff]  ;;  %v6245_v21 = vld [vmem:[%s7236_s27 + $0x8] sm:$0xff]  ;;  %v4104_v42 = vld [vmem:[%s7254_s30 + $0x1b0] sm:$0xff] }
 0x56b   : > { %4869 = vmatpush.bf16.msra.mxu0 %v6280_v36  ;;  %6486 = vmatpush.bf16.msra.mxu3 %v6241_v27  ;;  %v4070_v0 = vld [vmem:[%s7254_s30 + $0xa0] sm:$0xff]  ;;  %v4071_v18 = vld [vmem:[%s7254_s30 + $0xa8] sm:$0xff]  ;;  %v4073_v23 = vld [vmem:[%s7254_s30 + $0xb8] sm:$0xff] }
 0x56c   : > { %v4105_v57 = vld [vmem:[%s7254_s30 + $0x1b8] sm:$0xff]  ;;  %v4072_v50 = vld [vmem:[%s7254_s30 + $0xb0] sm:$0xff]  ;;  %v4018_v3 = vld [vmem:[#allocation2 + $0x148] sm:$0xff] }
 0x56d   : > { %v6262_v32 = vld [vmem:[%s7236_s27 + $0x90] sm:$0xff]  ;;  %v4074_v31 = vld [vmem:[%s7254_s30 + $0xc0] sm:$0xff]  ;;  %v4021_v56 = vld [vmem:[#allocation2 + $0xc8] sm:$0xff] }
 0x56e   : > { %6480 = vmatpush.bf16.msra.mxu2 %v6279_v1  ;;  %5086 = vmatpush.bf16.msra.mxu1 %v6240_v9  ;;  %v3986_v14 = vld [vmem:[#allocation2 + $0xb0] sm:$0xff]  ;;  %v3988_v36 = vld [vmem:[#allocation2 + $0xd8] sm:$0xff] }
 0x56f   : > { %4870 = vmatpush.bf16.msra.mxu0 %v6279_v1  ;;  %6487 = vmatpush.bf16.msra.mxu3 %v6240_v9  ;;  %v6247_v9 = vld [vmem:[%s7236_s27 + $0x18] sm:$0xff] }
 0x570   : > { %4141 = vperm.xlu2 %6650, %v4055_v16   ;;  %v4019_v16 = vld [vmem:[#allocation2 + $0x1d0] sm:$0xff] }
 0x571   : > { %4301 = vperm.xlu0 %6648, %v4087_v26   ;;  %4136 = vperm.xlu1 %6649, %v4054_v15   ;;  %v3987_v26 = vld [vmem:[#allocation2 + $0x1b0] sm:$0xff] }
 0x572   : > { %6481 = vmatpush.bf16.msra.mxu2 %v6278_v24  ;;  %5087 = vmatpush.bf16.msra.mxu1 %v6239_v62 }
 0x573   : > { %4871 = vmatpush.bf16.msra.mxu0 %v6278_v24  ;;  %6488 = vmatpush.bf16.msra.mxu3 %v6239_v62  ;;  %v4077_v62 = vld [vmem:[%s7254_s30 + $0xd8] sm:$0xff] }
 0x576   : > { %6482 = vmatpush.bf16.msra.mxu2 %v6277_v43  ;;  %5088 = vmatpush.bf16.msra.mxu1 %v6238_v20 }
 0x577   : > { %4872 = vmatpush.bf16.msra.mxu0 %v6277_v43  ;;  %6489 = vmatpush.bf16.msra.mxu3 %v6238_v20  ;;  %v4076_v43 = vld [vmem:[%s7254_s30 + $0xd0] sm:$0xff] }
 0x578   : > { %4146 = vperm.xlu2 %6650, %v4056_v13  }
 0x579   : > { %4306 = vperm.xlu0 %6648, %v4088_v51   ;;  %4311 = vperm.xlu1 %6649, %v4089_v49  }
 0x57a   : > { %6483 = vmatpush.bf16.msra.mxu2 %v6276_v19  ;;  %5089 = vmatpush.bf16.msra.mxu1 %v6237_v2 }
 0x57b   : > { %4873 = vmatpush.bf16.msra.mxu0 %v6276_v19  ;;  %6490 = vmatpush.bf16.msra.mxu3 %v6237_v2 }
 0x57d   : > { %4954 = vmatmul.bf16.vlgmr.msra.gmra.mxu2 %v6260_v30  ;;  %v4023_v30 = vld [vmem:[#allocation2 + $0x1f8] sm:$0xff] }
 0x57e   : > { %5090 = vmatpush.bf16.msra.mxu1 %v6236_v60  ;;  %4874 = vmatmul.bf16.vlgmr.msra.gmra.mxu0 %v6244_v53  ;;  %v4078_v53 = vld [vmem:[%s7254_s30 + $0xe0] sm:$0xff] }
 0x57f   : > { %6491 = vmatpush.bf16.msra.mxu3 %v6236_v60  ;;  %v3990_v60 = vld [vmem:[#allocation2 + $0x50] sm:$0xff] }
 0x580   : > { %4321 = vperm.xlu2 %6650, %v4091_v22  }
 0x581   : > { %4151 = vperm.xlu0 %6648, %v4057_v6   ;;  %4316 = vperm.xlu1 %6649, %v4090_v34  }
 0x588   : > { %4326 = vperm.xlu2 %6650, %v4092_v5   ;;  %v6246_v5 = vld [vmem:[%s7236_s27 + $0x10] sm:$0xff] }
 0x589   : > { %4156 = vperm.xlu0 %6648, %v4058_v12   ;;  %4161 = vperm.xlu1 %6649, %v4059_v63  }
 0x58d   : > { %4959 = vmatmul.bf16.gmra.mxu2 %v6261_v4 }
 0x58e   : > { %4879 = vmatmul.bf16.gmra.mxu0 %v6245_v21  ;;  %v6248_v21 = vld [vmem:[%s7236_s27 + $0x20] sm:$0xff] }
 0x590   : > { %4171 = vperm.xlu2 %6650, %v4061_v54   ;;  %v4106_v54 = vld [vmem:[%s7254_s30 + $0x1c0] sm:$0xff] }
 0x591   : > { %4331 = vperm.xlu0 %6648, %v4093_v10   ;;  %4166 = vperm.xlu1 %6649, %v4060_v33   ;;  %v4107_v10 = vld [vmem:[%s7254_s30 + $0x1c8] sm:$0xff]  ;;  %v4020_v33 = vld [vmem:[#allocation2 + $0x100] sm:$0xff] }
 0x598   : > { %4176 = vperm.xlu2 %6650, %v4062_v7   ;;  %v4109_v7 = vld [vmem:[%s7254_s30 + $0x1d8] sm:$0xff] }
 0x599   : > { %4336 = vperm.xlu0 %6648, %v4094_v37   ;;  %4341 = vperm.xlu1 %6649, %v4095_v58   ;;  %v4075_v37 = vld [vmem:[%s7254_s30 + $0xc8] sm:$0xff]  ;;  %v6263_v58 = vld [vmem:[%s7236_s27 + $0x98] sm:$0xff] }
 0x59d   : > { %4964 = vmatmul.bf16.gmra.mxu2 %v6262_v32  ;;  %v6265_v32 = vld [vmem:[%s7236_s27 + $0xa8] sm:$0xff] }
 0x59e   : > { %4884 = vmatmul.bf16.gmra.mxu0 %v6246_v5 }
 0x5a0   : > { %4351 = vperm.xlu2 %6650, %v4097_v59   ;;  %v3989_v59 = vld [vmem:[#allocation2 + $0x18] sm:$0xff] }
 0x5a1   : > { %4181 = vperm.xlu0 %6648, %v4063_v25   ;;  %4346 = vperm.xlu1 %6649, %v4096_v61   ;;  %v4108_v25 = vld [vmem:[%s7254_s30 + $0x1d0] sm:$0xff] }
 0x5a8   : > { %4356 = vperm.xlu2 %6650, %v4098_v46  }
 0x5a9   : > { %4186 = vperm.xlu0 %6648, %v4064_v44   ;;  %4191 = vperm.xlu1 %6649, %v4065_v28   ;;  %v4110_v28 = vld [vmem:[%s7254_s30 + $0x1e0] sm:$0xff] }
 0x5ad   : > { %4969 = vmatmul.bf16.gmra.mxu2 %v6263_v58 }
 0x5ae   : > { %4889 = vmatmul.bf16.gmra.mxu0 %v6247_v9  ;;  %v4029_v9 = vld [vmem:[#allocation2 + $0x78] sm:$0xff] }
 0x5b0   : > { %4201 = vperm.xlu2 %6650, %v4067_v35   ;;  %v4079_v35 = vld [vmem:[%s7254_s30 + $0xe8] sm:$0xff] }
 0x5b1   : > { %4361 = vperm.xlu0 %6648, %v4099_v47   ;;  %4196 = vperm.xlu1 %6649, %v4066_v11   ;;  %v4111_v47 = vld [vmem:[%s7254_s30 + $0x1e8] sm:$0xff]  ;;  %v6264_v11 = vld [vmem:[%s7236_s27 + $0xa0] sm:$0xff] }
 0x5b2   : > { %v4287_v51 = vpop.permute.xlu2 %4286 }
 0x5b3   : > { %v4468_v61 = vmul.f32 %v4287_v51, %v4020_v33 }
 0x5b8   : > { %4206 = vperm.xlu2 %6650, %v4068_v8   ;;  %v4022_v8 = vld [vmem:[#allocation2 + $0x40] sm:$0xff] }
 0x5b9   : > { %4366 = vperm.xlu0 %6648, %v4100_v17   ;;  %4371 = vperm.xlu1 %6649, %v4101_v48   ;;  %v3991_v17 = vld [vmem:[#allocation2 + $0x168] sm:$0xff] }
 0x5ba   : > { %v4292_v40 = vpop.permute.xlu2 %4291 }
 0x5bb   : > { %v4469_v1 = vmul.f32 %v4292_v40, %v4021_v56  ;;  %v3994_v56 = vld [vmem:[#allocation2 + $0x180] sm:$0xff] }
 0x5bd   : > { %v4515_v44 = vpack.c.bf16 %v4469_v1, %v4468_v61  ;;  %4974 = vmatmul.bf16.gmra.mxu2 %v6264_v11 }
 0x5be   : > { %4894 = vmatmul.bf16.gmra.mxu0 %v6248_v21 }
 0x5c0   : > { %4381 = vperm.xlu2 %6650, %v4103_v29  }
 0x5c1   : > { %4211 = vperm.xlu0 %6648, %v4069_v45   ;;  %4376 = vperm.xlu1 %6649, %v4102_v41  }
 0x5c2   : > { %v4297_v19 = vpop.permute.xlu2 %4296 }
 0x5c3   : > { %v4470_v41 = vmul.f32 %v4297_v19, %v4022_v8  ;;  %v4030_v8 = vld [vmem:[#allocation2 + $0x70] sm:$0xff] }
 0x5c8   : > { %4386 = vperm.xlu2 %6650, %v4104_v42  }
 0x5c9   : > { %4216 = vperm.xlu0 %6648, %v4070_v0   ;;  %4221 = vperm.xlu1 %6649, %v4071_v18  }
 0x5ca   : > { %v4142_v45 = vpop.permute.xlu2 %4141 }
 0x5cb   : > { %v4277_v52 = vpop.permute.xlu0 %4276  ;;  %v4117_v39 = vpop.permute.xlu1 %4116  ;;  %v4439_v4 = vmul.f32 %v4142_v45, %v3991_v17  ;;  %v4031_v17 = vld [vmem:[#allocation2 + $0x90] sm:$0xff]  ;;  %v6268_v45 = vld [vmem:[%s7236_s27 + $0xc0] sm:$0xff] }
 0x5cc   : > { %v4466_v49 = vmul.f32 %v4277_v52, %v4018_v3  ;;  %v4434_v22 = vmul.f32 %v4117_v39, %v3986_v14  ;;  %v4080_v52 = vld [vmem:[%s7254_s30 + $0xf0] sm:$0xff]  ;;  %v4024_v3 = vld [vmem:[#allocation2 + $0x20] sm:$0xff]  ;;  %v4025_v14 = vld [vmem:[#allocation2 + $0x128] sm:$0xff] }
 0x5cd   : > { %v4112_v39 = vld [vmem:[%s7254_s30 + $0x1f0] sm:$0xff]  ;;  %4979 = vmatmul.bf16.gmra.mxu2 %v6265_v32 }
 0x5d0   : > { %4231 = vperm.xlu2 %6650, %v4073_v23   ;;  %v4113_v23 = vld [vmem:[%s7254_s30 + $0x1f8] sm:$0xff] }
 0x5d1   : > { %4391 = vperm.xlu0 %6648, %v4105_v57   ;;  %4226 = vperm.xlu1 %6649, %v4072_v50   ;;  %v4081_v50 = vld [vmem:[%s7254_s30 + $0xf8] sm:$0xff] }
 0x5d3   : > { %v4282_v15 = vpop.permute.xlu0 %4281  ;;  %v4122_v13 = vpop.permute.xlu1 %4121 }
 0x5d4   : > { %v4467_v6 = vmul.f32 %v4282_v15, %v4019_v16  ;;  %v4435_v34 = vmul.f32 %v4122_v13, %v3987_v26  ;;  %v3993_v26 = vld [vmem:[#allocation2 + $0x48] sm:$0xff]  ;;  %v3992_v15 = vld [vmem:[#allocation2 + $0x130] sm:$0xff] }
 0x5d6   : > { %v4498_v12 = vpack.c.bf16 %v4435_v34, %v4434_v22  ;;  %v4514_v63 = vpack.c.bf16 %v4467_v6, %v4466_v49  ;;  %v4147_v22 = vpop.permute.xlu2 %4146  ;;  %v6249_v34 = vld [vmem:[%s7236_s27 + $0x28] sm:$0xff] }
 0x5d7   : > { %v4440_v6 = vmul.f32 %v4147_v22, %v3992_v15  ;;  %4899 = vmatmul.bf16.gmra.mxu0 %v6249_v34  ;;  %v6269_v22 = vld [vmem:[%s7236_s27 + $0xc8] sm:$0xff] }
 0x5d8   : > { %5091 = vmatmul.bf16.vlgmr.msra.gmra.mxu1 %v4498_v12  ;;  %5171 = vmatmul.bf16.vlgmr.msra.gmra.mxu3 %v4514_v63 }
 0x5d9   : > { %4236 = vperm.xlu2 %6650, %v4074_v31   ;;  %4396 = vperm.xlu0 %6648, %v4106_v54   ;;  %v6266_v54 = vld [vmem:[%s7236_s27 + $0xb0] sm:$0xff] }
 0x5da   : > { %4401 = vperm.xlu1 %6649, %v4107_v10   ;;  %v4026_v10 = vld [vmem:[#allocation2 + $0x1a0] sm:$0xff] }
 0x5db   : > { %v4127_v55 = vpop.permute.xlu0 %4126  ;;  %v4132_v38 = vpop.permute.xlu1 %4131 }
 0x5dc   : > { %v4436_v27 = vmul.f32 %v4127_v55, %v3988_v36  ;;  %v4437_v24 = vmul.f32 %v4132_v38, %v3989_v59  ;;  %v6250_v59 = vld [vmem:[%s7236_s27 + $0x30] sm:$0xff] }
 0x5dd   : > { %4984 = vmatmul.bf16.gmra.mxu2 %v6266_v54 }
 0x5de   : > { %v4499_v46 = vpack.c.bf16 %v4437_v24, %v4436_v27  ;;  %v4322_v31 = vpop.permute.xlu2 %4321  ;;  %v6267_v24 = vld [vmem:[%s7236_s27 + $0xb8] sm:$0xff] }
 0x5e1   : > { %4411 = vperm.xlu2 %6650, %v4109_v7   ;;  %4241 = vperm.xlu0 %6648, %v4075_v37   ;;  %v3995_v7 = vld [vmem:[#allocation2 + $0x110] sm:$0xff] }
 0x5e2   : > { %4406 = vperm.xlu1 %6649, %v4108_v25   ;;  %v4027_v37 = vld [vmem:[#allocation2 + $0x1f0] sm:$0xff] }
 0x5e3   : > { %v4302_v20 = vpop.permute.xlu0 %4301  ;;  %v4137_v2 = vpop.permute.xlu1 %4136  ;;  %v4475_v38 = vmul.f32 %v4322_v31, %v4027_v37 }
 0x5e4   : > { %v4471_v48 = vmul.f32 %v4302_v20, %v4023_v30  ;;  %v4438_v29 = vmul.f32 %v4137_v2, %v3990_v60  ;;  %v6251_v30 = vld [vmem:[%s7236_s27 + $0x38] sm:$0xff] }
 0x5e6   : > { %v4500_v0 = vpack.c.bf16 %v4439_v4, %v4438_v29  ;;  %v4516_v18 = vpack.c.bf16 %v4471_v48, %v4470_v41  ;;  %v4327_v1 = vpop.permute.xlu2 %4326  ;;  %v3999_v29 = vld [vmem:[#allocation2 + $0x150] sm:$0xff]  ;;  %v3998_v4 = vld [vmem:[#allocation2 + $0x120] sm:$0xff] }
 0x5e7   : > { %4904 = vmatmul.bf16.gmra.mxu0 %v6250_v59  ;;  %v6270_v59 = vld [vmem:[%s7236_s27 + $0xd0] sm:$0xff] }
 0x5e8   : > { %5096 = vmatmul.bf16.gmra.mxu1 %v4499_v46  ;;  %5176 = vmatmul.bf16.gmra.mxu3 %v4515_v44  ;;  %v3996_v44 = vld [vmem:[#allocation2 + $0x118] sm:$0xff] }
 0x5e9   : > { %4416 = vperm.xlu2 %6650, %v4110_v28   ;;  %4246 = vperm.xlu0 %6648, %v4076_v43   ;;  %v4028_v28 = vld [vmem:[#allocation2 + $0xe8] sm:$0xff] }
 0x5ea   : > { %4251 = vperm.xlu1 %6649, %v4077_v62   ;;  %v3997_v62 = vld [vmem:[#allocation2 + $0x98] sm:$0xff] }
 0x5eb   : > { %v4307_v42 = vpop.permute.xlu0 %4306  ;;  %v4312_v57 = vpop.permute.xlu1 %4311 }
 0x5ec   : > { %v4472_v13 = vmul.f32 %v4307_v42, %v4024_v3  ;;  %v4473_v51 = vmul.f32 %v4312_v57, %v4025_v14  ;;  %v6252_v57 = vld [vmem:[%s7236_s27 + $0x40] sm:$0xff] }
 0x5ed   : > { %4989 = vmatmul.bf16.gmra.mxu2 %v6267_v24 }
 0x5ee   : > { %v4517_v63 = vpack.c.bf16 %v4473_v51, %v4472_v13  ;;  %v4172_v43 = vpop.permute.xlu2 %4171  ;;  %v4000_v13 = vld [vmem:[#allocation2 + $0x108] sm:$0xff] }
 0x5f1   : > { %4261 = vperm.xlu2 %6650, %v4079_v35   ;;  %4421 = vperm.xlu0 %6648, %v4111_v47   ;;  %v4476_v35 = vmul.f32 %v4327_v1, %v4028_v28  ;;  %v4445_v47 = vmul.f32 %v4172_v43, %v3997_v62  ;;  %v4003_v1 = vld [vmem:[#allocation2 + $0x188] sm:$0xff] }
 0x5f2   : > { %4256 = vperm.xlu1 %6649, %v4078_v53  }
 0x5f3   : > { %v4152_v16 = vpop.permute.xlu0 %4151  ;;  %v4317_v5 = vpop.permute.xlu1 %4316 }
 0x5f4   : > { %v4441_v49 = vmul.f32 %v4152_v16, %v3993_v26  ;;  %v4474_v58 = vmul.f32 %v4317_v5, %v4026_v10  ;;  %v4032_v26 = vld [vmem:[#allocation2 + $0x1d8] sm:$0xff]  ;;  %v6253_v10 = vld [vmem:[%s7236_s27 + $0x48] sm:$0xff] }
 0x5f6   : > { %v4501_v12 = vpack.c.bf16 %v4441_v49, %v4440_v6  ;;  %v4518_v61 = vpack.c.bf16 %v4475_v38, %v4474_v58  ;;  %v4177_v41 = vpop.permute.xlu2 %4176  ;;  %v4001_v49 = vld [vmem:[#allocation2 + $0x60] sm:$0xff]  ;;  %v4033_v6 = vld [vmem:[#allocation2 + $0xd0] sm:$0xff] }
 0x5f7   : > { %4909 = vmatmul.bf16.gmra.mxu0 %v6251_v30  ;;  %v4002_v38 = vld [vmem:[#allocation2 + $0xe0] sm:$0xff] }
 0x5f8   : > { %5101 = vmatmul.bf16.gmra.mxu1 %v4500_v0  ;;  %5181 = vmatmul.bf16.gmra.mxu3 %v4516_v18  ;;  %v4446_v18 = vmul.f32 %v4177_v41, %v3998_v4  ;;  %v8233_v30 = vld [vmem:[#allocation12] ss:$0 sm:$0xff] }
 0x5f9   : > { %4266 = vperm.xlu2 %6650, %v4080_v52   ;;  %4426 = vperm.xlu0 %6648, %v4112_v39   ;;  %v4005_v4 = vld [vmem:[#allocation2 + $0x140] sm:$0xff] }
 0x5fa   : > { %4431 = vperm.xlu1 %6649, %v4113_v23  }
 0x5fb   : > { %v4157_v33 = vpop.permute.xlu0 %4156  ;;  %v4162_v40 = vpop.permute.xlu1 %4161 }
 0x5fc   : > { %v4442_v55 = vmul.f32 %v4157_v33, %v3994_v56  ;;  %v4443_v36 = vmul.f32 %v4162_v40, %v3995_v7  ;;  %v4875_v52 = vpop.f32.mrf.mxu0 }
 0x5fd   : > { %4994 = vmatmul.bf16.gmra.mxu2 %v6268_v45  ;;  %v4037_v45 = vld [vmem:[#allocation2 + $0x1c8] sm:$0xff] }
 0x5fe   : > { %v4502_v25 = vpack.c.bf16 %v4443_v36, %v4442_v55  ;;  %v4352_v14 = vpop.permute.xlu2 %4351  ;;  %v4035_v55 = vld [vmem:[#allocation2 + $0x88] sm:$0xff] }
 0x600   : > { %v8212_v23 = vpop.f32.mrf.mxu2 }
 0x601   : > { %4271 = vperm.xlu0 %6648, %v4081_v50  }
 0x603   : > { %v4332_v27 = vpop.permute.xlu0 %4331  ;;  %v4167_v46 = vpop.permute.xlu1 %4166 }
 0x604   : > { %v4477_v19 = vmul.f32 %v4332_v27, %v4029_v9  ;;  %v4444_v20 = vmul.f32 %v4167_v46, %v3996_v44  ;;  %v4877_v3 = vpop.f32.mrf.mxu0 }
 0x606   : > { %v4503_v2 = vpack.c.bf16 %v4445_v47, %v4444_v20  ;;  %v4519_v60 = vpack.c.bf16 %v4477_v19, %v4476_v35  ;;  %v4357_v40 = vpop.permute.xlu2 %4356  ;;  %v6254_v19 = vld [vmem:[%s7236_s27 + $0x50] sm:$0xff] }
 0x607   : > { %4914 = vmatmul.bf16.gmra.mxu0 %v6252_v57 }
 0x608   : > { %5106 = vmatmul.bf16.gmra.mxu1 %v4501_v12  ;;  %5186 = vmatmul.bf16.gmra.mxu3 %v4517_v63  ;;  %v8215_v16 = vpop.f32.mrf.mxu2  ;;  %v4481_v63 = vmul.f32 %v4352_v14, %v4033_v6 }
 0x60b   : > { %v4337_v11 = vpop.permute.xlu0 %4336  ;;  %v4342_v53 = vpop.permute.xlu1 %4341 }
 0x60c   : > { %v4478_v21 = vmul.f32 %v4337_v11, %v4030_v8  ;;  %v4479_v42 = vmul.f32 %v4342_v53, %v4031_v17  ;;  %v8218_v31 = vpop.f32.mrf.mxu0  ;;  %v4036_v17 = vld [vmem:[#allocation2 + $0xa8] sm:$0xff] }
 0x60d   : > { %4999 = vmatmul.bf16.gmra.mxu2 %v6269_v22 }
 0x60e   : > { %v4520_v32 = vpack.c.bf16 %v4479_v42, %v4478_v21  ;;  %v6271_v21 = vld [vmem:[%s7236_s27 + $0xd8] sm:$0xff] }
 0x610   : > { %v8220_v54 = vpop.f32.mrf.mxu2 }
 0x613   : > { %v4182_v48 = vpop.permute.xlu0 %4181  ;;  %v4347_v39 = vpop.permute.xlu1 %4346 }
 0x614   : > { %v4447_v0 = vmul.f32 %v4182_v48, %v3999_v29  ;;  %v4480_v34 = vmul.f32 %v4347_v39, %v4032_v26  ;;  %v8223_v37 = vpop.f32.mrf.mxu0 }
 0x616   : > { %v4504_v50 = vpack.c.bf16 %v4447_v0, %v4446_v18  ;;  %v4521_v56 = vpack.c.bf16 %v4481_v63, %v4480_v34  ;;  %v6255_v34 = vld [vmem:[%s7236_s27 + $0x58] sm:$0xff] }
 0x617   : > { %4919 = vmatmul.bf16.gmra.mxu0 %v6253_v10 }
 0x618   : > { %5111 = vmatmul.bf16.gmra.mxu1 %v4502_v25  ;;  %5191 = vmatmul.bf16.gmra.mxu3 %v4518_v61  ;;  %v8225_v58 = vpop.f32.mrf.mxu2  ;;  %v4034_v25 = vld [vmem:[#allocation2 + $0xb8] sm:$0xff]  ;;  %v4202_v61 = vpop.permute.xlu2 %4201 }
 0x619   : > { %v4482_v9 = vmul.f32 %v4357_v40, %v4034_v25  ;;  %v4451_v46 = vmul.f32 %v4202_v61, %v4003_v1 }
 0x61b   : > { %v4187_v15 = vpop.permute.xlu0 %4186  ;;  %v4192_v51 = vpop.permute.xlu1 %4191 }
 0x61c   : > { %v4448_v5 = vmul.f32 %v4187_v15, %v4000_v13  ;;  %v4449_v12 = vmul.f32 %v4192_v51, %v4001_v49  ;;  %v8228_v28 = vpop.f32.mrf.mxu0 }
 0x61d   : > { %5004 = vmatmul.bf16.gmra.mxu2 %v6270_v59  ;;  %v4038_v59 = vld [vmem:[#allocation2 + $0x170] sm:$0xff] }
 0x61e   : > { %v4505_v33 = vpack.c.bf16 %v4449_v12, %v4448_v5 }
 0x620   : > { %v8230_v62 = vpop.f32.mrf.mxu2  ;;  %v4207_v18 = vpop.permute.xlu2 %4206 }
 0x623   : > { %v4362_v7 = vpop.permute.xlu0 %4361  ;;  %v4197_v36 = vpop.permute.xlu1 %4196 }
 0x624   : > { %v4483_v27 = vmul.f32 %v4362_v7, %v4035_v55  ;;  %v4450_v24 = vmul.f32 %v4197_v36, %v4002_v38 }
 0x626   : > { %v4506_v20 = vpack.c.bf16 %v4451_v46, %v4450_v24  ;;  %v4522_v35 = vpack.c.bf16 %v4483_v27, %v4482_v9  ;;  %v4006_v27 = vld [vmem:[#allocation2 + $0x80] sm:$0xff]  ;;  %v4007_v9 = vld [vmem:[#allocation2 + $0x1a8] sm:$0xff] }
 0x627   : > { %4924 = vmatmul.bf16.gmra.mxu0 %v6254_v19  ;;  %v6272_v46 = vld [vmem:[%s7236_s27 + $0xe0] sm:$0xff] }
 0x628   : > { %5116 = vmatmul.bf16.gmra.mxu1 %v4503_v2  ;;  %5196 = vmatmul.bf16.gmra.mxu3 %v4519_v60  ;;  %v8235_v60 = vpop.f32.mrf.mxu0  ;;  %v8237_v8 = vpop.f32.mrf.mxu2 }
 0x629   : > { %v4382_v7 = vpop.permute.xlu2 %4381 }
 0x62b   : > { %v4367_v44 = vpop.permute.xlu0 %4366  ;;  %v4372_v47 = vpop.permute.xlu1 %4371 }
 0x62c   : > { %v4484_v39 = vmul.f32 %v4367_v44, %v4036_v17  ;;  %v4485_v57 = vmul.f32 %v4372_v47, %v4037_v45 }
 0x62d   : > { %5009 = vmatmul.bf16.gmra.mxu2 %v6271_v21 }
 0x62e   : > { %v4523_v63 = vpack.c.bf16 %v4485_v57, %v4484_v39 }
 0x630   : > { %v8245_v49 = vpop.f32.mrf.mxu0  ;;  %v8247_v6 = vpop.f32.mrf.mxu2 }
 0x633   : > { %v4212_v41 = vpop.permute.xlu0 %4211  ;;  %v4377_v15 = vpop.permute.xlu1 %4376 }
 0x634   : > { %v4486_v19 = vmul.f32 %v4377_v15, %v4038_v59 }
 0x637   : > { %4929 = vmatmul.bf16.gmra.mxu0 %v6255_v34  ;;  %v4040_v34 = vld [vmem:[#allocation2 + $0x68] sm:$0xff] }
 0x638   : > { %5121 = vmatmul.bf16.gmra.mxu1 %v4504_v50  ;;  %5201 = vmatmul.bf16.gmra.mxu3 %v4520_v32  ;;  %v4453_v50 = vmul.f32 %v4212_v41, %v4005_v4  ;;  %v8254_v55 = vpop.f32.mrf.mxu0  ;;  %v8256_v38 = vpop.f32.mrf.mxu2  ;;  %v6256_v41 = vld [vmem:[%s7236_s27 + $0x60] sm:$0xff] }
 0x63b   : > { %v4217_v1 = vpop.permute.xlu0 %4216  ;;  %v4222_v24 = vpop.permute.xlu1 %4221 }
 0x63d   : > { %5014 = vmatmul.bf16.gmra.mxu2 %v6272_v46 }
 0x640   : > { %v8267_v45 = vpop.f32.mrf.mxu2 }
 0x647   : > { %4934 = vmatmul.bf16.gmra.mxu0 %v6256_v41  ;;  %v4011_v41 = vld [vmem:[#allocation2 + $0xf8] sm:$0xff] }
 0x648   : > { %5126 = vmatmul.bf16.gmra.mxu1 %v4505_v33  ;;  %5206 = vmatmul.bf16.gmra.mxu3 %v4521_v56 }
 0x655   : > { %v5092_v43 = vpop.f32.mrf.mxu1 }
 0x656   : > { %v5093_v11 = vadd.f32 %v5092_v43, %v4875_v52  ;;  %v4004_v52 = vld [vmem:[#allocation2 + $0x138] sm:$0xff] }
 0x657   : > { %v4039_v43 = vld [vmem:[#allocation2 + $0x178] sm:$0xff] }
 0x658   : > { %5131 = vmatmul.bf16.gmra.mxu1 %v4506_v20  ;;  %5211 = vmatmul.bf16.gmra.mxu3 %v4522_v35  ;;  %v5256_v48 = vadd.f32 %v8233_v30, %v5093_v11  ;;  %v4454_v20 = vmul.f32 %v4217_v1, %v4006_v27  ;;  %v4455_v35 = vmul.f32 %v4222_v24, %v4007_v9  ;;  %v6257_v24 = vld [vmem:[%s7236_s27 + $0x68] sm:$0xff] }
 0x659   : > { %4939 = vmatmul.bf16.gmra.mxu0 %v6257_v24 }
 0x65a   : > { %v5320_v32 = vmax.f32 %v5256_v48, 0.0  ;;  %v4508_v21 = vpack.c.bf16 %v4455_v35, %v4454_v20 }
 0x65b   : > { %v5172_v2 = vpop.f32.mrf.mxu3 }
 0x65c   : > { %v5173_v42 = vadd.f32 %v5172_v2, %v8212_v23 }
 0x65d   : > { %v5094_v53 = vpop.f32.mrf.mxu1 }
 0x65e   : > { %v5095_v29 = vadd.f32 %v5094_v53, %v4877_v3  ;;  %v4452_v3 = vmul.f32 %v4207_v18, %v4004_v52  ;;  %v5288_v13 = vadd.f32 %v8233_v30, %v5173_v42 }
 0x660   : > { %v5257_v0 = vadd.f32 %v8233_v30, %v5095_v29  ;;  %v4507_v12 = vpack.c.bf16 %v4453_v50, %v4452_v3  ;;  %v5352_v10 = vmax.f32 %v5288_v13, 0.0  ;;  %v8265_v29 = vpop.f32.mrf.mxu0  ;;  %v4041_v13 = vld [vmem:[#allocation2 + $0x190] sm:$0xff] }
 0x662   : > { %v5321_v14 = vmax.f32 %v5257_v0, 0.0  ;;  %v4387_v0 = vpop.permute.xlu2 %4386 }
 0x663   : > { %v5174_v26 = vpop.f32.mrf.mxu3 }
 0x664   : > { %v6288_v51 = vpack.c.bf16 %v5321_v14, %v5320_v32  ;;  %v5175_v23 = vadd.f32 %v5174_v26, %v8215_v16  ;;  %v8276_v26 = vpop.f32.mrf.mxu2 }
 0x665   : > { %v5097_v22 = vpop.f32.mrf.mxu1 }
 0x666   : > { %6289 = vst [vmem:[%s7256_s14] sm:$0xff] %v6288_v51   ;;  %v5289_v5 = vadd.f32 %v8233_v30, %v5175_v23  ;;  %v5098_v16 = vadd.f32 %v5097_v22, %v8218_v31  ;;  %v4227_v51 = vpop.permute.xlu1 %4226  ;;  %v4008_v23 = vld [vmem:[#allocation2 + $0x1b8] sm:$0xff]  ;;  %v6273_v22 = vld [vmem:[%s7236_s27 + $0xe8] sm:$0xff] }
 0x667   : > { %5019 = vmatmul.bf16.gmra.mxu2 %v6273_v22  ;;  %v6258_v22 = vld [vmem:[%s7236_s27 + $0x70] sm:$0xff] }
 0x668   : > { %v5353_v33 = vmax.f32 %v5289_v5, 0.0  ;;  %5136 = vmatmul.bf16.gmra.mxu1 %v4507_v12  ;;  %5216 = vmatmul.bf16.gmra.mxu3 %v4523_v63  ;;  %v5258_v25 = vadd.f32 %v8233_v30, %v5098_v16  ;;  %v8274_v32 = vpop.f32.mrf.mxu0  ;;  %v4009_v63 = vld [vmem:[#allocation2 + $0x28] sm:$0xff] }
 0x669   : > { %4944 = vmatmul.bf16.gmra.mxu0 %v6258_v22 }
 0x66a   : > { %v6368_v56 = vpack.c.bf16 %v5353_v33, %v5352_v10  ;;  %v5322_v47 = vmax.f32 %v5258_v25, 0.0  ;;  %v4232_v12 = vpop.permute.xlu2 %4231  ;;  %v4456_v33 = vmul.f32 %v4227_v51, %v4008_v23 }
 0x66b   : > { %v5177_v40 = vpop.f32.mrf.mxu3 }
 0x66c   : > { %6460 = vst [vmem:[%s7256_s14 + $0x80] sm:$0xff] %v6368_v56   ;;  %v5178_v31 = vadd.f32 %v5177_v40, %v8220_v54  ;;  %v4488_v40 = vmul.f32 %v4387_v0, %v4040_v34  ;;  %v8287_v27 = vpop.f32.mrf.mxu2  ;;  %v4010_v0 = vld [vmem:[#allocation2 + $0x1e8] sm:$0xff] }
 0x66d   : > { %v5099_v36 = vpop.f32.mrf.mxu1 }
 0x66e   : > { %v5100_v61 = vadd.f32 %v5099_v36, %v8223_v37  ;;  %v4487_v37 = vmul.f32 %v4382_v7, %v4039_v43  ;;  %v5290_v53 = vadd.f32 %v8233_v30, %v5178_v31  ;;  %v4457_v7 = vmul.f32 %v4232_v12, %v4009_v63 }
 0x670   : > { %v5259_v44 = vadd.f32 %v8233_v30, %v5100_v61  ;;  %v4524_v42 = vpack.c.bf16 %v4487_v37, %v4486_v19  ;;  %v5354_v18 = vmax.f32 %v5290_v53, 0.0  ;;  %v8285_v61 = vpop.f32.mrf.mxu0  ;;  %v4509_v46 = vpack.c.bf16 %v4457_v7, %v4456_v33  ;;  %v4402_v19 = vpop.permute.xlu1 %4401  ;;  %v4042_v37 = vld [vmem:[#allocation2 + $0x198] sm:$0xff] }
 0x672   : > { %v5323_v11 = vmax.f32 %v5259_v44, 0.0 }
 0x673   : > { %v5179_v2 = vpop.f32.mrf.mxu3 }
 0x674   : > { %v6293_v17 = vpack.c.bf16 %v5323_v11, %v5322_v47  ;;  %v5180_v48 = vadd.f32 %v5179_v2, %v8225_v58  ;;  %v4392_v58 = vpop.permute.xlu0 %4391  ;;  %v8296_v2 = vpop.f32.mrf.mxu2 }
 0x675   : > { %v5102_v54 = vpop.f32.mrf.mxu1  ;;  %v4489_v10 = vmul.f32 %v4392_v58, %v4041_v13 }
 0x676   : > { %6445 = vst [vmem:[%s7256_s14 + $0x8] sm:$0xff] %v6293_v17   ;;  %v5291_v4 = vadd.f32 %v8233_v30, %v5180_v48  ;;  %v5103_v57 = vadd.f32 %v5102_v54, %v8228_v28  ;;  %v4043_v48 = vld [vmem:[#allocation2 + $0x38] sm:$0xff] }
 0x677   : > { %v4525_v31 = vpack.c.bf16 %v4489_v10, %v4488_v40 }
 0x678   : > { %v5355_v52 = vmax.f32 %v5291_v4, 0.0  ;;  %5141 = vmatmul.bf16.gmra.mxu1 %v4508_v21  ;;  %5221 = vmatmul.bf16.gmra.mxu3 %v4524_v42  ;;  %v5260_v3 = vadd.f32 %v8233_v30, %v5103_v57  ;;  %v8294_v47 = vpop.f32.mrf.mxu0  ;;  %v6274_v4 = vld [vmem:[%s7236_s27 + $0xf0] sm:$0xff]  ;;  %v4237_v42 = vpop.permute.xlu2 %4236 }
 0x679   : > { %5024 = vmatmul.bf16.gmra.mxu2 %v6274_v4 }
 0x67a   : > { %v6373_v39 = vpack.c.bf16 %v5355_v52, %v5354_v18  ;;  %v5324_v56 = vmax.f32 %v5260_v3, 0.0  ;;  %v4491_v52 = vmul.f32 %v4402_v19, %v4043_v48  ;;  %v6259_v48 = vld [vmem:[%s7236_s27 + $0x78] sm:$0xff] }
 0x67b   : > { %v5182_v50 = vpop.f32.mrf.mxu3  ;;  %4949 = vmatmul.bf16.gmra.mxu0 %v6259_v48 }
 0x67c   : > { %6461 = vst [vmem:[%s7256_s14 + $0x88] sm:$0xff] %v6373_v39   ;;  %v5183_v5 = vadd.f32 %v5182_v50, %v8230_v62  ;;  %v4397_v36 = vpop.permute.xlu0 %4396  ;;  %v8307_v23 = vpop.f32.mrf.mxu2 }
 0x67d   : > { %v5104_v14 = vpop.f32.mrf.mxu1  ;;  %v4490_v18 = vmul.f32 %v4397_v36, %v4042_v37 }
 0x67e   : > { %v5105_v15 = vadd.f32 %v5104_v14, %v8235_v60  ;;  %v5292_v59 = vadd.f32 %v8233_v30, %v5183_v5  ;;  %v4407_v14 = vpop.permute.xlu1 %4406 }
 0x67f   : > { %v4526_v34 = vpack.c.bf16 %v4491_v52, %v4490_v18 }
 0x680   : > { %v5261_v28 = vadd.f32 %v8233_v30, %v5105_v15  ;;  %v5356_v44 = vmax.f32 %v5292_v59, 0.0  ;;  %v8305_v13 = vpop.f32.mrf.mxu0 }
 0x682   : > { %v5325_v16 = vmax.f32 %v5261_v28, 0.0 }
 0x683   : > { %v5184_v60 = vpop.f32.mrf.mxu3 }
 0x684   : > { %v6298_v25 = vpack.c.bf16 %v5325_v16, %v5324_v56  ;;  %v5185_v62 = vadd.f32 %v5184_v60, %v8237_v8  ;;  %v4242_v54 = vpop.permute.xlu0 %4241  ;;  %v4412_v16 = vpop.permute.xlu2 %4411  ;;  %v4044_v60 = vld [vmem:[#allocation2 + $0xc0] sm:$0xff] }
 0x685   : > { %v5107_v1 = vpop.f32.mrf.mxu1  ;;  %v4459_v58 = vmul.f32 %v4242_v54, %v4011_v41  ;;  %v8318_v24 = vpop.f32.mrf.mxu2 }
 0x686   : > { %6446 = vst [vmem:[%s7256_s14 + $0x10] sm:$0xff] %v6298_v25   ;;  %v5293_v9 = vadd.f32 %v8233_v30, %v5185_v62  ;;  %v5108_v20 = vadd.f32 %v5107_v1, %v8245_v49  ;;  %v4012_v25 = vld [vmem:[#allocation2 + $0x160] sm:$0xff]  ;;  %v4252_v62 = vpop.permute.xlu1 %4251  ;;  %v4013_v1 = vld [vmem:[#allocation2 + $0x30] sm:$0xff] }
 0x687   : > { %v4461_v19 = vmul.f32 %v4252_v62, %v4013_v1 }
 0x688   : > { %v5357_v43 = vmax.f32 %v5293_v9, 0.0  ;;  %5146 = vmatmul.bf16.gmra.mxu1 %v4509_v46  ;;  %5226 = vmatmul.bf16.gmra.mxu3 %v4525_v31  ;;  %v5262_v53 = vadd.f32 %v8233_v30, %v5108_v20  ;;  %v8314_v56 = vpop.f32.mrf.mxu0  ;;  %v6275_v9 = vld [vmem:[%s7236_s27 + $0xf8] sm:$0xff]  ;;  %v4045_v31 = vld [vmem:[#allocation2 + $0x1c0] sm:$0xff] }
 0x689   : > { %5029 = vmatmul.bf16.gmra.mxu2 %v6275_v9 }
 0x68a   : > { %v6378_v8 = vpack.c.bf16 %v5357_v43, %v5356_v44  ;;  %v5326_v39 = vmax.f32 %v5262_v53, 0.0  ;;  %v4492_v44 = vmul.f32 %v4407_v14, %v4044_v60  ;;  %v4047_v14 = vld [vmem:[#allocation2 + $0x10] sm:$0xff] }
 0x68b   : > { %v5187_v35 = vpop.f32.mrf.mxu3 }
 0x68c   : > { %6462 = vst [vmem:[%s7256_s14 + $0x90] sm:$0xff] %v6378_v8   ;;  %v5188_v21 = vadd.f32 %v5187_v35, %v8247_v6  ;;  %v4247_v7 = vpop.permute.xlu0 %4246  ;;  %v4493_v35 = vmul.f32 %v4412_v16, %v4045_v31 }
 0x68d   : > { %v5109_v11 = vpop.f32.mrf.mxu1  ;;  %v4460_v43 = vmul.f32 %v4247_v7, %v4012_v25 }
 0x68e   : > { %v5110_v17 = vadd.f32 %v5109_v11, %v8254_v55  ;;  %v4458_v55 = vmul.f32 %v4237_v42, %v4010_v0  ;;  %v5294_v3 = vadd.f32 %v8233_v30, %v5188_v21  ;;  %v4527_v54 = vpack.c.bf16 %v4493_v35, %v4492_v44  ;;  %v4417_v21 = vpop.permute.xlu2 %4416  ;;  %v8330_v0 = vpop.f32.mrf.mxu2 }
 0x68f   : > { %v4511_v41 = vpack.c.bf16 %v4461_v19, %v4460_v43  ;;  %v4048_v43 = vld [vmem:[#allocation2 + $0x58] sm:$0xff] }
 0x690   : > { %v5263_v49 = vadd.f32 %v8233_v30, %v5110_v17  ;;  %v4510_v5 = vpack.c.bf16 %v4459_v58, %v4458_v55  ;;  %v5358_v12 = vmax.f32 %v5294_v3, 0.0  ;;  %v8325_v17 = vpop.f32.mrf.mxu0  ;;  %v4257_v3 = vpop.permute.xlu1 %4256 }
 0x692   : > { %v5327_v57 = vmax.f32 %v5263_v49, 0.0 }
 0x693   : > { %v5189_v50 = vpop.f32.mrf.mxu3 }
 0x694   : > { %v6303_v15 = vpack.c.bf16 %v5327_v57, %v5326_v39  ;;  %v5190_v6 = vadd.f32 %v5189_v50, %v8256_v38  ;;  %v4422_v52 = vpop.permute.xlu0 %4421 }
 0x695   : > { %v5112_v51 = vpop.f32.mrf.mxu1 }
 0x696   : > { %6447 = vst [vmem:[%s7256_s14 + $0x18] sm:$0xff] %v6303_v15   ;;  %v5295_v28 = vadd.f32 %v8233_v30, %v5190_v6  ;;  %v5113_v38 = vadd.f32 %v5112_v51, %v8265_v29  ;;  %v4014_v15 = vld [vmem:[#allocation2 + $0x1e0] sm:$0xff]  ;;  %v4046_v6 = vld [vmem:[#allocation2 + $0x158] sm:$0xff] }
 0x698   : > { %v5359_v63 = vmax.f32 %v5295_v28, 0.0  ;;  %5151 = vmatmul.bf16.gmra.mxu1 %v4510_v5  ;;  %5231 = vmatmul.bf16.gmra.mxu3 %v4526_v34  ;;  %v5264_v36 = vadd.f32 %v8233_v30, %v5113_v38  ;;  %v8334_v57 = vpop.f32.mrf.mxu0  ;;  %v4262_v34 = vpop.permute.xlu2 %4261  ;;  %v4495_v5 = vmul.f32 %v4422_v52, %v4047_v14  ;;  %v4462_v28 = vmul.f32 %v4257_v3, %v4014_v15 }
 0x69a   : > { %v6383_v10 = vpack.c.bf16 %v5359_v63, %v5358_v12  ;;  %v5328_v8 = vmax.f32 %v5264_v36, 0.0 }
 0x69b   : > { %v5192_v33 = vpop.f32.mrf.mxu3 }
 0x69c   : > { %6463 = vst [vmem:[%s7256_s14 + $0x98] sm:$0xff] %v6383_v10   ;;  %v5193_v29 = vadd.f32 %v5192_v33, %v8267_v45  ;;  %v4494_v10 = vmul.f32 %v4417_v21, %v4046_v6  ;;  %v8340_v33 = vpop.f32.mrf.mxu2  ;;  %v4427_v60 = vpop.permute.xlu0 %4426 }
 0x69d   : > { %v5114_v40 = vpop.f32.mrf.mxu1  ;;  %v4496_v48 = vmul.f32 %v4427_v60, %v4048_v43 }
 0x69e   : > { %v5115_v59 = vadd.f32 %v5114_v40, %v8274_v32  ;;  %v5296_v11 = vadd.f32 %v8233_v30, %v5193_v29  ;;  %v4528_v36 = vpack.c.bf16 %v4495_v5, %v4494_v10 }
 0x6a0   : > { %v5265_v46 = vadd.f32 %v8233_v30, %v5115_v59  ;;  %v5360_v49 = vmax.f32 %v5296_v11, 0.0  ;;  %v8346_v62 = vpop.f32.mrf.mxu0  ;;  %v4017_v11 = vld [vmem:[#allocation2 + $0x8] sm:$0xff] }
 0x6a2   : > { %v5329_v20 = vmax.f32 %v5265_v46, 0.0 }
 0x6a3   : > { %v5194_v32 = vpop.f32.mrf.mxu3 }
 0x6a4   : > { %v6308_v37 = vpack.c.bf16 %v5329_v20, %v5328_v8  ;;  %v5195_v53 = vadd.f32 %v5194_v32, %v8276_v26  ;;  %v4432_v20 = vpop.permute.xlu1 %4431  ;;  %v4049_v32 = vld [vmem:[#allocation2 + $0xa0] sm:$0xff]  ;;  %v4272_v35 = vpop.permute.xlu0 %4271 }
 0x6a5   : > { %v5117_v45 = vpop.f32.mrf.mxu1 }
 0x6a6   : > { %6448 = vst [vmem:[%s7256_s14 + $0x20] sm:$0xff] %v6308_v37   ;;  %v5297_v4 = vadd.f32 %v8233_v30, %v5195_v53  ;;  %v5118_v26 = vadd.f32 %v5117_v45, %v8285_v61  ;;  %v4015_v61 = vld [vmem:[#allocation2] sm:$0xff]  ;;  %v4267_v45 = vpop.permute.xlu2 %4266 }
 0x6a8   : > { %v5361_v42 = vmax.f32 %v5297_v4, 0.0  ;;  %5156 = vmatmul.bf16.gmra.mxu1 %v4511_v41  ;;  %5236 = vmatmul.bf16.gmra.mxu3 %v4527_v54  ;;  %v5266_v50 = vadd.f32 %v8233_v30, %v5118_v26  ;;  %v4917_v54 = vpop.f32.mrf.mxu0  ;;  %v4497_v41 = vmul.f32 %v4432_v20, %v4049_v32  ;;  %v4465_v4 = vmul.f32 %v4272_v35, %v4017_v11 }
 0x6aa   : > { %v6388_v18 = vpack.c.bf16 %v5361_v42, %v5360_v49  ;;  %v5330_v12 = vmax.f32 %v5266_v50, 0.0 }
 0x6ab   : > { %v5197_v58 = vpop.f32.mrf.mxu3 }
 0x6ac   : > { %6464 = vst [vmem:[%s7256_s14 + $0xa0] sm:$0xff] %v6388_v18   ;;  %v5198_v51 = vadd.f32 %v5197_v58, %v8287_v27  ;;  %v4529_v58 = vpack.c.bf16 %v4497_v41, %v4496_v48 }
 0x6ad   : > { %v5119_v39 = vpop.f32.mrf.mxu1 }
 0x6ae   : > { %v5120_v55 = vadd.f32 %v5119_v39, %v8294_v47  ;;  %v4463_v47 = vmul.f32 %v4262_v34, %v4015_v61  ;;  %v5298_v16 = vadd.f32 %v8233_v30, %v5198_v51 }
 0x6b0   : > { %v5267_v22 = vadd.f32 %v8233_v30, %v5120_v55  ;;  %v4512_v59 = vpack.c.bf16 %v4463_v47, %v4462_v28  ;;  %v5362_v1 = vmax.f32 %v5298_v16, 0.0 }
 0x6b2   : > { %v5331_v63 = vmax.f32 %v5267_v22, 0.0  ;;  %v4920_v22 = vpop.f32.mrf.mxu0 }
 0x6b3   : > { %v5199_v38 = vpop.f32.mrf.mxu3 }
 0x6b4   : > { %v6313_v40 = vpack.c.bf16 %v5331_v63, %v5330_v12  ;;  %v5200_v27 = vadd.f32 %v5199_v38, %v8296_v2  ;;  %v8350_v2 = vpop.f32.mrf.mxu2 }
 0x6b5   : > { %v5122_v7 = vpop.f32.mrf.mxu1 }
 0x6b6   : > { %6449 = vst [vmem:[%s7256_s14 + $0x28] sm:$0xff] %v6313_v40   ;;  %v5299_v25 = vadd.f32 %v8233_v30, %v5200_v27  ;;  %v5123_v46 = vadd.f32 %v5122_v7, %v8305_v13  ;;  %v4016_v13 = vld [vmem:[#allocation2 + $0xf0] sm:$0xff] }
 0x6b7   : > { %v4464_v18 = vmul.f32 %v4267_v45, %v4016_v13 }
 0x6b8   : > { %v5363_v9 = vmax.f32 %v5299_v25, 0.0  ;;  %5161 = vmatmul.bf16.gmra.mxu1 %v4512_v59  ;;  %5241 = vmatmul.bf16.gmra.mxu3 %v4528_v36  ;;  %v5268_v19 = vadd.f32 %v8233_v30, %v5123_v46 }
 0x6b9   : > { %v4513_v39 = vpack.c.bf16 %v4465_v4, %v4464_v18 }
 0x6ba   : > { %v6393_v29 = vpack.c.bf16 %v5363_v9, %v5362_v1  ;;  %v5332_v21 = vmax.f32 %v5268_v19, 0.0  ;;  %v4922_v27 = vpop.f32.mrf.mxu0 }
 0x6bb   : > { %v5202_v31 = vpop.f32.mrf.mxu3 }
 0x6bc   : > { %6465 = vst [vmem:[%s7256_s14 + $0xa8] sm:$0xff] %v6393_v29   ;;  %v5203_v37 = vadd.f32 %v5202_v31, %v8307_v23  ;;  %v4997_v55 = vpop.f32.mrf.mxu2 }
 0x6bd   : > { %v5124_v44 = vpop.f32.mrf.mxu1 }
 0x6be   : > { %v5125_v8 = vadd.f32 %v5124_v44, %v8314_v56  ;;  %v5300_v56 = vadd.f32 %v8233_v30, %v5203_v37 }
 0x6c0   : > { %v5269_v53 = vadd.f32 %v8233_v30, %v5125_v8  ;;  %v5364_v14 = vmax.f32 %v5300_v56, 0.0 }
 0x6c2   : > { %v5333_v49 = vmax.f32 %v5269_v53, 0.0  ;;  %v4925_v46 = vpop.f32.mrf.mxu0 }
 0x6c3   : > { %v5204_v42 = vpop.f32.mrf.mxu3 }
 0x6c4   : > { %v6318_v26 = vpack.c.bf16 %v5333_v49, %v5332_v21  ;;  %v5205_v52 = vadd.f32 %v5204_v42, %v8318_v24  ;;  %v5000_v12 = vpop.f32.mrf.mxu2 }
 0x6c5   : > { %v5127_v23 = vpop.f32.mrf.mxu1 }
 0x6c6   : > { %6450 = vst [vmem:[%s7256_s14 + $0x30] sm:$0xff] %v6318_v26   ;;  %v5301_v50 = vadd.f32 %v8233_v30, %v5205_v52  ;;  %v5128_v6 = vadd.f32 %v5127_v23, %v8325_v17 }
 0x6c8   : > { %v5365_v3 = vmax.f32 %v5301_v50, 0.0  ;;  %5166 = vmatmul.bf16.gmra.mxu1 %v4513_v39  ;;  %5246 = vmatmul.bf16.gmra.mxu3 %v4529_v58  ;;  %v5270_v24 = vadd.f32 %v8233_v30, %v5128_v6 }
 0x6ca   : > { %v6398_v15 = vpack.c.bf16 %v5365_v3, %v5364_v14  ;;  %v5334_v63 = vmax.f32 %v5270_v24, 0.0  ;;  %v4927_v45 = vpop.f32.mrf.mxu0 }
 0x6cb   : > { %v5207_v51 = vpop.f32.mrf.mxu3 }
 0x6cc   : > { %6466 = vst [vmem:[%s7256_s14 + $0xb0] sm:$0xff] %v6398_v15   ;;  %v5208_v5 = vadd.f32 %v5207_v51, %v8330_v0  ;;  %v5002_v25 = vpop.f32.mrf.mxu2 }
 0x6cd   : > { %v5129_v34 = vpop.f32.mrf.mxu1 }
 0x6ce   : > { %v5130_v61 = vadd.f32 %v5129_v34, %v8334_v57  ;;  %v5302_v17 = vadd.f32 %v8233_v30, %v5208_v5 }
 0x6d0   : > { %v5271_v28 = vadd.f32 %v8233_v30, %v5130_v61  ;;  %v5366_v57 = vmax.f32 %v5302_v17, 0.0 }
 0x6d2   : > { %v5335_v10 = vmax.f32 %v5271_v28, 0.0  ;;  %v4930_v52 = vpop.f32.mrf.mxu0 }
 0x6d3   : > { %v5209_v38 = vpop.f32.mrf.mxu3 }
 0x6d4   : > { %v6323_v47 = vpack.c.bf16 %v5335_v10, %v5334_v63  ;;  %v5210_v16 = vadd.f32 %v5209_v38, %v8340_v33  ;;  %v5005_v35 = vpop.f32.mrf.mxu2 }
 0x6d5   : > { %v5132_v40 = vpop.f32.mrf.mxu1 }
 0x6d6   : > { %6451 = vst [vmem:[%s7256_s14 + $0x38] sm:$0xff] %v6323_v47   ;;  %v5303_v60 = vadd.f32 %v8233_v30, %v5210_v16  ;;  %v5133_v36 = vadd.f32 %v5132_v40, %v8346_v62 }
 0x6d8   : > { %v5367_v7 = vmax.f32 %v5303_v60, 0.0  ;;  %v5272_v9 = vadd.f32 %v8233_v30, %v5133_v36 }
 0x6da   : > { %v6403_v0 = vpack.c.bf16 %v5367_v7, %v5366_v57  ;;  %v5336_v44 = vmax.f32 %v5272_v9, 0.0  ;;  %v4932_v24 = vpop.f32.mrf.mxu0 }
 0x6db   : > { %v5212_v59 = vpop.f32.mrf.mxu3 }
 0x6dc   : > { %6467 = vst [vmem:[%s7256_s14 + $0xb8] sm:$0xff] %v6403_v0   ;;  %v5213_v33 = vadd.f32 %v5212_v59, %v8350_v2  ;;  %v5007_v21 = vpop.f32.mrf.mxu2 }
 0x6dd   : > { %v5134_v1 = vpop.f32.mrf.mxu1 }
 0x6de   : > { %v5135_v29 = vadd.f32 %v5134_v1, %v4917_v54  ;;  %v5304_v8 = vadd.f32 %v8233_v30, %v5213_v33 }
 0x6e0   : > { %v5273_v31 = vadd.f32 %v8233_v30, %v5135_v29  ;;  %v5368_v37 = vmax.f32 %v5304_v8, 0.0 }
 0x6e2   : > { %v5337_v43 = vmax.f32 %v5273_v31, 0.0  ;;  %v4935_v57 = vpop.f32.mrf.mxu0 }
 0x6e3   : > { %v5214_v19 = vpop.f32.mrf.mxu3 }
 0x6e4   : > { %v6328_v62 = vpack.c.bf16 %v5337_v43, %v5336_v44  ;;  %v5215_v20 = vadd.f32 %v5214_v19, %v4997_v55  ;;  %v5010_v15 = vpop.f32.mrf.mxu2 }
 0x6e5   : > { %v5137_v32 = vpop.f32.mrf.mxu1 }
 0x6e6   : > { %6452 = vst [vmem:[%s7256_s14 + $0x40] sm:$0xff] %v6328_v62   ;;  %v5305_v11 = vadd.f32 %v8233_v30, %v5215_v20  ;;  %v5138_v2 = vadd.f32 %v5137_v32, %v4920_v22 }
 0x6e8   : > { %v5369_v53 = vmax.f32 %v5305_v11, 0.0  ;;  %v5274_v41 = vadd.f32 %v8233_v30, %v5138_v2 }
 0x6ea   : > { %v6408_v13 = vpack.c.bf16 %v5369_v53, %v5368_v37  ;;  %v5338_v18 = vmax.f32 %v5274_v41, 0.0  ;;  %v4937_v44 = vpop.f32.mrf.mxu0 }
 0x6eb   : > { %v5217_v48 = vpop.f32.mrf.mxu3 }
 0x6ec   : > { %6468 = vst [vmem:[%s7256_s14 + $0xc0] sm:$0xff] %v6408_v13   ;;  %v5218_v49 = vadd.f32 %v5217_v48, %v5000_v12  ;;  %v5012_v17 = vpop.f32.mrf.mxu2 }
 0x6ed   : > { %v5139_v54 = vpop.f32.mrf.mxu1 }
 0x6ee   : > { %v5140_v4 = vadd.f32 %v5139_v54, %v4922_v27  ;;  %v5306_v23 = vadd.f32 %v8233_v30, %v5218_v49 }
 0x6f0   : > { %v5275_v42 = vadd.f32 %v8233_v30, %v5140_v4  ;;  %v5370_v14 = vmax.f32 %v5306_v23, 0.0 }
 0x6f2   : > { %v5339_v56 = vmax.f32 %v5275_v42, 0.0  ;;  %v4940_v54 = vpop.f32.mrf.mxu0 }
 0x6f3   : > { %v5219_v26 = vpop.f32.mrf.mxu3 }
 0x6f4   : > { %v6333_v58 = vpack.c.bf16 %v5339_v56, %v5338_v18  ;;  %v5220_v39 = vadd.f32 %v5219_v26, %v5002_v25  ;;  %v5015_v9 = vpop.f32.mrf.mxu2 }
 0x6f5   : > { %v5142_v50 = vpop.f32.mrf.mxu1 }
 0x6f6   : > { %6453 = vst [vmem:[%s7256_s14 + $0x48] sm:$0xff] %v6333_v58   ;;  %v5307_v55 = vadd.f32 %v8233_v30, %v5220_v39  ;;  %v5143_v51 = vadd.f32 %v5142_v50, %v4925_v46 }
 0x6f8   : > { %v5371_v3 = vmax.f32 %v5307_v55, 0.0  ;;  %v5276_v61 = vadd.f32 %v8233_v30, %v5143_v51 }
 0x6fa   : > { %v6413_v6 = vpack.c.bf16 %v5371_v3, %v5370_v14  ;;  %v5340_v63 = vmax.f32 %v5276_v61, 0.0  ;;  %v4942_v55 = vpop.f32.mrf.mxu0 }
 0x6fb   : > { %v5222_v22 = vpop.f32.mrf.mxu3 }
 0x6fc   : > { %6469 = vst [vmem:[%s7256_s14 + $0xc8] sm:$0xff] %v6413_v6   ;;  %v5223_v28 = vadd.f32 %v5222_v22, %v5005_v35  ;;  %v5017_v37 = vpop.f32.mrf.mxu2 }
 0x6fd   : > { %v5144_v34 = vpop.f32.mrf.mxu1 }
 0x6fe   : > { %v5145_v5 = vadd.f32 %v5144_v34, %v4927_v45  ;;  %v5308_v47 = vadd.f32 %v8233_v30, %v5223_v28 }
 0x700   : > { %v5277_v12 = vadd.f32 %v8233_v30, %v5145_v5  ;;  %v5372_v7 = vmax.f32 %v5308_v47, 0.0 }
 0x702   : > { %v5341_v10 = vmax.f32 %v5277_v12, 0.0  ;;  %v4945_v28 = vpop.f32.mrf.mxu0 }
 0x703   : > { %v5224_v38 = vpop.f32.mrf.mxu3 }
 0x704   : > { %v6338_v16 = vpack.c.bf16 %v5341_v10, %v5340_v63  ;;  %v5225_v40 = vadd.f32 %v5224_v38, %v5007_v21  ;;  %v5020_v18 = vpop.f32.mrf.mxu2 }
 0x705   : > { %v5147_v27 = vpop.f32.mrf.mxu1 }
 0x706   : > { %6454 = vst [vmem:[%s7256_s14 + $0x50] sm:$0xff] %v6338_v16   ;;  %v5309_v60 = vadd.f32 %v8233_v30, %v5225_v40  ;;  %v5148_v59 = vadd.f32 %v5147_v27, %v4930_v52 }
 0x708   : > { %v5373_v0 = vmax.f32 %v5309_v60, 0.0  ;;  %v5278_v29 = vadd.f32 %v8233_v30, %v5148_v59 }
 0x70a   : > { %v6418_v36 = vpack.c.bf16 %v5373_v0, %v5372_v7  ;;  %v5342_v43 = vmax.f32 %v5278_v29, 0.0 }
 0x70b   : > { %v5227_v25 = vpop.f32.mrf.mxu3 }
 0x70c   : > { %6470 = vst [vmem:[%s7256_s14 + $0xd0] sm:$0xff] %v6418_v36   ;;  %v5228_v33 = vadd.f32 %v5227_v25, %v5010_v15  ;;  %v5022_v22 = vpop.f32.mrf.mxu2  ;;  %v4947_v36 = vpop.f32.mrf.mxu0 }
 0x70d   : > { %v5149_v1 = vpop.f32.mrf.mxu1 }
 0x70e   : > { %v5150_v46 = vadd.f32 %v5149_v1, %v4932_v24  ;;  %v5310_v62 = vadd.f32 %v8233_v30, %v5228_v33 }
 0x710   : > { %v5279_v31 = vadd.f32 %v8233_v30, %v5150_v46  ;;  %v5374_v53 = vmax.f32 %v5310_v62, 0.0 }
 0x712   : > { %v5343_v19 = vmax.f32 %v5279_v31, 0.0 }
 0x713   : > { %v5229_v8 = vpop.f32.mrf.mxu3 }
 0x714   : > { %v6343_v20 = vpack.c.bf16 %v5343_v19, %v5342_v43  ;;  %v5230_v32 = vadd.f32 %v5229_v8, %v5012_v17  ;;  %v5025_v27 = vpop.f32.mrf.mxu2  ;;  %v4950_v8 = vpop.f32.mrf.mxu0 }
 0x715   : > { %v5152_v35 = vpop.f32.mrf.mxu1 }
 0x716   : > { %6455 = vst [vmem:[%s7256_s14 + $0x58] sm:$0xff] %v6343_v20   ;;  %v5311_v11 = vadd.f32 %v8233_v30, %v5230_v32  ;;  %v5153_v2 = vadd.f32 %v5152_v35, %v4935_v57 }
 0x718   : > { %v5375_v45 = vmax.f32 %v5311_v11, 0.0  ;;  %v5280_v4 = vadd.f32 %v8233_v30, %v5153_v2 }
 0x71a   : > { %v6423_v13 = vpack.c.bf16 %v5375_v45, %v5374_v53  ;;  %v5344_v56 = vmax.f32 %v5280_v4, 0.0 }
 0x71b   : > { %v5232_v48 = vpop.f32.mrf.mxu3 }
 0x71c   : > { %6471 = vst [vmem:[%s7256_s14 + $0xd8] sm:$0xff] %v6423_v13   ;;  %v5233_v49 = vadd.f32 %v5232_v48, %v5015_v9  ;;  %v5027_v33 = vpop.f32.mrf.mxu2 }
 0x71d   : > { %v5154_v41 = vpop.f32.mrf.mxu1 }
 0x71e   : > { %v5155_v21 = vadd.f32 %v5154_v41, %v4937_v44  ;;  %v5312_v23 = vadd.f32 %v8233_v30, %v5233_v49  ;;  %v4952_v41 = vpop.f32.mrf.mxu0 }
 0x720   : > { %v5281_v42 = vadd.f32 %v8233_v30, %v5155_v21  ;;  %v5376_v3 = vmax.f32 %v5312_v23, 0.0 }
 0x722   : > { %v5345_v26 = vmax.f32 %v5281_v42, 0.0 }
 0x723   : > { %v5234_v52 = vpop.f32.mrf.mxu3 }
 0x724   : > { %v6348_v58 = vpack.c.bf16 %v5345_v26, %v5344_v56  ;;  %v5235_v39 = vadd.f32 %v5234_v52, %v5017_v37  ;;  %v5030_v13 = vpop.f32.mrf.mxu2 }
 0x725   : > { %v5157_v50 = vpop.f32.mrf.mxu1 }
 0x726   : > { %6456 = vst [vmem:[%s7256_s14 + $0x60] sm:$0xff] %v6348_v58   ;;  %v5313_v14 = vadd.f32 %v8233_v30, %v5235_v39  ;;  %v5158_v51 = vadd.f32 %v5157_v50, %v4940_v54 }
 0x728   : > { %v5377_v15 = vmax.f32 %v5313_v14, 0.0  ;;  %v5282_v61 = vadd.f32 %v8233_v30, %v5158_v51 }
 0x72a   : > { %v6428_v6 = vpack.c.bf16 %v5377_v15, %v5376_v3  ;;  %v5346_v10 = vmax.f32 %v5282_v61, 0.0 }
 0x72b   : > { %v5237_v34 = vpop.f32.mrf.mxu3 }
 0x72c   : > { %6472 = vst [vmem:[%s7256_s14 + $0xe0] sm:$0xff] %v6428_v6   ;;  %v5238_v12 = vadd.f32 %v5237_v34, %v5020_v18  ;;  %v5032_v52 = vpop.f32.mrf.mxu2 }
 0x72d   : > { %v5159_v24 = vpop.f32.mrf.mxu1 }
 0x72e   : > { %v5160_v5 = vadd.f32 %v5159_v24, %v4942_v55  ;;  %v5314_v47 = vadd.f32 %v8233_v30, %v5238_v12 }
 0x730   : > { %v5283_v63 = vadd.f32 %v8233_v30, %v5160_v5  ;;  %v5378_v7 = vmax.f32 %v5314_v47, 0.0 }
 0x732   : > { %v5347_v38 = vmax.f32 %v5283_v63, 0.0 }
 0x733   : > { %v5239_v17 = vpop.f32.mrf.mxu3 }
 0x734   : > { %v6353_v16 = vpack.c.bf16 %v5347_v38, %v5346_v10  ;;  %v5240_v40 = vadd.f32 %v5239_v17, %v5022_v22 }
 0x735   : > { %v5162_v60 = vpop.f32.mrf.mxu1 }
 0x736   : > { %6457 = vst [vmem:[%s7256_s14 + $0x68] sm:$0xff] %v6353_v16   ;;  %v5315_v57 = vadd.f32 %v8233_v30, %v5240_v40  ;;  %v5163_v25 = vadd.f32 %v5162_v60, %v4945_v28 }
 0x738   : > { %v5379_v0 = vmax.f32 %v5315_v57, 0.0  ;;  %v5284_v29 = vadd.f32 %v8233_v30, %v5163_v25 }
 0x73a   : > { %v6433_v59 = vpack.c.bf16 %v5379_v0, %v5378_v7  ;;  %v5348_v43 = vmax.f32 %v5284_v29, 0.0 }
 0x73b   : > { %v5242_v1 = vpop.f32.mrf.mxu3 }
 0x73c   : > { %6473 = vst [vmem:[%s7256_s14 + $0xe8] sm:$0xff] %v6433_v59   ;;  %v5243_v31 = vadd.f32 %v5242_v1, %v5025_v27 }
 0x73d   : > { %v5164_v9 = vpop.f32.mrf.mxu1 }
 0x73e   : > { %v5165_v46 = vadd.f32 %v5164_v9, %v4947_v36  ;;  %v5316_v20 = vadd.f32 %v8233_v30, %v5243_v31 }
 0x740   : > { %v5285_v44 = vadd.f32 %v8233_v30, %v5165_v46  ;;  %v5380_v53 = vmax.f32 %v5316_v20, 0.0 }
 0x742   : > { %v5349_v19 = vmax.f32 %v5285_v44, 0.0 }
 0x743   : > { %v5244_v62 = vpop.f32.mrf.mxu3 }
 0x744   : > { %v6358_v32 = vpack.c.bf16 %v5349_v19, %v5348_v43  ;;  %v5245_v35 = vadd.f32 %v5244_v62, %v5027_v33 }
 0x745   : > { %v5167_v11 = vpop.f32.mrf.mxu1 }
 0x746   : > { %6458 = vst [vmem:[%s7256_s14 + $0x70] sm:$0xff] %v6358_v32   ;;  %v5317_v37 = vadd.f32 %v8233_v30, %v5245_v35  ;;  %v5168_v48 = vadd.f32 %v5167_v11, %v4950_v8 }
 0x748   : > { %v5381_v45 = vmax.f32 %v5317_v37, 0.0  ;;  %v5286_v21 = vadd.f32 %v8233_v30, %v5168_v48 }
 0x74a   : > { %v6438_v2 = vpack.c.bf16 %v5381_v45, %v5380_v53  ;;  %v5350_v56 = vmax.f32 %v5286_v21, 0.0 }
 0x74b   : > { %v5247_v54 = vpop.f32.mrf.mxu3 }
 0x74c   : > { %6474 = vst [vmem:[%s7256_s14 + $0xf0] sm:$0xff] %v6438_v2   ;;  %v5248_v42 = vadd.f32 %v5247_v54, %v5030_v13 }
 0x74d   : > { %v5169_v4 = vpop.f32.mrf.mxu1 }
 0x74e   : > { %v5170_v49 = vadd.f32 %v5169_v4, %v4952_v41  ;;  %v5318_v58 = vadd.f32 %v8233_v30, %v5248_v42 }
 0x750   : > { %v5287_v18 = vadd.f32 %v8233_v30, %v5170_v49  ;;  %v5382_v14 = vmax.f32 %v5318_v58, 0.0 }
 0x752   : > { %v5351_v26 = vmax.f32 %v5287_v18, 0.0 }
 0x753   : > { %v5249_v23 = vpop.f32.mrf.mxu3 }
 0x754   : > { %v6363_v39 = vpack.c.bf16 %v5351_v26, %v5350_v56  ;;  %v5250_v50 = vadd.f32 %v5249_v23, %v5032_v52 }
 0x756   : > { %6459 = vst [vmem:[%s7256_s14 + $0x78] sm:$0xff] %v6363_v39   ;;  %v5319_v55 = vadd.f32 %v8233_v30, %v5250_v50 }
 0x758   : > { %v5383_v3 = vmax.f32 %v5319_v55, 0.0 }
 0x75a   : > { %v6443_v15 = vpack.c.bf16 %v5383_v3, %v5382_v14 }
 0x75c   : > { %6475 = vst [vmem:[%s7256_s14 + $0xf8] sm:$0xff] %v6443_v15  }
 0x75d PF: > { %s8594_s13 = sld [smem:[#allocation22_spill]]  ;;  %s5525_s1 = sshll.u32 %s7256_s14, 4  ;;  %s5526_s1 = int_to_ptr.vmem [resolvable:$true] %s5525_s1 }
 0x75e   : > { %s8595_s17 = sld [smem:[#allocation64_spill]]  ;;  %s5513_s30 = scalar_lea.sflag [#allocation5], %s376_s20 }
 0x763   : > { %s6284_s27 = sshll.u32 %s8594_s13, 8 }
 0x764   : > { %s5524_s22 = scalar_lea.hbm %s8595_s17, %s6284_s27  ;;  %s6852_s24 = scalar_lea.hbm %s8595_s17, 768 }
 0x765   : > { %s5527_s21 = sshll.u32 %s5524_s22, 4  ;;  %s5528_s21 = int_to_ptr.hbm [resolvable:$true] %s5527_s21 }
 0x766   : > { %s6846_s5 = sshra.s32 %s5528_s21, 4  ;;  %s6847_s5 = int_to_ptr.hbm [resolvable:$true] %s6846_s5 }
 0x767   : > { %s6848_s12 = scalar_lea.hbm %s6847_s5, 256  ;;  %p6853_p9 = scmp.lt.s32.totalorder %s6847_s5, %s8595_s17 }
 0x768   : > { %p6849_p6 = scmp.ne.s32.totalorder %s6847_s5, %s6848_s12  ;;  %p6854_p11 = scmp.lt.s32.totalorder %s6852_s24, %s6848_s12 }
 0x76a   : > { %p6850_p10 = pnand %p6849_p6, %p7203_p13  ;;  %p6855_p0 = por %p6854_p11, %p6853_p9 }
 0x76c   : > { %p6851_p2 = pneg %p6850_p10 }
 0x76e   : > { %p6856_p5 = pnand %p6855_p0, %p6851_p2 }
 0x770   : > { %6859 = shalt.err (!%p6856_p5)
}
 0x771   : > { %s6982_s20 = smov 64   ;;  %s6983_s14 = smov 4  }
 0x772   : > { %6512 = dma.vmem_to_hbm [thread:$0]  (%p7203_p13), %s5526_s1, 4096, %s5528_s21, %s5513_s30, %s6982_s20, %s6982_s20, %s6983_s14  }
 0x773 PF: > { %s8596_s27 = sld [smem:[#allocation20_spill]]  ;;  %p6547_p7 = scmp.ge.s32.totalorder %s6970_s11, 2 }
 0x775   : > { %p6535_p12 = pnand %p6547_p7, %p7099_p8 }
 0x777   : > { %p6536_p3 = pneg %p6535_p12 }
 0x779   : > { %s5542_s23 = sand.u32 1, %s8596_s27  }
 0x77a   : > { %s5543_s22 = scalar_lea.sflag [#allocation5], %s5542_s23 }
 0x77b   : > { %6925 = dma.done.wait (%p6536_p3), %s5543_s22, 4096  }
 0x77c   : > { %6927 = vsyncadd (%p6536_p3), %s5543_s22, 4294963200  ;;  %s25_s11 = sadd.s32 1, %s6970_s11   ;;  %s8598_s1 = sld [smem:[#allocation26_spill]] }
 0x77d   : > { %p22_p4 = scmp.ge.s32.totalorder %s25_s11, 8   ;;  %s8599_s21 = sld [smem:[#allocation27_spill]] }
 0x77e   : > { %s8600_s24 = smov %s6934_s25  ;;  %s8601_s25 = smov %s6938_s26 }
 0x77f   : > { %s8602_s26 = smov %s7197_s7  ;;  %s8603_s27 = smov %s6946_s28 }
 0x780   : > { %s8604_s28 = smov %s6950_s29  ;;  %s8605_s29 = smov %s7163_s3 }
 0x781   : > { %s8606_s30 = smov %s6962_s9  ;;  %s8607_s8 = smov %s6966_s10 }
 0x782   : > { %s8608_s9 = smov %s8598_s1  ;;  %24 = sbr.rel (!%p22_p4) target bundleno = 16 (0x10), region = 132 }
 0x783   : > { %s8609_s10 = smov %s8599_s21 }
 0x787   :  { %5549 = vsyncpa [#allocation4], 1 }
 0x788   :  { %5551 = vsyncpa [#allocation4 + $0x1], 1 }
 0x789   :  { %5552 = vsyncpa [#allocation7], 1 }
 0x78a   :  { %5553 = vsyncpa [#allocation11], 1 }
 0x78b   :  { %5554 = vsyncpa [#allocation5], 1 }
 0x78c   :  { %5556 = vsyncpa [#allocation5 + $0x1], 1 }

</bundles_post_ra>
